<compile_context>
chip_gen: v7x
topology: tpu7x:2x2x1
jax: 0.10.0
libtpu: 0.0.40
codegen_flags: <defaults>
</compile_context>

<pallas_src>
import functools

import jax
import jax.numpy as jnp
from jax import lax
from jax.experimental import pallas as pl
from jax.experimental.pallas import tpu as pltpu


# ---------------------------------------------------------------------------
# Fused ResidualStack kernel (one batch element per grid step)
# ---------------------------------------------------------------------------
def _residual_stack_kernel(x_ref, w1_ref, w2_ref, o_ref, xp_ref, *,
                           H, W, C, Crh, L):
    # x_ref : (1, H, W, C)        input activation (NHWC), f32
    # w1_ref: (L, 9*C, Crh)       3x3 conv weights, im2col-flattened, bf16
    # w2_ref: (L, Crh, C)         1x1 conv weights, bf16
    # o_ref : (1, H, W*C)         lane-dense output
    # xp_ref: (H+2, W+2, C)       VMEM scratch: zero-padded activation buffer

    # Zero the padded scratch once; the 1-pixel halo stays zero for all layers.
    xp_ref[...] = jnp.zeros_like(xp_ref)

    x = x_ref[0].astype(jnp.float32)                      # (H, W, C)

    for l in range(L):                                    # L is small & static
        # In-kernel padding: write the interior of the padded buffer.
        xp_ref[1:H + 1, 1:W + 1, :] = x
        xp = xp_ref[...]                                  # (H+2, W+2, C)

        # im2col: concatenate the 9 shifted views -> one K = 9*C matmul.
        patches = jnp.concatenate(
            [xp[dy:dy + H, dx:dx + W, :].reshape(H * W, C)
             for dy in range(3) for dx in range(3)],
            axis=-1)                                      # (H*W, 9*C)

        h = jnp.dot(patches.astype(jnp.bfloat16), w1_ref[l],
                    preferred_element_type=jnp.float32)   # (H*W, Crh)
        h = jnp.maximum(h, 0.0)                           # ReLU

        out = jnp.dot(h.astype(jnp.bfloat16), w2_ref[l],
                      preferred_element_type=jnp.float32)  # (H*W, C)

        # Residual add uses the un-padded f32 value (no odd-offset slice).
        x = jnp.maximum(out + x.reshape(H * W, C), 0.0).reshape(H, W, C)

    # Stack's trailing ReLU (idempotent after the loop; covers L == 0 too).
    x = jnp.maximum(x, 0.0)

    # Lane-dense store: last dim W*C (>= 128) instead of C.
    o_ref[0] = x.reshape(H, W * C).astype(o_ref.dtype)


# ---------------------------------------------------------------------------
# Wrapper (NCHW in / NCHW out, single fused pallas_call)
# ---------------------------------------------------------------------------
def residual_stack_forward(params, x_nchw):
    B, C, H, W = x_nchw.shape
    L, KC, Crh = params["w1"].shape
    assert KC == 9 * C

    x = jnp.transpose(x_nchw, (0, 2, 3, 1))               # NHWC

    kern = functools.partial(_residual_stack_kernel,
                             H=H, W=W, C=C, Crh=Crh, L=L)
    out = pl.pallas_call(
        kern,
        out_shape=jax.ShapeDtypeStruct((B, H, W * C), x.dtype),
        grid=(B,),
        in_specs=[
            pl.BlockSpec((1, H, W, C), lambda i: (i, 0, 0, 0)),
            pl.BlockSpec((L, 9 * C, Crh), lambda i: (0, 0, 0)),
            pl.BlockSpec((L, Crh, C), lambda i: (0, 0, 0)),
        ],
        out_specs=pl.BlockSpec((1, H, W * C), lambda i: (i, 0, 0)),
        scratch_shapes=[pltpu.VMEM((H + 2, W + 2, C), jnp.float32)],
        compiler_params=pltpu.CompilerParams(
            dimension_semantics=("parallel",)),
    )(x, params["w1"], params["w2"])

    out = out.reshape(B, H, W, C)
    return jnp.transpose(out, (0, 3, 1, 2))               # back to NCHW


# ---------------------------------------------------------------------------
# Parameter init (HWIO for the f32 reference, packed bf16 for the kernel)
# ---------------------------------------------------------------------------
def init_residual_stack_params(key, in_channels, num_hiddens,
                               num_residual_layers, num_residual_hiddens):
    assert in_channels == num_hiddens, "residual skip requires matching channels"
    keys = jax.random.split(key, 2 * num_residual_layers)
    w1_hwio, w2_hwio = [], []
    for i in range(num_residual_layers):
        fan1 = 3 * 3 * in_channels
        w1 = jax.random.normal(
            keys[2 * i], (3, 3, in_channels, num_residual_hiddens),
            jnp.float32) / jnp.sqrt(float(fan1))
        fan2 = num_residual_hiddens
        w2 = jax.random.normal(
            keys[2 * i + 1], (1, 1, num_residual_hiddens, num_hiddens),
            jnp.float32) / jnp.sqrt(float(fan2))
        w1_hwio.append(w1)
        w2_hwio.append(w2)

    w1_k = jnp.stack(
        [w.reshape(9 * in_channels, num_residual_hiddens) for w in w1_hwio]
    ).astype(jnp.bfloat16)                                # (L, 9*C, Crh)
    w2_k = jnp.stack(
        [w.reshape(num_residual_hiddens, num_hiddens) for w in w2_hwio]
    ).astype(jnp.bfloat16)                                # (L, Crh, C)

    return {"w1_hwio": w1_hwio, "w2_hwio": w2_hwio, "w1": w1_k, "w2": w2_k}


# ---------------------------------------------------------------------------
# Pure-JAX reference (XLA convs, same bf16 operand rounding as the kernel)
# ---------------------------------------------------------------------------
def residual_stack_reference(params, x_nchw):
    x = x_nchw
    for w1, w2 in zip(params["w1_hwio"], params["w2_hwio"]):
        h = lax.conv_general_dilated(
            x.astype(jnp.bfloat16), w1.astype(jnp.bfloat16),
            window_strides=(1, 1), padding=((1, 1), (1, 1)),
            dimension_numbers=("NCHW", "HWIO", "NCHW"),
            preferred_element_type=jnp.float32)
        h = jnp.maximum(h, 0.0)
        o = lax.conv_general_dilated(
            h.astype(jnp.bfloat16), w2.astype(jnp.bfloat16),
            window_strides=(1, 1), padding=((0, 0), (0, 0)),
            dimension_numbers=("NCHW", "HWIO", "NCHW"),
            preferred_element_type=jnp.float32)
        x = jnp.maximum(o + x, 0.0)
    return jnp.maximum(x, 0.0)


if __name__ == "__main__":
    key = jax.random.PRNGKey(0)
    kp, kx = jax.random.split(key)

    B, H, W = 2, 16, 16
    in_channels = num_hiddens = 32        # skip connection requires equality
    num_residual_layers = 2
    num_residual_hiddens = 16

    params = init_residual_stack_params(kp, in_channels, num_hiddens,
                                        num_residual_layers,
                                        num_residual_hiddens)
    x = jax.random.normal(kx, (B, in_channels, H, W), jnp.float32)

    out = jax.jit(residual_stack_forward)(params, x)
    jax.block_until_ready(out)

    assert out.shape == (B, num_hiddens, H, W), out.shape
    assert bool(jnp.all(jnp.isfinite(out)))

    ref = residual_stack_reference(params, x)
    err = float(jnp.max(jnp.abs(out - ref)))
    assert err < 1e-2, f"max abs err {err}"
    print("KERNEL_OK")
</pallas_src>

<mosaic_0001>
module attributes {stable_mosaic.version = 11 : i64} {
  func.func @_residual_stack_kernel(%arg0: i32, %arg1: memref<1x16x16x32xf32, #tpu.memory_space<vmem>>, %arg2: memref<2x288x16xbf16, #tpu.memory_space<vmem>>, %arg3: memref<2x16x32xbf16, #tpu.memory_space<vmem>>, %arg4: memref<1x16x512xf32, #tpu.memory_space<vmem>>, %arg5: memref<18x18x32xf32, #tpu.memory_space<vmem>>) attributes {dimension_semantics = [#tpu.dimension_semantics<parallel>], iteration_bounds = array<i64: 2>, scalar_prefetch = 0 : i64, scratch_operands = 1 : i64, tpu.core_type = #tpu.core_type<tc>, window_params = [{transform_indices = @transform_0, window_bounds = array<i64: 1, 16, 16, 32>}, {pipeline_mode = #tpu.pipeline_mode<synchronous>, transform_indices = @transform_1, window_bounds = array<i64: 2, 288, 16>}, {pipeline_mode = #tpu.pipeline_mode<synchronous>, transform_indices = @transform_2, window_bounds = array<i64: 2, 16, 32>}, {transform_indices = @transform_3, window_bounds = array<i64: 1, 16, 512>}]} {
    %cst = arith.constant 0.000000e+00 : f32
    %0 = vector.broadcast %cst : f32 to vector<18x18x32xf32>
    %c0 = arith.constant 0 : index
    %c0_0 = arith.constant 0 : index
    %c0_1 = arith.constant 0 : index
    %1 = vector.load %arg5[%c0, %c0_0, %c0_1] : memref<18x18x32xf32, #tpu.memory_space<vmem>>, vector<18x18x32xf32>
    tpu.vector_store %arg5[%c0, %c0_0, %c0_1], %0 {strides = array<i32>} : memref<18x18x32xf32, #tpu.memory_space<vmem>>, vector<18x18x32xf32>,
    %c0_2 = arith.constant 0 : index
    %c0_3 = arith.constant 0 : index
    %c0_4 = arith.constant 0 : index
    %c0_5 = arith.constant 0 : index
    %2 = vector.load %arg1[%c0_2, %c0_3, %c0_4, %c0_5] : memref<1x16x16x32xf32, #tpu.memory_space<vmem>>, vector<1x16x16x32xf32>
    %3 = vector.shape_cast %2 : vector<1x16x16x32xf32> to vector<16x16x32xf32>
    %c1 = arith.constant 1 : index
    %c1_6 = arith.constant 1 : index
    %c0_7 = arith.constant 0 : index
    %4 = vector.load %arg5[%c1, %c1_6, %c0_7] : memref<18x18x32xf32, #tpu.memory_space<vmem>>, vector<16x16x32xf32>
    tpu.vector_store %arg5[%c1, %c1_6, %c0_7], %3 {strides = array<i32>} : memref<18x18x32xf32, #tpu.memory_space<vmem>>, vector<16x16x32xf32>,
    %c0_8 = arith.constant 0 : index
    %c0_9 = arith.constant 0 : index
    %c0_10 = arith.constant 0 : index
    %5 = vector.load %arg5[%c0_8, %c0_9, %c0_10] : memref<18x18x32xf32, #tpu.memory_space<vmem>>, vector<18x18x32xf32>
    %6 = vector.extract_strided_slice %5 {offsets = [0, 0, 0], sizes = [16, 16, 32], strides = [1, 1, 1]} : vector<18x18x32xf32> to vector<16x16x32xf32>
    %7 = vector.shape_cast %6 : vector<16x16x32xf32> to vector<256x32xf32>
    %8 = vector.extract_strided_slice %5 {offsets = [0, 1, 0], sizes = [16, 16, 32], strides = [1, 1, 1]} : vector<18x18x32xf32> to vector<16x16x32xf32>
    %9 = vector.shape_cast %8 : vector<16x16x32xf32> to vector<256x32xf32>
    %10 = vector.extract_strided_slice %5 {offsets = [0, 2, 0], sizes = [16, 16, 32], strides = [1, 1, 1]} : vector<18x18x32xf32> to vector<16x16x32xf32>
    %11 = vector.shape_cast %10 : vector<16x16x32xf32> to vector<256x32xf32>
    %12 = vector.extract_strided_slice %5 {offsets = [1, 0, 0], sizes = [16, 16, 32], strides = [1, 1, 1]} : vector<18x18x32xf32> to vector<16x16x32xf32>
    %13 = vector.shape_cast %12 : vector<16x16x32xf32> to vector<256x32xf32>
    %14 = vector.extract_strided_slice %5 {offsets = [1, 1, 0], sizes = [16, 16, 32], strides = [1, 1, 1]} : vector<18x18x32xf32> to vector<16x16x32xf32>
    %15 = vector.shape_cast %14 : vector<16x16x32xf32> to vector<256x32xf32>
    %16 = vector.extract_strided_slice %5 {offsets = [1, 2, 0], sizes = [16, 16, 32], strides = [1, 1, 1]} : vector<18x18x32xf32> to vector<16x16x32xf32>
    %17 = vector.shape_cast %16 : vector<16x16x32xf32> to vector<256x32xf32>
    %18 = vector.extract_strided_slice %5 {offsets = [2, 0, 0], sizes = [16, 16, 32], strides = [1, 1, 1]} : vector<18x18x32xf32> to vector<16x16x32xf32>
    %19 = vector.shape_cast %18 : vector<16x16x32xf32> to vector<256x32xf32>
    %20 = vector.extract_strided_slice %5 {offsets = [2, 1, 0], sizes = [16, 16, 32], strides = [1, 1, 1]} : vector<18x18x32xf32> to vector<16x16x32xf32>
    %21 = vector.shape_cast %20 : vector<16x16x32xf32> to vector<256x32xf32>
    %22 = vector.extract_strided_slice %5 {offsets = [2, 2, 0], sizes = [16, 16, 32], strides = [1, 1, 1]} : vector<18x18x32xf32> to vector<16x16x32xf32>
    %23 = vector.shape_cast %22 : vector<16x16x32xf32> to vector<256x32xf32>
    %24 = tpu.concatenate %7, %9, %11, %13, %15, %17, %19, %21, %23 in 1 : vector<256x32xf32>, vector<256x32xf32>, vector<256x32xf32>, vector<256x32xf32>, vector<256x32xf32>, vector<256x32xf32>, vector<256x32xf32>, vector<256x32xf32>, vector<256x32xf32> -> vector<256x288xf32>
    %25 = arith.truncf %24 : vector<256x288xf32> to vector<256x288xbf16>
    %c0_11 = arith.constant 0 : index
    %c0_12 = arith.constant 0 : index
    %c0_13 = arith.constant 0 : index
    %26 = vector.load %arg2[%c0_11, %c0_12, %c0_13] : memref<2x288x16xbf16, #tpu.memory_space<vmem>>, vector<1x288x16xbf16>
    %27 = vector.shape_cast %26 : vector<1x288x16xbf16> to vector<288x16xbf16>
    %cst_14 = arith.constant dense<0.000000e+00> : vector<256x16xf32>
    %28 = tpu.matmul %25, %27, %cst_14 {dimension_numbers = #tpu.dot_dimension_numbers<[1], [0], [0], [1], [0, 0, 1, 1], [], []>} : vector<256x288xbf16>, vector<288x16xbf16>, vector<256x16xf32> -> vector<256x16xf32>
    %cst_15 = arith.constant 0.000000e+00 : f32
    %29 = vector.broadcast %cst_15 : f32 to vector<256x16xf32>
    %30 = arith.maximumf %28, %29 : vector<256x16xf32>
    %31 = arith.truncf %30 : vector<256x16xf32> to vector<256x16xbf16>
    %c0_16 = arith.constant 0 : index
    %c0_17 = arith.constant 0 : index
    %c0_18 = arith.constant 0 : index
    %32 = vector.load %arg3[%c0_16, %c0_17, %c0_18] : memref<2x16x32xbf16, #tpu.memory_space<vmem>>, vector<1x16x32xbf16>
    %33 = vector.shape_cast %32 : vector<1x16x32xbf16> to vector<16x32xbf16>
    %cst_19 = arith.constant dense<0.000000e+00> : vector<256x32xf32>
    %34 = tpu.matmul %31, %33, %cst_19 {dimension_numbers = #tpu.dot_dimension_numbers<[1], [0], [0], [1], [0, 0, 1, 1], [], []>} : vector<256x16xbf16>, vector<16x32xbf16>, vector<256x32xf32> -> vector<256x32xf32>
    %35 = vector.shape_cast %3 : vector<16x16x32xf32> to vector<256x32xf32>
    %36 = arith.addf %34, %35 : vector<256x32xf32>
    %cst_20 = arith.constant 0.000000e+00 : f32
    %37 = vector.broadcast %cst_20 : f32 to vector<256x32xf32>
    %38 = arith.maximumf %36, %37 : vector<256x32xf32>
    %39 = vector.shape_cast %38 : vector<256x32xf32> to vector<16x16x32xf32>
    %c1_21 = arith.constant 1 : index
    %c1_22 = arith.constant 1 : index
    %c0_23 = arith.constant 0 : index
    %40 = vector.load %arg5[%c1_21, %c1_22, %c0_23] : memref<18x18x32xf32, #tpu.memory_space<vmem>>, vector<16x16x32xf32>
    tpu.vector_store %arg5[%c1_21, %c1_22, %c0_23], %39 {strides = array<i32>} : memref<18x18x32xf32, #tpu.memory_space<vmem>>, vector<16x16x32xf32>,
    %c0_24 = arith.constant 0 : index
    %c0_25 = arith.constant 0 : index
    %c0_26 = arith.constant 0 : index
    %41 = vector.load %arg5[%c0_24, %c0_25, %c0_26] : memref<18x18x32xf32, #tpu.memory_space<vmem>>, vector<18x18x32xf32>
    %42 = vector.extract_strided_slice %41 {offsets = [0, 0, 0], sizes = [16, 16, 32], strides = [1, 1, 1]} : vector<18x18x32xf32> to vector<16x16x32xf32>
    %43 = vector.shape_cast %42 : vector<16x16x32xf32> to vector<256x32xf32>
    %44 = vector.extract_strided_slice %41 {offsets = [0, 1, 0], sizes = [16, 16, 32], strides = [1, 1, 1]} : vector<18x18x32xf32> to vector<16x16x32xf32>
    %45 = vector.shape_cast %44 : vector<16x16x32xf32> to vector<256x32xf32>
    %46 = vector.extract_strided_slice %41 {offsets = [0, 2, 0], sizes = [16, 16, 32], strides = [1, 1, 1]} : vector<18x18x32xf32> to vector<16x16x32xf32>
    %47 = vector.shape_cast %46 : vector<16x16x32xf32> to vector<256x32xf32>
    %48 = vector.extract_strided_slice %41 {offsets = [1, 0, 0], sizes = [16, 16, 32], strides = [1, 1, 1]} : vector<18x18x32xf32> to vector<16x16x32xf32>
    %49 = vector.shape_cast %48 : vector<16x16x32xf32> to vector<256x32xf32>
    %50 = vector.extract_strided_slice %41 {offsets = [1, 1, 0], sizes = [16, 16, 32], strides = [1, 1, 1]} : vector<18x18x32xf32> to vector<16x16x32xf32>
    %51 = vector.shape_cast %50 : vector<16x16x32xf32> to vector<256x32xf32>
    %52 = vector.extract_strided_slice %41 {offsets = [1, 2, 0], sizes = [16, 16, 32], strides = [1, 1, 1]} : vector<18x18x32xf32> to vector<16x16x32xf32>
    %53 = vector.shape_cast %52 : vector<16x16x32xf32> to vector<256x32xf32>
    %54 = vector.extract_strided_slice %41 {offsets = [2, 0, 0], sizes = [16, 16, 32], strides = [1, 1, 1]} : vector<18x18x32xf32> to vector<16x16x32xf32>
    %55 = vector.shape_cast %54 : vector<16x16x32xf32> to vector<256x32xf32>
    %56 = vector.extract_strided_slice %41 {offsets = [2, 1, 0], sizes = [16, 16, 32], strides = [1, 1, 1]} : vector<18x18x32xf32> to vector<16x16x32xf32>
    %57 = vector.shape_cast %56 : vector<16x16x32xf32> to vector<256x32xf32>
    %58 = vector.extract_strided_slice %41 {offsets = [2, 2, 0], sizes = [16, 16, 32], strides = [1, 1, 1]} : vector<18x18x32xf32> to vector<16x16x32xf32>
    %59 = vector.shape_cast %58 : vector<16x16x32xf32> to vector<256x32xf32>
    %60 = tpu.concatenate %43, %45, %47, %49, %51, %53, %55, %57, %59 in 1 : vector<256x32xf32>, vector<256x32xf32>, vector<256x32xf32>, vector<256x32xf32>, vector<256x32xf32>, vector<256x32xf32>, vector<256x32xf32>, vector<256x32xf32>, vector<256x32xf32> -> vector<256x288xf32>
    %61 = arith.truncf %60 : vector<256x288xf32> to vector<256x288xbf16>
    %c1_27 = arith.constant 1 : index
    %c0_28 = arith.constant 0 : index
    %c0_29 = arith.constant 0 : index
    %62 = vector.load %arg2[%c1_27, %c0_28, %c0_29] : memref<2x288x16xbf16, #tpu.memory_space<vmem>>, vector<1x288x16xbf16>
    %63 = vector.shape_cast %62 : vector<1x288x16xbf16> to vector<288x16xbf16>
    %cst_30 = arith.constant dense<0.000000e+00> : vector<256x16xf32>
    %64 = tpu.matmul %61, %63, %cst_30 {dimension_numbers = #tpu.dot_dimension_numbers<[1], [0], [0], [1], [0, 0, 1, 1], [], []>} : vector<256x288xbf16>, vector<288x16xbf16>, vector<256x16xf32> -> vector<256x16xf32>
    %cst_31 = arith.constant 0.000000e+00 : f32
    %65 = vector.broadcast %cst_31 : f32 to vector<256x16xf32>
    %66 = arith.maximumf %64, %65 : vector<256x16xf32>
    %67 = arith.truncf %66 : vector<256x16xf32> to vector<256x16xbf16>
    %c1_32 = arith.constant 1 : index
    %c0_33 = arith.constant 0 : index
    %c0_34 = arith.constant 0 : index
    %68 = vector.load %arg3[%c1_32, %c0_33, %c0_34] : memref<2x16x32xbf16, #tpu.memory_space<vmem>>, vector<1x16x32xbf16>
    %69 = vector.shape_cast %68 : vector<1x16x32xbf16> to vector<16x32xbf16>
    %cst_35 = arith.constant dense<0.000000e+00> : vector<256x32xf32>
    %70 = tpu.matmul %67, %69, %cst_35 {dimension_numbers = #tpu.dot_dimension_numbers<[1], [0], [0], [1], [0, 0, 1, 1], [], []>} : vector<256x16xbf16>, vector<16x32xbf16>, vector<256x32xf32> -> vector<256x32xf32>
    %71 = vector.shape_cast %39 : vector<16x16x32xf32> to vector<256x32xf32>
    %72 = arith.addf %70, %71 : vector<256x32xf32>
    %cst_36 = arith.constant 0.000000e+00 : f32
    %73 = vector.broadcast %cst_36 : f32 to vector<256x32xf32>
    %74 = arith.maximumf %72, %73 : vector<256x32xf32>
    %75 = vector.shape_cast %74 : vector<256x32xf32> to vector<16x16x32xf32>
    %cst_37 = arith.constant 0.000000e+00 : f32
    %76 = vector.broadcast %cst_37 : f32 to vector<16x16x32xf32>
    %77 = arith.maximumf %75, %76 : vector<16x16x32xf32>
    %78 = vector.shape_cast %77 : vector<16x16x32xf32> to vector<16x512xf32>
    %c0_38 = arith.constant 0 : index
    %c0_39 = arith.constant 0 : index
    %c0_40 = arith.constant 0 : index
    %79 = vector.load %arg4[%c0_38, %c0_39, %c0_40] : memref<1x16x512xf32, #tpu.memory_space<vmem>>, vector<1x16x512xf32>
    %80 = vector.shape_cast %79 : vector<1x16x512xf32> to vector<16x512xf32>
    %81 = vector.shape_cast %78 : vector<16x512xf32> to vector<1x16x512xf32>
    tpu.vector_store %arg4[%c0_38, %c0_39, %c0_40], %81 {strides = array<i32>} : memref<1x16x512xf32, #tpu.memory_space<vmem>>, vector<1x16x512xf32>,
    return
  }
  func.func @transform_0(%arg0: i32) -> (i32, i32, i32, i32) {
    %c0_i32 = arith.constant 0 : i32
    %c0_i32_0 = arith.constant 0 : i32
    %c0_i32_1 = arith.constant 0 : i32
    %c0_i32_2 = arith.constant 0 : i32
    return %arg0, %c0_i32, %c0_i32_0, %c0_i32_1 : i32, i32, i32, i32
  }
  func.func @transform_1(%arg0: i32) -> (i32, i32, i32) {
    %c0_i32 = arith.constant 0 : i32
    %c0_i32_0 = arith.constant 0 : i32
    %c0_i32_1 = arith.constant 0 : i32
    %c0_i32_2 = arith.constant 0 : i32
    return %c0_i32, %c0_i32_0, %c0_i32_1 : i32, i32, i32
  }
  func.func @transform_2(%arg0: i32) -> (i32, i32, i32) {
    %c0_i32 = arith.constant 0 : i32
    %c0_i32_0 = arith.constant 0 : i32
    %c0_i32_1 = arith.constant 0 : i32
    %c0_i32_2 = arith.constant 0 : i32
    return %c0_i32, %c0_i32_0, %c0_i32_1 : i32, i32, i32
  }
  func.func @transform_3(%arg0: i32) -> (i32, i32, i32) {
    %c0_i32 = arith.constant 0 : i32
    %c0_i32_0 = arith.constant 0 : i32
    %c0_i32_1 = arith.constant 0 : i32
    return %arg0, %c0_i32, %c0_i32_0 : i32, i32, i32
  }
}

</mosaic_0001>

<bundles_post_ra>
// kernel: residual_stack_forward.1
= control target key start
LH: loop header
LB: loop body
LE: loop exit
PB: predicated region body
PF: predicated region fallthrough
CT: control target
= control target key end

     0   :  { %8 = vsyncpa [#allocation4], 0  ;;  %s9688_s0 = inlined_call_operand.hbm [shape: f32[2,16,16,32], index: 0, kind: input, shape index: {}]   ;;  %s9689_s1 = inlined_call_operand.vmem [shape: bf16[2,288,16], index: 1, kind: input, shape index: {}]   ;;  %s9690_s2 = inlined_call_operand.vmem [shape: bf16[2,16,32], index: 2, kind: input, shape index: {}]   ;;  %s9691_s3 = inlined_call_operand.vmem [shape: f32[2,16,512], index: 3, kind: output, shape index: {}]  }
   0x1   :  { %10 = vsyncpa [#allocation4 + $0x1], 0  ;;  %s6876_s12 = smov 0   ;;  %s6878_s13 = smov 0  }
   0x2   :  { %s6880_s14 = smov 0   ;;  %s6882_s15 = smov 0  }
   0x3 LB: > { %s6895_s16 = sadd.s32 4294967295, %s6845_s15   ;;  %s6898_s17 = sadd.s32 1, %s6845_s15   ;;  %s6845_s15 = sphi %s6882_s15, %s9927_s15   ;;  %s6841_s14 = sphi %s6880_s14, %s9926_s14   ;;  %s6837_s13 = sphi %s6878_s13, %s9925_s13   ;;  %s6833_s12 = sphi %s6876_s12, %s9924_s12  }
   0x4   : > { %s20_s18 = ssub.s32 %s6845_s15, %s6898_s17  ;;  %s23_s19 = sadd.s32 1, %s6841_s14 }
   0x5   : > { %p21_p0 = scmp.eq.s32.totalorder %s20_s18, 0  ;;  %p30_p1 = scmp.ne.s32.totalorder %s6841_s14, %s6837_s13 }
   0x6   : > { %p31_p2 = scmp.eq.s32.totalorder %s6845_s15, 0  ;;  %p36_p3 = scmp.ne.s32.totalorder %s6837_s13, %s6833_s12 }
   0x7   : > { %s6908_s20 = scalar_select %p21_p0, %s6841_s14, %s23_s19  }
   0x8   : > { %p32_p4 = por %p31_p2, %p30_p1  ;;  %p37_p5 = scmp.eq.s32.totalorder %s6895_s16, 0 }
   0x9   : > { %p5679_p6 = scmp.lt.s32.totalorder %s6845_s15, 2  ;;  %s134_s22 = sand.u32 1, %s6841_s14  }
   0xa   : > { %p6912_p7 = por %p37_p5, %p36_p3  ;;  %s5084_s23 = sshll.u32 %s134_s22, 8 }
   0xb   : > { %s5233_s24 = sshll.u32 %s6845_s15, 12  ;;  %s138_s28 = scalar_lea.vmem [#allocation3], %s5084_s23 }
   0xc   : > { %s6921_s27 = scalar_lea.hbm %s9688_s0, %s5233_s24  ;;  %s145_s29 = sshll.u32 %s138_s28, 4  ;;  %s6923_s29 = int_to_ptr.vmem [resolvable:$true] %s145_s29 }
   0xd   : > { %p6925_p8 = pnand %p5679_p6, %p32_p4  ;;  %s6930_s4 = scalar_lea.sflag [#allocation4], %s134_s22 }
   0xe   : > { %s6781_s5 = scalar_lea.hbm %s6921_s27, 4096  ;;  %s6786_s8 = scalar_lea.hbm %s9688_s0, 8192 }
   0xf   : > { %p6782_p10 = scmp.ne.s32.totalorder %s6921_s27, %s6781_s5  ;;  %p6783_p11 = pneg %p6925_p8 }
  0x10   : > { %p6787_p0 = scmp.lt.u32.totalorder %s6921_s27, %s9688_s0  ;;  %p6788_p1 = scmp.lt.u32.totalorder %s6786_s8, %s6781_s5 }
  0x11   : > { %p6784_p12 = pnand %p6783_p11, %p6782_p10  ;;  %p6790_p3 = scmp.lt.u32.totalorder %s6781_s5, %s6921_s27 }
  0x12   : > { %p6789_p2 = por %p6788_p1, %p6787_p0 }
  0x13   : > { %p6785_p13 = pneg %p6784_p12 }
  0x14   : > { %p6791_p4 = por %p6790_p3, %p6789_p2 }
  0x16   : > { %p6792_p5 = pnand %p6791_p4, %p6785_p13 }
  0x18   : > { %6795 = shalt.err (!%p6792_p5)
}
  0x19   : > { %s6796_s11 = scalar_lea.vmem %s6923_s29, 4096  ;;  %s6847_s12 = smov [#allocation3]  }
  0x1a   : > { %p6797_p6 = scmp.ne.s32.totalorder %s6923_s29, %s6796_s11  ;;  %s6801_s18 = sshll.u32 %s6847_s12, 4  ;;  %s6802_s18 = int_to_ptr.vmem [resolvable:$false] %s6801_s18 }
  0x1b   : > { %s6803_s19 = scalar_lea.vmem %s6802_s18, 8192  ;;  %p6804_p9 = scmp.lt.s32.totalorder %s6923_s29, %s6802_s18 }
  0x1c   : > { %p6799_p10 = pnand %p6797_p6, %p6783_p11  ;;  %p6805_p0 = scmp.lt.s32.totalorder %s6803_s19, %s6796_s11 }
  0x1e   : > { %p6800_p12 = pneg %p6799_p10  ;;  %p6806_p1 = por %p6805_p0, %p6804_p9 }
  0x20   : > { %p6807_p2 = pnand %p6806_p1, %p6800_p12 }
  0x22   : > { %6810 = shalt.err (!%p6807_p2)
}
  0x23   : > { %s6848_s22 = smov 128   ;;  %s6849_s23 = smov 8  }
  0x24   : > { %5678 = dma.hbm_to_vmem [thread:$0]  (!%p6925_p8), %s6921_s27, 4096, %s6923_s29, %s6930_s4, %s6848_s22, %s6848_s22, %s6849_s23  }
  0x25   : > { %p153_p11 = scmp.lt.s32.totalorder %s6845_s15, 3  ;;  %p9777_p13 = scmp.ge.s32.totalorder %s6845_s15, 1 }
  0x27   : > { %p154_p3 = pnand %p9777_p13, %p153_p11 }
  0x29   : > { %157 = sbr.rel (%p154_p3) target bundleno = 1612 (0x64c), region = 32 }
  0x30   : > { %s159_s24 = sand.u32 1, %s6837_s13  }
  0x31   : > { %s5088_s25 = sshll.u32 %s159_s24, 8  ;;  %s160_s26 = scalar_lea.sflag [#allocation4], %s159_s24 }
  0x32   : > { %s6962_s28 = scalar_lea.vmem [#allocation3], %s5088_s25 }
  0x33   : > { %6828 = dma.done.wait (%p6912_p7), %s160_s26, 4096  }
  0x34   : > { %6830 = vsyncadd (%p6912_p7), %s160_s26, 4294963200  ;;  %vm192_vm0 = vcmask 261120   ;;  %vm195_vm1 = vcmask 254976   ;;  %v6850_v0 = vmov 0.0   ;;  %v7023_v1 = vld [vmem:[%s6962_s28 + $0x10] sm:$0xff]  ;;  %v7026_v2 = vld [vmem:[%s6962_s28 + $0x18] sm:$0xff] }
  0x35   : > { %203 = vst.msk [vmem:[#allocation2 + $0x48] sm:$0xff] %vm192_vm0, %v6850_v0  ;;  %204 = vst.msk [vmem:[#allocation2 + $0x50] sm:$0xff] %vm192_vm0, %v6850_v0  ;;  %v7029_v3 = vld [vmem:[%s6962_s28 + $0x30] sm:$0xff]  ;;  %vm496_vm2 = vcmask 1045504   ;;  %vm415_vm3 = vcmask 1046528   ;;  %s6851_s15 = smov 64  }
  0x36   : > { %193 = vst.msk [vmem:[#allocation2] sm:$0xff] %vm192_vm0, %v6850_v0  ;;  %194 = vst.msk [vmem:[#allocation2 + $0x8] sm:$0xff] %vm192_vm0, %v6850_v0  ;;  %s6852_s21 = smov 96   ;;  %v7059_v27 = vld [vmem:[%s6962_s28 + $0x38] sm:$0xff]  ;;  %v7069_v32 = vld [vmem:[%s6962_s28 + $0x50] sm:$0xff]  ;;  %s6853_s27 = smov 32  }
  0x37   : > { %197 = vst.msk [vmem:[#allocation2 + $0x18] sm:$0xff] %vm192_vm0, %v6850_v0  ;;  %198 = vst.msk [vmem:[#allocation2 + $0x20] sm:$0xff] %vm192_vm0, %v6850_v0  ;;  %v7072_v33 = vld [vmem:[%s6962_s28 + $0x58] sm:$0xff]  ;;  %v7088_v46 = vld [vmem:[%s6962_s28 + $0x70] sm:$0xff]  ;;  %vm1275_vm4 = vcmask 523264   ;;  %vm1308_vm5 = vcmask 785408  }
  0x38   : > { %200 = vst.msk [vmem:[#allocation2 + $0x30] sm:$0xff] %vm192_vm0, %v6850_v0  ;;  %201 = vst.msk [vmem:[#allocation2 + $0x38] sm:$0xff] %vm192_vm0, %v6850_v0  ;;  %v7091_v47 = vld [vmem:[%s6962_s28 + $0x78] sm:$0xff]  ;;  %v7105_v56 = vld [vmem:[%s6962_s28 + $0x90] sm:$0xff]  ;;  %vm2055_vm6 = vcmask 130048   ;;  %p186_p7 = scmp.lt.s32.totalorder %s6895_s16, 1 }
  0x39   : > { %206 = vst.msk [vmem:[#allocation2 + $0x60] sm:$0xff] %vm192_vm0, %v6850_v0  ;;  %207 = vst.msk [vmem:[#allocation2 + $0x68] sm:$0xff] %vm192_vm0, %v6850_v0  ;;  %v7108_v57 = vld [vmem:[%s6962_s28 + $0x98] sm:$0xff]  ;;  %v6680_v60 = vld [vmem:[%s9689_s1 + $0x40] sm:$0xff]  }
  0x3a   : > { %209 = vst.msk [vmem:[#allocation2 + $0x78] sm:$0xff] %vm192_vm0, %v6850_v0  ;;  %210 = vst.msk [vmem:[#allocation2 + $0x80] sm:$0xff] %vm192_vm0, %v6850_v0  ;;  %5235 = vmatprep.subr.bf16.mxu0 %v6680_v60  ;;  %v6694_v60 = vld [vmem:[%s9689_s1 + $0x80] sm:$0xff]   ;;  %s9929_s16 = smov (!%p186_p7, %s6895_s16), 1 }
  0x3b   : > { %212 = vst.msk [vmem:[#allocation2 + $0x90] sm:$0xff] %vm192_vm0, %v6850_v0  ;;  %213 = vst.msk [vmem:[#allocation2 + $0x98] sm:$0xff] %vm192_vm0, %v6850_v0  ;;  %5529 = vmatprep.subr.bf16.mxu1 %v6694_v60  ;;  %s5234_s9 = sshll.u32 %s9929_s16, 6 }
  0x3c   : > { %215 = vst.msk [vmem:[#allocation2 + $0xa8] sm:$0xff] %vm192_vm0, %v6850_v0  ;;  %216 = vst.msk [vmem:[#allocation2 + $0xb0] sm:$0xff] %vm192_vm0, %v6850_v0  ;;  %v7031_v4 = vld [vmem:[#allocation2 + $0x48] sm:$0xff]  ;;  %v7033_v5 = vld [vmem:[#allocation2 + $0x50] sm:$0xff]  ;;  %5530 = vmatpush3.bf16.msra.mxu1 %v6694_v60  ;;  %s9625_s12 = scalar_lea.vmem %s9691_s3, %s5234_s9 }
  0x3d   : > { %218 = vst.msk [vmem:[#allocation2 + $0xc0] sm:$0xff] %vm192_vm0, %v6850_v0  ;;  %219 = vst.msk [vmem:[#allocation2 + $0xc8] sm:$0xff] %vm192_vm0, %v6850_v0  ;;  %v7043_v7 = vpack.i.bf16 %v7033_v5, %v7031_v4  ;;  %v7045_v11 = vld [vmem:[#allocation2] sm:$0xff]  ;;  %v7047_v16 = vld [vmem:[#allocation2 + $0x8] sm:$0xff]  ;;  %v431_v55 = vrot.slane %v7031_v4, 1  ;;  %v432_v59 = vrot.slane %v7033_v5, 1 }
  0x3e   : > { %221 = vst.msk [vmem:[#allocation2 + $0xd8] sm:$0xff] %vm192_vm0, %v6850_v0  ;;  %222 = vst.msk [vmem:[#allocation2 + $0xe0] sm:$0xff] %vm192_vm0, %v6850_v0  ;;  %v316_v6 = vld [vmem:[#allocation2 + $0x18] sm:$0xff]  ;;  %v317_v8 = vld [vmem:[#allocation2 + $0x20] sm:$0xff]  ;;  %v497_v18 = vrot.slane %v7045_v11, 2  ;;  %v498_v19 = vrot.slane %v7047_v16, 2 }
  0x3f   : > { %224 = vst.msk [vmem:[#allocation2 + $0xf0] sm:$0xff] %vm192_vm0, %v6850_v0  ;;  %225 = vst.msk [vmem:[#allocation2 + $0xf8] sm:$0xff] %vm192_vm0, %v6850_v0  ;;  %v502_v10 = vrot.slane %v316_v6, 2  ;;  %v421_v12 = vrot.slane %v316_v6, 1  ;;  %v5720_v13 = vpack.i.bf16 %v317_v8, %v316_v6  ;;  %v503_v14 = vrot.slane %v317_v8, 2  ;;  %5726 = vrot.lane.b32.xlu0 %v7043_v7, %s6851_s15  ;;  %v6682_v6 = vld [vmem:[%s9689_s1 + $0x48] sm:$0xff]  }
  0x40   : > { %227 = vst.msk [vmem:[#allocation2 + $0x108] sm:$0xff] %vm192_vm0, %v6850_v0  ;;  %228 = vst.msk [vmem:[#allocation2 + $0x110] sm:$0xff] %vm192_vm0, %v6850_v0  ;;  %v422_v21 = vrot.slane %v317_v8, 1  ;;  %v416_v25 = vrot.slane %v7045_v11, 1  ;;  %v417_v26 = vrot.slane %v7047_v16, 1  ;;  %v499_v29 = vsel %vm496_vm2, %v497_v18, %v498_v19 }
  0x41   : > { %230 = vst.msk [vmem:[#allocation2 + $0x120] sm:$0xff] %vm192_vm0, %v6850_v0  ;;  %231 = vst.msk [vmem:[#allocation2 + $0x128] sm:$0xff] %vm192_vm0, %v6850_v0  ;;  %5721 = vrot.lane.b32.xlu1 %v5720_v13, %s6852_s21  ;;  %v504_v23 = vsel %vm496_vm2, %v502_v10, %v503_v14  ;;  %v7138_v10 = vsel %vm415_vm3, %v431_v55, %v432_v59  ;;  %v512_v13 = vrot.slane %v7031_v4, 2 }
  0x42   : > { %233 = vst.msk [vmem:[#allocation2 + $0x138] sm:$0xff] %vm192_vm0, %v6850_v0  ;;  %234 = vst.msk [vmem:[#allocation2 + $0x140] sm:$0xff] %vm192_vm0, %v6850_v0  ;;  %v7064_v31 = vsel %vm415_vm3, %v421_v12, %v422_v21  ;;  %v418_v36 = vsel %vm415_vm3, %v416_v25, %v417_v26  ;;  %v6686_v25 = vld [vmem:[%s9689_s1 + $0x58] sm:$0xff]  }
  0x43   : > { %236 = vst.msk [vmem:[#allocation2 + $0x150] sm:$0xff] %vm192_vm0, %v6850_v0  ;;  %237 = vst.msk [vmem:[#allocation2 + $0x158] sm:$0xff] %vm192_vm0, %v6850_v0 }
  0x44   : > { %239 = vst.msk [vmem:[#allocation2 + $0x168] sm:$0xff] %vm192_vm0, %v6850_v0  ;;  %240 = vst.msk [vmem:[#allocation2 + $0x170] sm:$0xff] %vm192_vm0, %v6850_v0 }
  0x45   : > { %242 = vst.msk [vmem:[#allocation2 + $0x180] sm:$0xff] %vm192_vm0, %v6850_v0  ;;  %243 = vst.msk [vmem:[#allocation2 + $0x188] sm:$0xff] %vm192_vm0, %v6850_v0 }
  0x46   : > { %245 = vst.msk [vmem:[#allocation2 + $0x198] sm:$0xff] %vm192_vm0, %v6850_v0  ;;  %246 = vst.msk [vmem:[#allocation2 + $0x1a0] sm:$0xff] %vm192_vm0, %v6850_v0 }
  0x47   : > { %199 = vst.msk [vmem:[#allocation2 + $0x28] sm:$0x3] %vm195_vm1, %v6850_v0  ;;  %196 = vst.msk [vmem:[#allocation2 + $0x10] sm:$0x3] %vm195_vm1, %v6850_v0 }
  0x48   : > { %202 = vst.msk [vmem:[#allocation2 + $0x40] sm:$0x3] %vm195_vm1, %v6850_v0  ;;  %205 = vst.msk [vmem:[#allocation2 + $0x58] sm:$0x3] %vm195_vm1, %v6850_v0 }
  0x49   : > { %208 = vst.msk [vmem:[#allocation2 + $0x70] sm:$0x3] %vm195_vm1, %v6850_v0  ;;  %211 = vst.msk [vmem:[#allocation2 + $0x88] sm:$0x3] %vm195_vm1, %v6850_v0 }
  0x4a   : > { %214 = vst.msk [vmem:[#allocation2 + $0xa0] sm:$0x3] %vm195_vm1, %v6850_v0  ;;  %217 = vst.msk [vmem:[#allocation2 + $0xb8] sm:$0x3] %vm195_vm1, %v6850_v0 }
  0x4b   : > { %220 = vst.msk [vmem:[#allocation2 + $0xd0] sm:$0x3] %vm195_vm1, %v6850_v0  ;;  %223 = vst.msk [vmem:[#allocation2 + $0xe8] sm:$0x3] %vm195_vm1, %v6850_v0 }
  0x4c   : > { %226 = vst.msk [vmem:[#allocation2 + $0x100] sm:$0x3] %vm195_vm1, %v6850_v0  ;;  %229 = vst.msk [vmem:[#allocation2 + $0x118] sm:$0x3] %vm195_vm1, %v6850_v0 }
  0x4d   : > { %232 = vst.msk [vmem:[#allocation2 + $0x130] sm:$0x3] %vm195_vm1, %v6850_v0  ;;  %235 = vst.msk [vmem:[#allocation2 + $0x148] sm:$0x3] %vm195_vm1, %v6850_v0 }
  0x4e   : > { %238 = vst.msk [vmem:[#allocation2 + $0x160] sm:$0x3] %vm195_vm1, %v6850_v0  ;;  %241 = vst.msk [vmem:[#allocation2 + $0x178] sm:$0x3] %vm195_vm1, %v6850_v0  ;;  %v318_v9 = vld [vmem:[#allocation2 + $0x28] sm:$0x3] }
  0x4f   : > { %244 = vst.msk [vmem:[#allocation2 + $0x190] sm:$0x3] %vm195_vm1, %v6850_v0  ;;  %247 = vst.msk [vmem:[#allocation2 + $0x1a8] sm:$0x3] %vm195_vm1, %v6850_v0  ;;  %v505_v15 = vrot.slane %v318_v9, 2  ;;  %v424_v22 = vrot.slane %v318_v9, 1 }
  0x50   : > { %9778 = vst [vmem:[#allocation6_spill] sm:$0xff] %v7023_v1  ;;  %9779 = vst [vmem:[#allocation7_spill] sm:$0xff] %v7026_v2  ;;  %v315_v17 = vld [vmem:[#allocation2 + $0x10] sm:$0x3]  ;;  %v324_v51 = vld [vmem:[#allocation2 + $0x58] sm:$0x3] }
  0x51   : > { %9780 = vst [vmem:[#allocation8_spill] sm:$0xff] %v7029_v3  ;;  %283 = vst.msk [vmem:[#allocation2 + $0x31] sm:$0xff] %vm192_vm0, %v7023_v1  ;;  %v500_v20 = vrot.slane %v315_v17, 2  ;;  %v506_v24 = vsel %vm496_vm2, %v503_v14, %v505_v15  ;;  %v7075_v35 = vsel %vm415_vm3, %v422_v21, %v424_v22  ;;  %v419_v37 = vrot.slane %v315_v17, 1  ;;  %v6681_v0 = vld [vmem:[%s9689_s1] sm:$0xff]   ;;  %v6683_v17 = vld [vmem:[%s9689_s1 + $0x8] sm:$0xff]  }
  0x52   : > { %284 = vst.msk [vmem:[#allocation2 + $0x39] sm:$0xff] %vm192_vm0, %v7026_v2  ;;  %287 = vst.msk [vmem:[#allocation2 + $0x61] sm:$0xff] %vm192_vm0, %v7029_v3  ;;  %v5730_v28 = vpack.i.bf16 %v506_v24, %v504_v23  ;;  %v5745_v38 = vpack.i.bf16 %v7075_v35, %v7064_v31  ;;  %v434_v63 = vrot.slane %v324_v51, 1  ;;  %5236 = vmatpush3.bf16.msra.mxu0 %v6681_v0  ;;  %v513_v14 = vrot.slane %v7033_v5, 2  ;;  %v6684_v22 = vld [vmem:[%s9689_s1 + $0x50] sm:$0xff]  }
  0x53   : > { %9781 = vst [vmem:[#allocation9_spill] sm:$0xff] %v7059_v27  ;;  %v501_v30 = vsel %vm496_vm2, %v498_v19, %v500_v20  ;;  %288 = vst.msk [vmem:[#allocation2 + $0x69] sm:$0xff] %vm192_vm0, %v7059_v27  ;;  %v420_v42 = vsel %vm415_vm3, %v417_v26, %v419_v37  ;;  %v515_v15 = vrot.slane %v324_v51, 2  ;;  %5237 = vmatprep.subr.bf16.mxu0 %v6682_v6  ;;  %v6685_v23 = vld [vmem:[%s9689_s1 + $0x10] sm:$0xff]   ;;  %v330_v51 = vld [vmem:[#allocation2 + $0x88] sm:$0x3] }
  0x54   : > { %9782 = vst [vmem:[#allocation10_spill] sm:$0xff] %v7069_v32  ;;  %9783 = vst [vmem:[#allocation11_spill] sm:$0xff] %v7072_v33  ;;  %v5740_v34 = vpack.i.bf16 %v501_v30, %v499_v29  ;;  %5731 = vrot.lane.b32.xlu0 %v5730_v28, %s6853_s27  ;;  %v5735_v48 = vpack.i.bf16 %v420_v42, %v418_v36  ;;  %v7142_v12 = vsel %vm415_vm3, %v432_v59, %v434_v63  ;;  %v6687_v30 = vld [vmem:[%s9689_s1 + $0x18] sm:$0xff]   ;;  %v6692_v59 = vld [vmem:[%s9689_s1 + $0x70] sm:$0xff]  }
  0x55   : > { %291 = vst.msk [vmem:[#allocation2 + $0x91] sm:$0xff] %vm192_vm0, %v7069_v32  ;;  %292 = vst.msk [vmem:[#allocation2 + $0x99] sm:$0xff] %vm192_vm0, %v7072_v33  ;;  %v7152_v18 = vpack.i.bf16 %v7142_v12, %v7138_v10  ;;  %v7156_v4 = vsel %vm496_vm2, %v512_v13, %v513_v14  ;;  %v7159_v5 = vsel %vm496_vm2, %v513_v14, %v515_v15  ;;  %v6693_v0 = vld [vmem:[%s9689_s1 + $0x30] sm:$0xff]   ;;  %v6695_v13 = vld [vmem:[%s9689_s1 + $0x78] sm:$0xff]  }
  0x56   : > { %5741 = vrot.lane.b32.xlu1 %v5740_v34, %s6851_s15  ;;  %9784 = vst [vmem:[#allocation12_spill] sm:$0xff] %v7088_v46  ;;  %9785 = vst [vmem:[#allocation13_spill] sm:$0xff] %v7091_v47  ;;  %5238 = vmatpush3.bf16.msra.mxu0 %v6683_v17  ;;  %v7171_v24 = vpack.i.bf16 %v7159_v5, %v7156_v4  ;;  %v6688_v34 = vld [vmem:[%s9689_s1 + $0x60] sm:$0xff]   ;;  %v6697_v14 = vld [vmem:[%s9689_s1 + $0x88] sm:$0xff]  }
  0x57   : > { %295 = vst.msk [vmem:[#allocation2 + $0xc1] sm:$0xff] %vm192_vm0, %v7088_v46  ;;  %296 = vst.msk [vmem:[#allocation2 + $0xc9] sm:$0xff] %vm192_vm0, %v7091_v47  ;;  %5239 = vmatprep.subr.bf16.mxu0 %v6684_v22  ;;  %5531 = vmatprep.subr.bf16.mxu1 %v6697_v14  ;;  %v6696_v17 = vld [vmem:[%s9689_s1 + $0x38] sm:$0xff]  }
  0x58   : > { %v319_v39 = vld [vmem:[#allocation2 + $0x30] sm:$0xff]  ;;  %9786 = vst [vmem:[#allocation14_spill] sm:$0xff] %v7105_v56  ;;  %9787 = vst [vmem:[#allocation15_spill] sm:$0xff] %v7108_v57  ;;  %5736 = vrot.lane.b32.xlu0 %v5735_v48, %s6853_s27  ;;  %5532 = vmatpush3.bf16.msra.mxu1 %v6697_v14 }
  0x59   : > { %v320_v40 = vld [vmem:[#allocation2 + $0x38] sm:$0xff]  ;;  %v321_v41 = vld [vmem:[#allocation2 + $0x40] sm:$0x3]  ;;  %v426_v43 = vrot.slane %v319_v39, 1  ;;  %v507_v49 = vrot.slane %v319_v39, 2  ;;  %299 = vst.msk [vmem:[#allocation2 + $0xf1] sm:$0xff] %vm192_vm0, %v7105_v56 }
  0x5a   : > { %v427_v44 = vrot.slane %v320_v40, 1  ;;  %v429_v45 = vrot.slane %v321_v41, 1  ;;  %v508_v50 = vrot.slane %v320_v40, 2  ;;  %v510_v54 = vrot.slane %v321_v41, 2  ;;  %300 = vst.msk [vmem:[#allocation2 + $0xf9] sm:$0xff] %vm192_vm0, %v7108_v57  ;;  %5746 = vrot.lane.b32.xlu1 %v5745_v38, %s6853_s27  ;;  %v325_v19 = vld [vmem:[#allocation2 + $0x60] sm:$0xff]  ;;  %5240 = vmatpush3.bf16.msra.mxu0 %v6685_v23 }
  0x5b   : > { %v5755_v8 = vpack.i.bf16 %v320_v40, %v319_v39  ;;  %v326_v20 = vld [vmem:[#allocation2 + $0x68] sm:$0xff]  ;;  %v327_v21 = vld [vmem:[#allocation2 + $0x70] sm:$0x3]  ;;  %v436_v26 = vrot.slane %v325_v19, 1  ;;  %5241 = vmatprep.subr.bf16.mxu0 %v6686_v25  ;;  %v517_v37 = vrot.slane %v325_v19, 2  ;;  %v6689_v38 = vld [vmem:[%s9689_s1 + $0x20] sm:$0xff]  }
  0x5c   : > { %v7098_v52 = vsel %vm415_vm3, %v426_v43, %v427_v44  ;;  %v7101_v53 = vsel %vm415_vm3, %v427_v44, %v429_v45  ;;  %v7123_v61 = vsel %vm496_vm2, %v507_v49, %v508_v50  ;;  %v7126_v62 = vsel %vm496_vm2, %v508_v50, %v510_v54  ;;  %v7191_v39 = vld [vmem:[%s6962_s28 + $0xb0] sm:$0xff]  ;;  %v7194_v40 = vld [vmem:[%s6962_s28 + $0xb8] sm:$0xff]  ;;  %v328_v49 = vld [vmem:[#allocation2 + $0x78] sm:$0xff] }
  0x5d   : > { %v5760_v58 = vpack.i.bf16 %v7101_v53, %v7098_v52  ;;  %v5765_v9 = vpack.i.bf16 %v7126_v62, %v7123_v61  ;;  %v439_v29 = vrot.slane %v327_v21, 1  ;;  %v7185_v36 = vpack.i.bf16 %v326_v20, %v325_v19  ;;  %9788 = vst [vmem:[#allocation16_spill] sm:$0xff] %v7191_v39  ;;  %9789 = vst [vmem:[#allocation17_spill] sm:$0xff] %v7194_v40  ;;  %v6690_v45 = vld [vmem:[%s9689_s1 + $0x68] sm:$0xff]   ;;  %v329_v50 = vld [vmem:[#allocation2 + $0x80] sm:$0xff] }
  0x5e   : > { %5751 = vrot.lane.b32.xlu1 %v5730_v28, %s6851_s15  ;;  %v437_v28 = vrot.slane %v326_v20, 1  ;;  %5242 = vmatpush3.bf16.msra.mxu0 %v6687_v30  ;;  %v518_v43 = vrot.slane %v326_v20, 2  ;;  %v520_v44 = vrot.slane %v327_v21, 2  ;;  %303 = vst.msk [vmem:[#allocation2 + $0x121] sm:$0xff] %vm192_vm0, %v7191_v39  ;;  %304 = vst.msk [vmem:[#allocation2 + $0x129] sm:$0xff] %vm192_vm0, %v7194_v40  ;;  %v6691_v54 = vld [vmem:[%s9689_s1 + $0x28] sm:$0xff]   ;;  %v5820_v15 = vpack.i.bf16 %v329_v50, %v328_v49 }
  0x5f   : > { %5761 = vrot.lane.b32.xlu0 %v5760_v58, %s6852_s21  ;;  %5243 = vmatprep.subr.bf16.mxu0 %v6688_v34  ;;  %v441_v6 = vrot.slane %v328_v49, 1  ;;  %v7252_v19 = vld [vmem:[%s6962_s28 + $0xd0] sm:$0xff]  ;;  %v7255_v20 = vld [vmem:[%s6962_s28 + $0xd8] sm:$0xff]  ;;  %v523_v23 = vrot.slane %v329_v50, 2  ;;  %v525_v25 = vrot.slane %v330_v51, 2 }
  0x60   : > { %v7198_v41 = vsel %vm415_vm3, %v436_v26, %v437_v28  ;;  %v7201_v42 = vsel %vm415_vm3, %v437_v28, %v439_v29  ;;  %v7221_v55 = vsel %vm496_vm2, %v517_v37, %v518_v43  ;;  %9790 = vst [vmem:[#allocation18_spill] sm:$0xff] %v7252_v19  ;;  %9791 = vst [vmem:[#allocation19_spill] sm:$0xff] %v7255_v20  ;;  %v7270_v26 = vld [vmem:[%s6962_s28 + $0xf0] sm:$0xff]  ;;  %v7273_v28 = vld [vmem:[%s6962_s28 + $0xf8] sm:$0xff] }
  0x61   : > { %v7214_v48 = vpack.i.bf16 %v7201_v42, %v7198_v41  ;;  %307 = vst.msk [vmem:[#allocation2 + $0x151] sm:$0xff] %vm192_vm0, %v7252_v19  ;;  %308 = vst.msk [vmem:[#allocation2 + $0x159] sm:$0xff] %vm192_vm0, %v7255_v20  ;;  %v331_v29 = vld [vmem:[#allocation2 + $0x90] sm:$0xff]  ;;  %v526_v34 = vsel %vm496_vm2, %v523_v23, %v525_v25  ;;  %v332_v37 = vld [vmem:[#allocation2 + $0x98] sm:$0xff] }
  0x62   : > { %5756 = vrot.lane.b32.xlu1 %v5755_v8, %s6851_s15  ;;  %5244 = vmatpush3.bf16.msra.mxu0 %v6689_v38  ;;  %9792 = vst [vmem:[#allocation20_spill] sm:$0xff] %v7270_v26  ;;  %9793 = vst [vmem:[#allocation21_spill] sm:$0xff] %v7273_v28  ;;  %v333_v38 = vld [vmem:[#allocation2 + $0xa0] sm:$0x3]  ;;  %v528_v60 = vrot.slane %v332_v37, 2 }
  0x63   : > { %5766 = vrot.lane.b32.xlu0 %v5765_v9, %s6853_s27  ;;  %5245 = vmatprep.subr.bf16.mxu0 %v6690_v45  ;;  %311 = vst.msk [vmem:[#allocation2 + $0x181] sm:$0xff] %vm192_vm0, %v7270_v26  ;;  %312 = vst.msk [vmem:[#allocation2 + $0x189] sm:$0xff] %vm192_vm0, %v7273_v28  ;;  %v447_v45 = vrot.slane %v332_v37, 1 }
  0x66   : > { %5776 = vrot.lane.b32.xlu1 %v5755_v8, %s6852_s21  ;;  %5246 = vmatpush3.bf16.msra.mxu0 %v6691_v54  ;;  %v442_v8 = vrot.slane %v329_v50, 1  ;;  %v5850_v50 = vpack.i.bf16 %v332_v37, %v331_v29  ;;  %v1442_v54 = vpack.c.bf16 %v7159_v5, %v7156_v4  ;;  %v334_v5 = vld [vmem:[#allocation2 + $0xa8] sm:$0xff] }
  0x67   : > { %5771 = vrot.lane.b32.xlu0 %v7152_v18, %s6852_s21  ;;  %5247 = vmatprep.subr.bf16.mxu0 %v6692_v59  ;;  %v451_v14 = vrot.slane %v334_v5, 1 }
  0x68   : > { %v7260_v21 = vsel %vm415_vm3, %v441_v6, %v442_v8  ;;  %v336_v6 = vld [vmem:[#allocation2 + $0xb8] sm:$0x3]  ;;  %v7433_v56 = vld [vmem:[#allocation2 + $0x150] sm:$0xff] }
  0x69   : > { %v535_v25 = vrot.slane %v336_v6, 2  ;;  %v486_v46 = vrot.slane %v7433_v56, 1 }
  0x6a   : > { %5786 = vrot.lane.b32.xlu1 %v5760_v58, %s6853_s27  ;;  %v7224_v58 = vsel %vm496_vm2, %v518_v43, %v520_v44  ;;  %5248 = vmatpush3.bf16.msra.mxu0 %v6693_v0  ;;  %v446_v44 = vrot.slane %v331_v29, 1  ;;  %v530_v0 = vrot.slane %v333_v38, 2 }
  0x6b   : > { %5781 = vrot.lane.b32.xlu0 %v7171_v24, %s6853_s27  ;;  %v5810_v63 = vpack.i.bf16 %v7224_v58, %v7221_v55  ;;  %5249 = vmatprep.subr.bf16.mxu0 %v6695_v13 }
  0x6c   : > { %v7297_v59 = vsel %vm415_vm3, %v446_v44, %v447_v45  ;;  %v531_v4 = vsel %vm496_vm2, %v528_v60, %v530_v0  ;;  %v337_v44 = vld [vmem:[#allocation2 + $0xc0] sm:$0xff] }
  0x6d   : > { %v537_v0 = vrot.slane %v337_v44, 2 }
  0x6e   : > { %5796 = vrot.lane.b32.xlu1 %v5765_v9, %s6851_s15  ;;  %v444_v9 = vrot.slane %v330_v51, 1  ;;  %5250 = vmatpush3.bf16.msra.mxu0 %v6696_v17  ;;  %v527_v51 = vrot.slane %v331_v29, 2  ;;  %v532_v17 = vrot.slane %v334_v5, 2 }
  0x6f   : > { %5791 = vrot.lane.b32.xlu0 %v7185_v36, %s6851_s15 }
  0x70   : > { %v7263_v22 = vsel %vm415_vm3, %v442_v8, %v444_v9  ;;  %v1445_v8 = vpack.c.bf16 %v7224_v58, %v7221_v55 }
  0x72   : > { %5806 = vrot.lane.b32.xlu1 %v7043_v7, %s6852_s21  ;;  %v522_v7 = vrot.slane %v328_v49, 2  ;;  %v449_v49 = vrot.slane %v333_v38, 1 }
  0x73   : > { %5801 = vrot.lane.b32.xlu0 %v7214_v48, %s6852_s21 }
  0x74   : > { %v524_v30 = vsel %vm496_vm2, %v522_v7, %v523_v23 }
  0x75   : > { %v5840_v43 = vpack.i.bf16 %v526_v34, %v524_v30  ;;  %v1448_v9 = vpack.c.bf16 %v526_v34, %v524_v30 }
  0x76   : > { %5816 = vrot.lane.b32.xlu1 %v7152_v18, %s6853_s27  ;;  %v5830_v18 = vpack.i.bf16 %v7263_v22, %v7260_v21 }
  0x77   : > { %5811 = vrot.lane.b32.xlu0 %v5810_v63, %s6853_s27 }
  0x7a   : > { %5826 = vrot.lane.b32.xlu1 %v7171_v24, %s6851_s15  ;;  %v1439_v24 = vpack.c.bf16 %v7126_v62, %v7123_v61  ;;  %v529_v62 = vsel %vm496_vm2, %v527_v51, %v528_v60  ;;  %v456_v51 = vrot.slane %v337_v44, 1 }
  0x7b   : > { %5821 = vrot.lane.b32.xlu0 %v5820_v15, %s6851_s15  ;;  %v5870_v13 = vpack.i.bf16 %v531_v4, %v529_v62  ;;  %v1451_v34 = vpack.c.bf16 %v531_v4, %v529_v62 }
  0x7c   : > { %5533 = vmatprep.mubr.msk.bf16.mxu1 %vm192_vm0, %v1439_v24  ;;  %v340_v24 = vld [vmem:[#allocation2 + $0xd8] sm:$0xff] }
  0x7d   : > { %5534 = vmatmul.mubr.msk.bf16.vlgmr.msra.gmra.mrb[0].mxu1 %vm192_vm0, %v1442_v54  ;;  %v341_v54 = vld [vmem:[#allocation2 + $0xe0] sm:$0xff] }
  0x7e   : > { %5836 = vrot.lane.b32.xlu1 %v7185_v36, %s6852_s21  ;;  %v7300_v36 = vsel %vm415_vm3, %v447_v45, %v449_v49  ;;  %5537 = vmatprep.mubr.msk.bf16.mxu1 %vm192_vm0, %v1445_v8  ;;  %v339_v45 = vld [vmem:[#allocation2 + $0xd0] sm:$0x3] }
  0x7f   : > { %5831 = vrot.lane.b32.xlu0 %v5830_v18, %s6852_s21  ;;  %v5860_v61 = vpack.i.bf16 %v7300_v36, %v7297_v59  ;;  %v540_v4 = vrot.slane %v339_v45, 2 }
  0x82   : > { %5846 = vrot.lane.b32.xlu1 %v7214_v48, %s6853_s27  ;;  %v335_v48 = vld [vmem:[#allocation2 + $0xb0] sm:$0xff] }
  0x83   : > { %5841 = vrot.lane.b32.xlu0 %v5840_v43, %s6853_s27  ;;  %v452_v7 = vrot.slane %v335_v48, 1  ;;  %v533_v23 = vrot.slane %v335_v48, 2  ;;  %v5880_v29 = vpack.i.bf16 %v335_v48, %v334_v5  ;;  %v342_v5 = vld [vmem:[#allocation2 + $0xe8] sm:$0x3]  ;;  %v459_v48 = vrot.slane %v339_v45, 1 }
  0x84   : > { %v545_v8 = vrot.slane %v342_v5, 2 }
  0x85   : > { %5538 = vmatmul.mubr.msk.bf16.gmra.mrb[4].mxu1 %vm192_vm0, %v1448_v9  ;;  %v7319_v55 = vsel %vm415_vm3, %v451_v14, %v452_v7  ;;  %v534_v30 = vsel %vm496_vm2, %v532_v17, %v533_v23 }
  0x86   : > { %5856 = vrot.lane.b32.xlu1 %v5810_v63, %s6851_s15  ;;  %v454_v63 = vrot.slane %v336_v6, 1  ;;  %5541 = vmatprep.mubr.msk.bf16.mxu1 %vm192_vm0, %v1451_v34  ;;  %v542_v6 = vrot.slane %v340_v24, 2  ;;  %v461_v34 = vrot.slane %v340_v24, 1 }
  0x87   : > { %5851 = vrot.lane.b32.xlu0 %v5850_v50, %s6851_s15 }
  0x88   : > { %v7322_v58 = vsel %vm415_vm3, %v452_v7, %v454_v63 }
  0x89   : > { %v5890_v38 = vpack.i.bf16 %v7322_v58, %v7319_v55 }
  0x8a   : > { %5866 = vrot.lane.b32.xlu1 %v5820_v15, %s6852_s21  ;;  %v536_v15 = vsel %vm496_vm2, %v533_v23, %v535_v25 }
  0x8b   : > { %5861 = vrot.lane.b32.xlu0 %v5860_v61, %s6852_s21  ;;  %v1454_v37 = vpack.c.bf16 %v536_v15, %v534_v30  ;;  %v5900_v49 = vpack.i.bf16 %v536_v15, %v534_v30 }
  0x8d   : > { %5542 = vmatmul.mubr.msk.bf16.gmra.mrb[8].mxu1 %vm192_vm0, %v1454_v37  ;;  %v462_v37 = vrot.slane %v341_v54, 1 }
  0x8e   : > { %5876 = vrot.lane.b32.xlu1 %v5830_v18, %s6853_s27  ;;  %v338_v18 = vld [vmem:[#allocation2 + $0xc8] sm:$0xff] }
  0x8f   : > { %5871 = vrot.lane.b32.xlu0 %v5870_v13, %s6853_s27  ;;  %v457_v60 = vrot.slane %v338_v18, 1  ;;  %v538_v62 = vrot.slane %v338_v18, 2  ;;  %v5910_v9 = vpack.i.bf16 %v338_v18, %v337_v44  ;;  %v464_v44 = vrot.slane %v342_v5, 1 }
  0x90   : > { %v5940_v18 = vpack.i.bf16 %v341_v54, %v340_v24  ;;  %v7357_v45 = vsel %vm415_vm3, %v461_v34, %v462_v37 }
  0x91   : > { %v7336_v14 = vsel %vm415_vm3, %v456_v51, %v457_v60  ;;  %v539_v7 = vsel %vm496_vm2, %v537_v0, %v538_v62  ;;  %v541_v63 = vsel %vm496_vm2, %v538_v62, %v540_v4  ;;  %v7342_v17 = vsel %vm415_vm3, %v457_v60, %v459_v48  ;;  %v344_v60 = vld [vmem:[#allocation2 + $0xf8] sm:$0xff]  ;;  %v345_v0 = vld [vmem:[#allocation2 + $0x100] sm:$0x3] }
  0x92   : > { %5886 = vrot.lane.b32.xlu1 %v5840_v43, %s6851_s15  ;;  %v543_v43 = vrot.slane %v341_v54, 2  ;;  %v1457_v25 = vpack.c.bf16 %v541_v63, %v539_v7  ;;  %v5920_v15 = vpack.i.bf16 %v7342_v17, %v7336_v14  ;;  %v7360_v51 = vsel %vm415_vm3, %v462_v37, %v464_v44  ;;  %v346_v54 = vld [vmem:[#allocation2 + $0x108] sm:$0xff] }
  0x93   : > { %5881 = vrot.lane.b32.xlu0 %v5880_v29, %s6851_s15  ;;  %v467_v4 = vrot.slane %v344_v60, 1  ;;  %v548_v48 = vrot.slane %v344_v60, 2 }
  0x94   : > { %v546_v23 = vsel %vm496_vm2, %v543_v43, %v545_v8  ;;  %5545 = vmatprep.mubr.msk.bf16.mxu1 %vm192_vm0, %v1457_v25  ;;  %v469_v8 = vrot.slane %v345_v0, 1 }
  0x96   : > { %5896 = vrot.lane.b32.xlu1 %v5850_v50, %s6852_s21  ;;  %v544_v50 = vsel %vm496_vm2, %v542_v6, %v543_v43  ;;  %v550_v6 = vrot.slane %v345_v0, 2  ;;  %v348_v43 = vld [vmem:[#allocation2 + $0x118] sm:$0x3]  ;;  %v7376_v34 = vsel %vm415_vm3, %v467_v4, %v469_v8  ;;  %v350_v8 = vld [vmem:[#allocation2 + $0x128] sm:$0xff] }
  0x97   : > { %5891 = vrot.lane.b32.xlu0 %v5890_v38, %s6852_s21  ;;  %v1460_v30 = vpack.c.bf16 %v546_v23, %v544_v50  ;;  %v5960_v62 = vpack.i.bf16 %v546_v23, %v544_v50  ;;  %v555_v25 = vrot.slane %v348_v43, 2 }
  0x99   : > { %5546 = vmatmul.mubr.msk.bf16.gmra.mrb[12].mxu1 %vm192_vm0, %v1460_v30  ;;  %v551_v30 = vsel %vm496_vm2, %v548_v48, %v550_v6  ;;  %v349_v6 = vld [vmem:[#allocation2 + $0x120] sm:$0xff] }
  0x9a   : > { %5906 = vrot.lane.b32.xlu1 %v5860_v61, %s6853_s27  ;;  %v5930_v61 = vpack.i.bf16 %v541_v63, %v539_v7  ;;  %v552_v7 = vrot.slane %v346_v54, 2 }
  0x9b   : > { %5901 = vrot.lane.b32.xlu0 %v5900_v49, %s6853_s27 }
  0x9e   : > { %5916 = vrot.lane.b32.xlu1 %v5870_v13, %s6851_s15  ;;  %v5950_v13 = vpack.i.bf16 %v7360_v51, %v7357_v45 }
  0x9f   : > { %5911 = vrot.lane.b32.xlu0 %v5910_v9, %s6851_s15 }
  0xa2   : > { %5926 = vrot.lane.b32.xlu1 %v5880_v29, %s6852_s21  ;;  %v343_v29 = vld [vmem:[#allocation2 + $0xf0] sm:$0xff] }
  0xa3   : > { %5921 = vrot.lane.b32.xlu0 %v5920_v15, %s6852_s21  ;;  %v466_v24 = vrot.slane %v343_v29, 1  ;;  %v547_v5 = vrot.slane %v343_v29, 2 }
  0xa5   : > { %v7370_v50 = vsel %vm415_vm3, %v466_v24, %v467_v4  ;;  %v549_v23 = vsel %vm496_vm2, %v547_v5, %v548_v48  ;;  %v474_v4 = vrot.slane %v348_v43, 1 }
  0xa6   : > { %5936 = vrot.lane.b32.xlu1 %v5890_v38, %s6853_s27  ;;  %v347_v38 = vld [vmem:[#allocation2 + $0x110] sm:$0xff]  ;;  %v1463_v44 = vpack.c.bf16 %v551_v30, %v549_v23 }
  0xa7   : > { %5931 = vrot.lane.b32.xlu0 %v5930_v61, %s6853_s27  ;;  %v553_v63 = vrot.slane %v347_v38, 2  ;;  %v472_v24 = vrot.slane %v347_v38, 1  ;;  %v7392_v5 = vpack.i.bf16 %v347_v38, %v346_v54 }
  0xa8   : > { %5549 = vmatprep.mubr.msk.bf16.mxu1 %vm192_vm0, %v1463_v44 }
  0xa9   : > { %v556_v37 = vsel %vm496_vm2, %v553_v63, %v555_v25  ;;  %v352_v25 = vld [vmem:[#allocation2 + $0x138] sm:$0xff] }
  0xaa   : > { %5946 = vrot.lane.b32.xlu1 %v5900_v49, %s6851_s15  ;;  %v5970_v49 = vpack.i.bf16 %v344_v60, %v343_v29  ;;  %v5980_v29 = vpack.i.bf16 %v7376_v34, %v7370_v50  ;;  %v471_v60 = vrot.slane %v346_v54, 1  ;;  %v476_v54 = vrot.slane %v349_v6, 1 }
  0xab   : > { %5941 = vrot.lane.b32.xlu0 %v5940_v18, %s6851_s15  ;;  %v481_v40 = vrot.slane %v352_v25, 1 }
  0xac   : > { %v7396_v48 = vsel %vm415_vm3, %v471_v60, %v472_v24  ;;  %v558_v60 = vrot.slane %v350_v8, 2 }
  0xae   : > { %5956 = vrot.lane.b32.xlu1 %v5910_v9, %s6852_s21  ;;  %v554_v9 = vsel %vm496_vm2, %v552_v7, %v553_v63  ;;  %v351_v7 = vld [vmem:[#allocation2 + $0x130] sm:$0x3] }
  0xaf   : > { %5951 = vrot.lane.b32.xlu0 %v5950_v13, %s6852_s21  ;;  %v1466_v0 = vpack.c.bf16 %v556_v37, %v554_v9  ;;  %v479_v43 = vrot.slane %v351_v7, 1  ;;  %v7414_v44 = vpack.i.bf16 %v556_v37, %v554_v9  ;;  %v7425_v37 = vpack.i.bf16 %v350_v8, %v349_v6 }
  0xb1   : > { %5550 = vmatmul.mubr.msk.bf16.gmra.mrb[16].mxu1 %vm192_vm0, %v1466_v0  ;;  %v7408_v38 = vpop.permute.xlu0 %5726  ;;  %v557_v0 = vrot.slane %v349_v6, 2 }
  0xb2   : > { %5966 = vrot.lane.b32.xlu1 %v5920_v15, %s6853_s27  ;;  %v7387_v15 = vpack.i.bf16 %v551_v30, %v549_v23  ;;  %v353_v23 = vld [vmem:[#allocation2 + $0x140] sm:$0xff]  ;;  %v354_v30 = vld [vmem:[#allocation2 + $0x148] sm:$0x3] }
  0xb3   : > { %5961 = vrot.lane.b32.xlu0 %v5960_v62, %s6853_s27  ;;  %v7410_v63 = vpop.permute.xlu1 %5721  ;;  %v563_v28 = vrot.slane %v353_v23, 2  ;;  %v565_v26 = vrot.slane %v354_v30, 2  ;;  %v482_v39 = vrot.slane %v353_v23, 1  ;;  %v484_v57 = vrot.slane %v354_v30, 1 }
  0xb5   : > { %v566_v30 = vsel %vm496_vm2, %v563_v28, %v565_v26 }
  0xb6   : > { %5976 = vrot.lane.b32.xlu1 %v5930_v61, %s6851_s15  ;;  %v7399_v61 = vsel %vm415_vm3, %v472_v24, %v474_v4  ;;  %v560_v24 = vrot.slane %v351_v7, 2  ;;  %v562_v4 = vrot.slane %v352_v25, 2 }
  0xb7   : > { %5971 = vrot.lane.b32.xlu0 %v5970_v49, %s6851_s15 }
  0xb8   : > { %v561_v7 = vsel %vm496_vm2, %v558_v60, %v560_v24 }
  0xba   : > { %5986 = vrot.lane.b32.xlu1 %v5940_v18, %s6852_s21  ;;  %v7405_v18 = vpack.i.bf16 %v7399_v61, %v7396_v48 }
  0xbb   : > { %5981 = vrot.lane.b32.xlu0 %v5980_v29, %s6852_s21 }
  0xbe   : > { %5996 = vrot.lane.b32.xlu1 %v5950_v13, %s6853_s27  ;;  %v477_v13 = vrot.slane %v350_v8, 1  ;;  %v564_v8 = vsel %vm496_vm2, %v562_v4, %v563_v28 }
  0xbf   : > { %5991 = vrot.lane.b32.xlu0 %v7387_v15, %s6853_s27  ;;  %v1472_v24 = vpack.c.bf16 %v566_v30, %v564_v8  ;;  %v7473_v32 = vpack.i.bf16 %v566_v30, %v564_v8  ;;  %v5728_v30 = vunpack.i.l.bf16 %v7408_v38 }
  0xc0   : > { %v7421_v19 = vsel %vm415_vm3, %v477_v13, %v479_v43  ;;  %v7437_v43 = vld [vmem:[#allocation2 + $0x160] sm:$0x3] }
  0xc1   : > { %v489_v4 = vrot.slane %v7437_v43, 1 }
  0xc2   : > { %6006 = vrot.lane.b32.xlu1 %v5960_v62, %s6851_s15  ;;  %v7418_v62 = vsel %vm415_vm3, %v476_v54, %v477_v13  ;;  %v7431_v54 = vpack.i.bf16 %v353_v23, %v352_v25  ;;  %v7435_v13 = vld [vmem:[#allocation2 + $0x158] sm:$0xff]  ;;  %v7447_v25 = vsel %vm415_vm3, %v481_v40, %v482_v39  ;;  %v7450_v23 = vsel %vm415_vm3, %v482_v39, %v484_v57 }
  0xc3   : > { %6001 = vrot.lane.b32.xlu0 %v7392_v5, %s6851_s15  ;;  %v7442_v6 = vpack.i.bf16 %v7421_v19, %v7418_v62  ;;  %9794 = vst [vmem:[#allocation22_spill] sm:$0xff] %v7447_v25  ;;  %9795 = vst [vmem:[#allocation23_spill] sm:$0xff] %v7450_v23  ;;  %v487_v33 = vrot.slane %v7435_v13, 1  ;;  %v7467_v57 = vpack.i.bf16 %v7450_v23, %v7447_v25 }
  0xc4   : > { %v7471_v39 = vpack.i.bf16 %v7435_v13, %v7433_v56 }
  0xc6   : > { %6016 = vrot.lane.b32.xlu1 %v5970_v49, %s6852_s21  ;;  %v5732_v20 = vpop.permute.xlu0 %5731  ;;  %v559_v49 = vsel %vm496_vm2, %v557_v0, %v558_v60 }
  0xc7   : > { %6011 = vrot.lane.b32.xlu0 %v7405_v18, %s6852_s21  ;;  %v1469_v0 = vpack.c.bf16 %v561_v7, %v559_v49  ;;  %v7460_v40 = vpack.i.bf16 %v561_v7, %v559_v49  ;;  %v5734_v28 = vunpack.i.h.bf16 %v5732_v20 }
  0xc8   : > { %v7423_v9 = vpop.permute.xlu1 %5741 }
  0xc9   : > { %5553 = vmatprep.mubr.msk.bf16.mxu1 %vm192_vm0, %v1469_v0  ;;  %v5733_v0 = vunpack.i.l.bf16 %v5732_v20  ;;  %v5743_v3 = vunpack.i.l.bf16 %v7423_v9  ;;  %v1342_v8 = vsel %vm192_vm0, %v7075_v35, %v5734_v28 }
  0xca   : > { %6026 = vrot.lane.b32.xlu1 %v5980_v29, %s6853_s27  ;;  %v5737_v60 = vpop.permute.xlu0 %5736  ;;  %5554 = vmatmul.mubr.msk.bf16.gmra.mrb[20].mxu1 %vm192_vm0, %v1472_v24  ;;  %v7483_v24 = vsel %vm415_vm3, %v487_v33, %v489_v4 }
  0xcb   : > { %6021 = vrot.lane.b32.xlu0 %v7414_v44, %s6853_s27  ;;  %v5738_v29 = vunpack.i.l.bf16 %v5737_v60  ;;  %v5739_v26 = vunpack.i.h.bf16 %v5737_v60 }
  0xcc   : > { %v7452_v47 = vpop.permute.xlu1 %5746 }
  0xcd   : > { %v1243_v49 = vsel %vm192_vm0, %v7045_v11, %v5738_v29  ;;  %v1244_v20 = vsel %vm192_vm0, %v7047_v16, %v5739_v26  ;;  %v5744_v29 = vunpack.i.h.bf16 %v7423_v9  ;;  %v5723_v16 = vunpack.i.l.bf16 %v7410_v63 }
  0xce   : > { %6036 = vrot.lane.b32.xlu1 %v7387_v15, %s6851_s15  ;;  %v7480_v15 = vsel %vm415_vm3, %v486_v46, %v487_v33  ;;  %v5729_v46 = vunpack.i.h.bf16 %v7408_v38  ;;  %v5724_v33 = vunpack.i.h.bf16 %v7410_v63  ;;  %v1341_v26 = vsel %vm192_vm0, %v7064_v31, %v5733_v0 }
  0xcf   : > { %6031 = vrot.lane.b32.xlu0 %v7425_v37, %s6851_s15  ;;  %v1276_v27 = vsel %vm1275_vm4, %v1243_v49, %v5743_v3  ;;  %v5749_v38 = vunpack.i.h.bf16 %v7452_v47  ;;  %v1277_v9 = vsel %vm1275_vm4, %v1244_v20, %v5744_v29 }
  0xd0   : > { %v7477_v7 = vpop.permute.xlu1 %5751  ;;  %v1309_v28 = vsel %vm1308_vm5, %v1276_v27, %v5723_v16 }
  0xd1   : > { %v5762_v60 = vpop.permute.xlu0 %5761 }
  0xd2   : > { %6046 = vrot.lane.b32.xlu1 %v7392_v5, %s6852_s21  ;;  %v5748_v5 = vunpack.i.l.bf16 %v7452_v47  ;;  %v5764_v25 = vunpack.i.h.bf16 %v5762_v60  ;;  %v5763_v31 = vunpack.i.l.bf16 %v5762_v60  ;;  %v5754_v47 = vunpack.i.h.bf16 %v7477_v7 }
  0xd3   : > { %6041 = vrot.lane.b32.xlu0 %v7442_v6, %s6852_s21  ;;  %v1310_v60 = vsel %vm1308_vm5, %v1277_v9, %v5724_v33 }
  0xd4   : > { %v5757_v11 = vpop.permute.xlu1 %5756  ;;  %v1437_v33 = vpack.c.bf16 %v1310_v60, %v1309_v28  ;;  %v7550_v60 = vld [vmem:[#allocation2 + $0x190] sm:$0x3] }
  0xd5   : > { %v5767_v4 = vpop.permute.xlu0 %5766  ;;  %v5759_v63 = vunpack.i.h.bf16 %v5757_v11  ;;  %v5758_v23 = vunpack.i.l.bf16 %v5757_v11 }
  0xd6   : > { %v5769_v2 = vunpack.i.h.bf16 %v5767_v4  ;;  %v5768_v1 = vunpack.i.l.bf16 %v5767_v4  ;;  %6056 = vrot.lane.b32.xlu1 %v7405_v18, %s6853_s27 }
  0xd7   : > { %6051 = vrot.lane.b32.xlu0 %v7460_v40, %s6853_s27  ;;  %v1373_v49 = vsel %vm1275_vm4, %v1341_v26, %v5758_v23  ;;  %v1374_v20 = vsel %vm1275_vm4, %v1342_v8, %v5759_v63  ;;  %v7540_v63 = vld [vmem:[#allocation2 + $0x178] sm:$0x3] }
  0xd8   : > { %v1344_v35 = vsel %vm192_vm0, %v7101_v53, %v5769_v2  ;;  %v1343_v3 = vsel %vm192_vm0, %v7098_v52, %v5768_v1  ;;  %v5777_v11 = vpop.permute.xlu1 %5776  ;;  %v1405_v53 = vsel %vm1308_vm5, %v1373_v49, %v5763_v31  ;;  %v1406_v1 = vsel %vm1308_vm5, %v1374_v20, %v5764_v25  ;;  %v7532_v25 = vld [vmem:[#allocation2 + $0x168] sm:$0xff]  ;;  %v7543_v31 = vld [vmem:[#allocation2 + $0x180] sm:$0xff] }
  0xd9   : > { %v5772_v0 = vpop.permute.xlu0 %5771  ;;  %v5753_v52 = vunpack.i.l.bf16 %v7477_v7  ;;  %v1438_v27 = vpack.c.bf16 %v1406_v1, %v1405_v53  ;;  %v1375_v18 = vsel %vm1275_vm4, %v1343_v3, %v5728_v30  ;;  %v1376_v23 = vsel %vm1275_vm4, %v1344_v35, %v5729_v46  ;;  %v7538_v46 = vld [vmem:[#allocation2 + $0x170] sm:$0xff]  ;;  %v6718_v35 = vld [vmem:[#allocation2 + $0x18] sm:$0xff]  ;;  %v7548_v20 = vld [vmem:[#allocation2 + $0x188] sm:$0xff] }
  0xda   : > { %v5774_v29 = vunpack.i.h.bf16 %v5772_v0  ;;  %v5773_v2 = vunpack.i.l.bf16 %v5772_v0  ;;  %v5778_v8 = vunpack.i.l.bf16 %v5777_v11  ;;  %6066 = vrot.lane.b32.xlu1 %v7414_v44, %s6851_s15  ;;  %v5779_v7 = vunpack.i.h.bf16 %v5777_v11 }
  0xdb   : > { %6061 = vrot.lane.b32.xlu0 %v7431_v54, %s6851_s15  ;;  %1709 = vmatprep.mubr.bf16.mxu0 %v1438_v27  ;;  %v7536_v30 = vpack.i.bf16 %v7483_v24, %v7480_v15  ;;  %v572_v44 = vrot.slane %v7532_v25, 2  ;;  %v1245_v3 = vsel %vm192_vm0, %v6718_v35, %v5748_v5  ;;  %v573_v0 = vrot.slane %v7538_v46, 2 }
  0xdc   : > { %v1407_v16 = vsel %vm1308_vm5, %v1375_v18, %v5773_v2  ;;  %v1408_v4 = vsel %vm1308_vm5, %v1376_v23, %v5774_v29  ;;  %v5787_v28 = vpop.permute.xlu1 %5786  ;;  %1710 = vmatmul.mubr.bf16.vlgmr.msra.gmra.mrb[0].mxu0 %v1437_v33  ;;  %v575_v49 = vrot.slane %v7540_v63, 2  ;;  %v617_v11 = vrot.slane %v7543_v31, 2  ;;  %v6719_v29 = vld [vmem:[#allocation2 + $0x20] sm:$0xff] }
  0xdd   : > { %v5782_v26 = vpop.permute.xlu0 %5781  ;;  %v1441_v9 = vpack.c.bf16 %v1408_v4, %v1407_v16  ;;  %v1246_v2 = vsel %vm192_vm0, %v6719_v29, %v5749_v38  ;;  %v1278_v5 = vsel %vm1275_vm4, %v1245_v3, %v5753_v52  ;;  %v618_v53 = vrot.slane %v7548_v20, 2 }
  0xde   : > { %v620_v1 = vrot.slane %v7550_v60, 2  ;;  %6076 = vrot.lane.b32.xlu1 %v7425_v37, %s6852_s21  ;;  %v1279_v27 = vsel %vm1275_vm4, %v1246_v2, %v5754_v47  ;;  %v1311_v18 = vsel %vm1308_vm5, %v1278_v5, %v5778_v8  ;;  %v9796_v23 = vrot.slane %v7435_v13, 2 }
  0xdf   : > { %6071 = vrot.lane.b32.xlu0 %v7467_v57, %s6852_s21  ;;  %1717 = vmatprep.mubr.bf16.mxu0 %v1441_v9  ;;  %v9797_v38 = vrot.slane %v7433_v56, 2  ;;  %v9798_v16 = vrot.slane %v7437_v43, 2  ;;  %v5789_v9 = vunpack.i.h.bf16 %v5787_v28  ;;  %v5784_v35 = vunpack.i.h.bf16 %v5782_v26 }
  0xe0   : > { %v9799_v52 = vmov %v9796_v23  ;;  %v5783_v3 = vunpack.i.l.bf16 %v5782_v26  ;;  %v1312_v47 = vsel %vm1308_vm5, %v1279_v27, %v5779_v7  ;;  %v5788_v29 = vunpack.i.l.bf16 %v5787_v28  ;;  %v5797_v8 = vpop.permute.xlu1 %5796 }
  0xe1   : > { %v569_v33 = vsel %vm496_vm2, %v9797_v38, %v9796_v23  ;;  %v571_v4 = vsel %vm496_vm2, %v9799_v52, %v9798_v16  ;;  %v5792_v37 = vpop.permute.xlu0 %5791  ;;  %v7575_v5 = vsel %vm496_vm2, %v572_v44, %v573_v0  ;;  %v7578_v56 = vsel %vm496_vm2, %v573_v0, %v575_v49  ;;  %v6720_v49 = vld [vmem:[#allocation2 + $0x38] sm:$0xff]  ;;  %v6721_v16 = vld [vmem:[#allocation2 + $0x30] sm:$0xff] }
  0xe2   : > { %v5793_v2 = vunpack.i.l.bf16 %v5792_v37  ;;  %v5798_v43 = vunpack.i.l.bf16 %v5797_v8  ;;  %v5794_v23 = vunpack.i.h.bf16 %v5792_v37  ;;  %v7583_v13 = vsel %vm496_vm2, %v617_v11, %v618_v53  ;;  %6086 = vrot.lane.b32.xlu1 %v7442_v6, %s6853_s27 }
  0xe3   : > { %6081 = vrot.lane.b32.xlu0 %v7473_v32, %s6853_s27  ;;  %v7586_v26 = vsel %vm496_vm2, %v618_v53, %v620_v1  ;;  %v5799_v7 = vunpack.i.h.bf16 %v5797_v8  ;;  %v1440_v44 = vpack.c.bf16 %v1312_v47, %v1311_v18  ;;  %v1475_v0 = vpack.c.bf16 %v571_v4, %v569_v33 }
  0xe4   : > { %v1481_v28 = vpack.c.bf16 %v7586_v26, %v7583_v13  ;;  %v1248_v27 = vsel %vm192_vm0, %v6720_v49, %v5789_v9  ;;  %v1346_v38 = vsel %vm192_vm0, %v7142_v12, %v5784_v35  ;;  %v1345_v11 = vsel %vm192_vm0, %v7138_v10, %v5783_v3  ;;  %v5807_v18 = vpop.permute.xlu1 %5806 }
  0xe5   : > { %v5802_v53 = vpop.permute.xlu0 %5801  ;;  %v1478_v1 = vpack.c.bf16 %v7578_v56, %v7575_v5  ;;  %v1247_v6 = vsel %vm192_vm0, %v6721_v16, %v5788_v29  ;;  %1718 = vmatmul.mubr.bf16.gmra.mrb[4].mxu0 %v1440_v44  ;;  %v1377_v47 = vsel %vm1275_vm4, %v1345_v11, %v5793_v2  ;;  %5557 = vmatprep.mubr.msk.bf16.mxu1 %vm192_vm0, %v1475_v0  ;;  %v5809_v9 = vunpack.i.h.bf16 %v5807_v18 }
  0xe6   : > { %v5804_v52 = vunpack.i.h.bf16 %v5802_v53  ;;  %v5803_v37 = vunpack.i.l.bf16 %v5802_v53  ;;  %v5808_v12 = vunpack.i.l.bf16 %v5807_v18  ;;  %v1378_v10 = vsel %vm1275_vm4, %v1346_v38, %v5794_v23  ;;  %6096 = vrot.lane.b32.xlu1 %v7460_v40, %s6851_s15 }
  0xe7   : > { %6091 = vrot.lane.b32.xlu0 %v7471_v39, %s6851_s15  ;;  %v1280_v35 = vsel %vm1275_vm4, %v1247_v6, %v5798_v43  ;;  %5558 = vmatmul.mubr.msk.bf16.gmra.mrb[24].mxu1 %vm192_vm0, %v1478_v1  ;;  %v1281_v8 = vsel %vm1275_vm4, %v1248_v27, %v5799_v7  ;;  %v491_v49 = vrot.slane %v7532_v25, 1  ;;  %v492_v38 = vrot.slane %v7538_v46, 1 }
  0xe8   : > { %v1409_v3 = vsel %vm1308_vm5, %v1377_v47, %v5803_v37  ;;  %v1410_v29 = vsel %vm1308_vm5, %v1378_v10, %v5804_v52  ;;  %5561 = vmatprep.mubr.msk.bf16.mxu1 %vm192_vm0, %v1481_v28  ;;  %v1313_v0 = vsel %vm1308_vm5, %v1280_v35, %v5808_v12  ;;  %v1314_v23 = vsel %vm1308_vm5, %v1281_v8, %v5809_v9  ;;  %v5817_v43 = vpop.permute.xlu1 %5816  ;;  %v6722_v35 = vld [vmem:[#allocation2 + $0x50] sm:$0xff] }
  0xe9   : > { %v5812_v2 = vpop.permute.xlu0 %5811  ;;  %v1444_v44 = vpack.c.bf16 %v1410_v29, %v1409_v3  ;;  %v494_v40 = vrot.slane %v7540_v63, 1  ;;  %v7620_v7 = vpack.i.bf16 %v571_v4, %v569_v33  ;;  %v1443_v28 = vpack.c.bf16 %v1314_v23, %v1313_v0 }
  0xea   : > { %6106 = vrot.lane.b32.xlu1 %v7431_v54, %s6852_s21  ;;  %v5814_v27 = vunpack.i.h.bf16 %v5812_v2  ;;  %v5813_v11 = vunpack.i.l.bf16 %v5812_v2  ;;  %v5819_v1 = vunpack.i.h.bf16 %v5817_v43  ;;  %v5818_v16 = vunpack.i.l.bf16 %v5817_v43 }
  0xeb   : > { %6101 = vrot.lane.b32.xlu0 %v7536_v30, %s6852_s21  ;;  %1725 = vmatprep.mubr.bf16.mxu0 %v1444_v44  ;;  %v7625_v18 = vsel %vm415_vm3, %v491_v49, %v492_v38  ;;  %v7628_v63 = vsel %vm415_vm3, %v492_v38, %v494_v40  ;;  %v7634_v54 = vpack.i.bf16 %v7538_v46, %v7532_v25  ;;  %v6723_v46 = vld [vmem:[#allocation2 + $0x48] sm:$0xff] }
  0xec   : > { %v5827_v6 = vpop.permute.xlu1 %5826  ;;  %v1348_v47 = vsel %vm192_vm0, %v7201_v42, %v5814_v27  ;;  %v1347_v9 = vsel %vm192_vm0, %v7198_v41, %v5813_v11  ;;  %v7644_v10 = vpack.i.bf16 %v7628_v63, %v7625_v18  ;;  %v1250_v25 = vsel %vm192_vm0, %v6722_v35, %v5819_v1 }
  0xed   : > { %v5822_v53 = vpop.permute.xlu0 %5821  ;;  %1726 = vmatmul.mubr.bf16.gmra.mrb[8].mxu0 %v1443_v28  ;;  %v5829_v4 = vunpack.i.h.bf16 %v5827_v6  ;;  %v5828_v37 = vunpack.i.l.bf16 %v5827_v6  ;;  %v1249_v3 = vsel %vm192_vm0, %v6723_v46, %v5818_v16  ;;  %v580_v1 = vrot.slane %v7543_v31, 1 }
  0xee   : > { %v5824_v52 = vunpack.i.h.bf16 %v5822_v53  ;;  %v5823_v33 = vunpack.i.l.bf16 %v5822_v53  ;;  %6116 = vrot.lane.b32.xlu1 %v7467_v57, %s6853_s27  ;;  %v583_v16 = vrot.slane %v7550_v60, 1  ;;  %v7667_v6 = vpack.i.bf16 %v7578_v56, %v7575_v5 }
  0xef   : > { %6111 = vrot.lane.b32.xlu0 %v7620_v7, %s6853_s27  ;;  %v1282_v43 = vsel %vm1275_vm4, %v1249_v3, %v5828_v37  ;;  %v1283_v49 = vsel %vm1275_vm4, %v1250_v25, %v5829_v4  ;;  %v7673_v4 = vld [vmem:[#allocation2 + $0x1a8] sm:$0x3] }
  0xf0   : > { %v5837_v29 = vpop.permute.xlu1 %5836  ;;  %v1379_v41 = vsel %vm1275_vm4, %v1347_v9, %v5823_v33  ;;  %v1380_v42 = vsel %vm1275_vm4, %v1348_v47, %v5824_v52  ;;  %v7669_v52 = vld [vmem:[#allocation2 + $0x198] sm:$0xff]  ;;  %v7671_v33 = vld [vmem:[#allocation2 + $0x1a0] sm:$0xff]  ;;  %v633_v47 = vrot.slane %v7673_v4, 2 }
  0xf1   : > { %v5832_v12 = vpop.permute.xlu0 %5831  ;;  %v5839_v2 = vunpack.i.h.bf16 %v5837_v29  ;;  %v5838_v44 = vunpack.i.l.bf16 %v5837_v29  ;;  %v631_v60 = vrot.slane %v7671_v33, 2  ;;  %v630_v37 = vrot.slane %v7669_v52, 2 }
  0xf2   : > { %v5834_v8 = vunpack.i.h.bf16 %v5832_v12  ;;  %v5833_v57 = vunpack.i.l.bf16 %v5832_v12  ;;  %6126 = vrot.lane.b32.xlu1 %v7473_v32, %s6851_s15  ;;  %v581_v32 = vrot.slane %v7548_v20, 1 }
  0xf3   : > { %6121 = vrot.lane.b32.xlu0 %v7634_v54, %s6851_s15  ;;  %v1315_v28 = vsel %vm1308_vm5, %v1282_v43, %v5838_v44  ;;  %v1316_v27 = vsel %vm1308_vm5, %v1283_v49, %v5839_v2  ;;  %v632_v44 = vsel %vm496_vm2, %v630_v37, %v631_v60  ;;  %v6724_v43 = vld [vmem:[#allocation2 + $0x68] sm:$0xff] }
  0xf4   : > { %v1411_v0 = vsel %vm1308_vm5, %v1379_v41, %v5833_v57  ;;  %v1412_v23 = vsel %vm1308_vm5, %v1380_v42, %v5834_v8  ;;  %v5847_v11 = vpop.permute.xlu1 %5846  ;;  %v1446_v53 = vpack.c.bf16 %v1316_v27, %v1315_v28  ;;  %v7681_v46 = vsel %vm415_vm3, %v580_v1, %v581_v32 }
  0xf5   : > { %v5842_v38 = vpop.permute.xlu0 %5841  ;;  %v1447_v40 = vpack.c.bf16 %v1412_v23, %v1411_v0  ;;  %v5849_v56 = vunpack.i.h.bf16 %v5847_v11  ;;  %v5848_v35 = vunpack.i.l.bf16 %v5847_v11  ;;  %v7684_v3 = vsel %vm415_vm3, %v581_v32, %v583_v16 }
  0xf6   : > { %6136 = vrot.lane.b32.xlu1 %v7471_v39, %s6852_s21  ;;  %v5844_v9 = vunpack.i.h.bf16 %v5842_v38  ;;  %v5843_v12 = vunpack.i.l.bf16 %v5842_v38  ;;  %v7690_v8 = vpack.i.bf16 %v7548_v20, %v7543_v31  ;;  %v634_v41 = vsel %vm496_vm2, %v631_v60, %v633_v47  ;;  %v6725_v38 = vld [vmem:[#allocation2 + $0x60] sm:$0xff] }
  0xf7   : > { %6131 = vrot.lane.b32.xlu0 %v7644_v10, %s6852_s21  ;;  %1733 = vmatprep.mubr.bf16.mxu0 %v1447_v40  ;;  %v6160_v31 = vpack.i.bf16 %v7684_v3, %v7681_v46  ;;  %v1484_v20 = vpack.c.bf16 %v634_v41, %v632_v44  ;;  %v1252_v49 = vsel %vm192_vm0, %v6724_v43, %v5849_v56 }
  0xf8   : > { %1734 = vmatmul.mubr.bf16.gmra.mrb[12].mxu0 %v1446_v53  ;;  %v5857_v25 = vpop.permute.xlu1 %5856  ;;  %v1350_v42 = vsel %vm192_vm0, %v7263_v22, %v5844_v9  ;;  %v1349_v0 = vsel %vm192_vm0, %v7260_v21, %v5843_v12 }
  0xf9   : > { %v5852_v5 = vpop.permute.xlu0 %5851  ;;  %v5859_v57 = vunpack.i.h.bf16 %v5857_v25  ;;  %v5858_v2 = vunpack.i.l.bf16 %v5857_v25  ;;  %5562 = vmatmul.mubr.msk.bf16.gmra.mrb[28].mxu1 %vm192_vm0, %v1484_v20  ;;  %v628_v25 = vrot.slane %v7673_v4, 1 }
  0xfa   : > { %v5854_v39 = vunpack.i.h.bf16 %v5852_v5  ;;  %v5853_v29 = vunpack.i.l.bf16 %v5852_v5  ;;  %6146 = vrot.lane.b32.xlu1 %v7536_v30, %s6853_s27  ;;  %v1251_v30 = vsel %vm192_vm0, %v6725_v38, %v5848_v35  ;;  %v626_v35 = vrot.slane %v7671_v33, 1 }
  0xfb   : > { %6141 = vrot.lane.b32.xlu0 %v7667_v6, %s6853_s27  ;;  %v1284_v16 = vsel %vm1275_vm4, %v1251_v30, %v5858_v2  ;;  %v1285_v60 = vsel %vm1275_vm4, %v1252_v49, %v5859_v57 }
  0xfc   : > { %v5867_v40 = vpop.permute.xlu1 %5866  ;;  %v1381_v21 = vsel %vm1275_vm4, %v1349_v0, %v5853_v29  ;;  %v1382_v22 = vsel %vm1275_vm4, %v1350_v42, %v5854_v39  ;;  %v6170_v39 = vpack.i.bf16 %v7586_v26, %v7583_v13  ;;  %v6698_v29 = vld [vmem:[%s9690_s2] sm:$0xff]  }
  0xfd   : > { %v5862_v23 = vpop.permute.xlu0 %5861  ;;  %v5869_v11 = vunpack.i.h.bf16 %v5867_v40  ;;  %v5868_v53 = vunpack.i.l.bf16 %v5867_v40  ;;  %5565 = vmatprep.subr.bf16.mxu1 %v6698_v29  ;;  %v6726_v40 = vld [vmem:[#allocation2 + $0x80] sm:$0xff] }
  0xfe   : > { %v5864_v28 = vunpack.i.h.bf16 %v5862_v23  ;;  %v5863_v27 = vunpack.i.l.bf16 %v5862_v23  ;;  %6156 = vrot.lane.b32.xlu1 %v7620_v7, %s6851_s15  ;;  %v625_v7 = vrot.slane %v7669_v52, 1  ;;  %v629_v23 = vsel %vm415_vm3, %v626_v35, %v628_v25  ;;  %5566 = vmatpush3.bf16.msra.mxu1 %v6698_v29 }
  0xff   : > { %6151 = vrot.lane.b32.xlu0 %v7690_v8, %s6851_s15  ;;  %v1317_v9 = vsel %vm1308_vm5, %v1284_v16, %v5868_v53  ;;  %v1318_v12 = vsel %vm1308_vm5, %v1285_v60, %v5869_v11 }
 0x100   : > { %v1413_v1 = vsel %vm1308_vm5, %v1381_v21, %v5863_v27  ;;  %v1414_v32 = vsel %vm1308_vm5, %v1382_v22, %v5864_v28  ;;  %v5877_v5 = vpop.permute.xlu1 %5876  ;;  %v1449_v56 = vpack.c.bf16 %v1318_v12, %v1317_v9  ;;  %v627_v0 = vsel %vm415_vm3, %v625_v7, %v626_v35  ;;  %v6727_v27 = vld [vmem:[#allocation2 + $0x78] sm:$0xff] }
 0x101   : > { %v5872_v37 = vpop.permute.xlu0 %5871  ;;  %v1450_v47 = vpack.c.bf16 %v1414_v32, %v1413_v1  ;;  %v5879_v41 = vunpack.i.h.bf16 %v5877_v5  ;;  %v5878_v4 = vunpack.i.l.bf16 %v5877_v5  ;;  %v6190_v30 = vpack.i.bf16 %v629_v23, %v627_v0  ;;  %v6728_v0 = vld [vmem:[#allocation2 + $0x98] sm:$0xff]  ;;  %v6729_v23 = vld [vmem:[#allocation2 + $0x90] sm:$0xff] }
 0x102   : > { %6166 = vrot.lane.b32.xlu1 %v7634_v54, %s6852_s21  ;;  %v5874_v57 = vunpack.i.h.bf16 %v5872_v37  ;;  %v5873_v2 = vunpack.i.l.bf16 %v5872_v37  ;;  %v6180_v54 = vpack.i.bf16 %v7671_v33, %v7669_v52 }
 0x103   : > { %6161 = vrot.lane.b32.xlu0 %v6160_v31, %s6852_s21  ;;  %1741 = vmatprep.mubr.bf16.mxu0 %v1450_v47  ;;  %v1254_v28 = vsel %vm192_vm0, %v6726_v40, %v5879_v41  ;;  %v1253_v11 = vsel %vm192_vm0, %v6727_v27, %v5878_v4 }
 0x104   : > { %1742 = vmatmul.mubr.bf16.gmra.mrb[16].mxu0 %v1449_v56  ;;  %v5887_v42 = vpop.permute.xlu1 %5886  ;;  %v1352_v43 = vsel %vm192_vm0, %v7300_v36, %v5874_v57  ;;  %v1351_v49 = vsel %vm192_vm0, %v7297_v59, %v5873_v2 }
 0x105   : > { %v5882_v44 = vpop.permute.xlu0 %5881  ;;  %v5889_v31 = vunpack.i.h.bf16 %v5887_v42  ;;  %v5888_v20 = vunpack.i.l.bf16 %v5887_v42 }
 0x106   : > { %v5884_v13 = vunpack.i.h.bf16 %v5882_v44  ;;  %v5883_v26 = vunpack.i.l.bf16 %v5882_v44  ;;  %6176 = vrot.lane.b32.xlu1 %v7644_v10, %s6853_s27 }
 0x107   : > { %6171 = vrot.lane.b32.xlu0 %v6170_v39, %s6853_s27  ;;  %v1286_v32 = vsel %vm1275_vm4, %v1253_v11, %v5888_v20  ;;  %v1287_v16 = vsel %vm1275_vm4, %v1254_v28, %v5889_v31 }
 0x108   : > { %v5897_v52 = vpop.permute.xlu1 %5896  ;;  %v1383_v36 = vsel %vm1275_vm4, %v1351_v49, %v5883_v26  ;;  %v1384_v10 = vsel %vm1275_vm4, %v1352_v43, %v5884_v13 }
 0x109   : > { %v5892_v38 = vpop.permute.xlu0 %5891  ;;  %v5899_v21 = vunpack.i.h.bf16 %v5897_v52  ;;  %v5898_v22 = vunpack.i.l.bf16 %v5897_v52 }
 0x10a   : > { %v5894_v33 = vunpack.i.h.bf16 %v5892_v38  ;;  %v5893_v53 = vunpack.i.l.bf16 %v5892_v38  ;;  %6186 = vrot.lane.b32.xlu1 %v7667_v6, %s6851_s15 }
 0x10b   : > { %6181 = vrot.lane.b32.xlu0 %v6180_v54, %s6851_s15  ;;  %v1319_v47 = vsel %vm1308_vm5, %v1286_v32, %v5898_v22  ;;  %v1320_v9 = vsel %vm1308_vm5, %v1287_v16, %v5899_v21 }
 0x10c   : > { %v1415_v59 = vsel %vm1308_vm5, %v1383_v36, %v5893_v53  ;;  %v1416_v1 = vsel %vm1308_vm5, %v1384_v10, %v5894_v33  ;;  %v5907_v12 = vpop.permute.xlu1 %5906  ;;  %v1452_v5 = vpack.c.bf16 %v1320_v9, %v1319_v47 }
 0x10d   : > { %v5902_v60 = vpop.permute.xlu0 %5901  ;;  %v1453_v37 = vpack.c.bf16 %v1416_v1, %v1415_v59  ;;  %v5909_v7 = vunpack.i.h.bf16 %v5907_v12  ;;  %v5908_v25 = vunpack.i.l.bf16 %v5907_v12 }
 0x10e   : > { %6196 = vrot.lane.b32.xlu1 %v7690_v8, %s6852_s21  ;;  %v5904_v6 = vunpack.i.h.bf16 %v5902_v60  ;;  %v5903_v56 = vunpack.i.l.bf16 %v5902_v60 }
 0x10f   : > { %6191 = vrot.lane.b32.xlu0 %v6190_v30, %s6852_s21  ;;  %1749 = vmatprep.mubr.bf16.mxu0 %v1453_v37  ;;  %v1256_v8 = vsel %vm192_vm0, %v6728_v0, %v5909_v7  ;;  %v1255_v13 = vsel %vm192_vm0, %v6729_v23, %v5908_v25 }
 0x110   : > { %1750 = vmatmul.mubr.bf16.gmra.mrb[20].mxu0 %v1452_v5  ;;  %v5917_v39 = vpop.permute.xlu1 %5916  ;;  %v1354_v41 = vsel %vm192_vm0, %v7322_v58, %v5904_v6  ;;  %v1353_v4 = vsel %vm192_vm0, %v7319_v55, %v5903_v56  ;;  %v6730_v5 = vld [vmem:[#allocation2 + $0xb0] sm:$0xff]  ;;  %v6731_v56 = vld [vmem:[#allocation2 + $0xa8] sm:$0xff] }
 0x111   : > { %v5912_v35 = vpop.permute.xlu0 %5911  ;;  %v5919_v2 = vunpack.i.h.bf16 %v5917_v39  ;;  %v5918_v44 = vunpack.i.l.bf16 %v5917_v39 }
 0x112   : > { %v5914_v29 = vunpack.i.h.bf16 %v5912_v35  ;;  %v5913_v57 = vunpack.i.l.bf16 %v5912_v35 }
 0x113   : > { %v1288_v30 = vsel %vm1275_vm4, %v1255_v13, %v5918_v44  ;;  %v1289_v40 = vsel %vm1275_vm4, %v1256_v8, %v5919_v2 }
 0x114   : > { %v5927_v26 = vpop.permute.xlu1 %5926  ;;  %v1385_v49 = vsel %vm1275_vm4, %v1353_v4, %v5913_v57  ;;  %v1386_v38 = vsel %vm1275_vm4, %v1354_v41, %v5914_v29 }
 0x115   : > { %v5922_v42 = vpop.permute.xlu0 %5921  ;;  %v5929_v20 = vunpack.i.h.bf16 %v5927_v26  ;;  %v5928_v43 = vunpack.i.l.bf16 %v5927_v26 }
 0x116   : > { %v5924_v54 = vunpack.i.h.bf16 %v5922_v42  ;;  %v5923_v31 = vunpack.i.l.bf16 %v5922_v42 }
 0x117   : > { %v1321_v11 = vsel %vm1308_vm5, %v1288_v30, %v5928_v43  ;;  %v1322_v52 = vsel %vm1308_vm5, %v1289_v40, %v5929_v20 }
 0x118   : > { %v1417_v58 = vsel %vm1308_vm5, %v1385_v49, %v5923_v31  ;;  %v1418_v55 = vsel %vm1308_vm5, %v1386_v38, %v5924_v54  ;;  %v5937_v33 = vpop.permute.xlu1 %5936  ;;  %v1455_v53 = vpack.c.bf16 %v1322_v52, %v1321_v11  ;;  %v6732_v52 = vld [vmem:[#allocation2 + $0xc8] sm:$0xff] }
 0x119   : > { %v5932_v28 = vpop.permute.xlu0 %5931  ;;  %v1456_v27 = vpack.c.bf16 %v1418_v55, %v1417_v58  ;;  %v5939_v10 = vunpack.i.h.bf16 %v5937_v33  ;;  %v5938_v59 = vunpack.i.l.bf16 %v5937_v33 }
 0x11a   : > { %v5934_v21 = vunpack.i.h.bf16 %v5932_v28  ;;  %v5933_v22 = vunpack.i.l.bf16 %v5932_v28 }
 0x11b   : > { %1757 = vmatprep.mubr.bf16.mxu0 %v1456_v27  ;;  %v1258_v6 = vsel %vm192_vm0, %v6730_v5, %v5939_v10  ;;  %v1257_v35 = vsel %vm192_vm0, %v6731_v56, %v5938_v59 }
 0x11c   : > { %1758 = vmatmul.mubr.bf16.gmra.mrb[24].mxu0 %v1455_v53  ;;  %v5947_v1 = vpop.permute.xlu1 %5946  ;;  %v1356_v47 = vsel %vm192_vm0, %v7342_v17, %v5934_v21  ;;  %v1355_v9 = vsel %vm192_vm0, %v7336_v14, %v5933_v22  ;;  %v6733_v53 = vld [vmem:[#allocation2 + $0xc0] sm:$0xff] }
 0x11d   : > { %v5942_v36 = vpop.permute.xlu0 %5941  ;;  %v5949_v60 = vunpack.i.h.bf16 %v5947_v1  ;;  %v5948_v37 = vunpack.i.l.bf16 %v5947_v1 }
 0x11e   : > { %v5944_v32 = vunpack.i.h.bf16 %v5942_v36  ;;  %v5943_v16 = vunpack.i.l.bf16 %v5942_v36 }
 0x11f   : > { %v1290_v41 = vsel %vm1275_vm4, %v1257_v35, %v5948_v37  ;;  %v1291_v4 = vsel %vm1275_vm4, %v1258_v6, %v5949_v60 }
 0x120   : > { %v5957_v7 = vpop.permute.xlu1 %5956  ;;  %v1387_v2 = vsel %vm1275_vm4, %v1355_v9, %v5943_v16  ;;  %v1388_v44 = vsel %vm1275_vm4, %v1356_v47, %v5944_v32 }
 0x121   : > { %v5952_v12 = vpop.permute.xlu0 %5951  ;;  %v5959_v29 = vunpack.i.h.bf16 %v5957_v7  ;;  %v5958_v57 = vunpack.i.l.bf16 %v5957_v7 }
 0x122   : > { %v5954_v25 = vunpack.i.h.bf16 %v5952_v12  ;;  %v5953_v39 = vunpack.i.l.bf16 %v5952_v12 }
 0x123   : > { %v1323_v8 = vsel %vm1308_vm5, %v1290_v41, %v5958_v57  ;;  %v1324_v23 = vsel %vm1308_vm5, %v1291_v4, %v5959_v29 }
 0x124   : > { %v1419_v17 = vsel %vm1308_vm5, %v1387_v2, %v5953_v39  ;;  %v1420_v14 = vsel %vm1308_vm5, %v1388_v44, %v5954_v25  ;;  %v5967_v13 = vpop.permute.xlu1 %5966  ;;  %v1458_v26 = vpack.c.bf16 %v1324_v23, %v1323_v8  ;;  %v6735_v23 = vld [vmem:[#allocation2 + $0xd8] sm:$0xff] }
 0x125   : > { %v5962_v42 = vpop.permute.xlu0 %5961  ;;  %v1459_v0 = vpack.c.bf16 %v1420_v14, %v1419_v17  ;;  %v5969_v43 = vunpack.i.h.bf16 %v5967_v13  ;;  %v5968_v49 = vunpack.i.l.bf16 %v5967_v13 }
 0x126   : > { %v5964_v54 = vunpack.i.h.bf16 %v5962_v42  ;;  %v5963_v31 = vunpack.i.l.bf16 %v5962_v42 }
 0x127   : > { %1765 = vmatprep.mubr.bf16.mxu0 %v1459_v0  ;;  %v1260_v33 = vsel %vm192_vm0, %v6732_v52, %v5969_v43  ;;  %v1259_v21 = vsel %vm192_vm0, %v6733_v53, %v5968_v49  ;;  %v6734_v0 = vld [vmem:[#allocation2 + $0xe0] sm:$0xff] }
 0x128   : > { %1766 = vmatmul.mubr.bf16.gmra.mrb[28].mxu0 %v1458_v26  ;;  %v5977_v38 = vpop.permute.xlu1 %5976  ;;  %v1358_v28 = vsel %vm192_vm0, %v7360_v51, %v5964_v54  ;;  %v1357_v27 = vsel %vm192_vm0, %v7357_v45, %v5963_v31 }
 0x129   : > { %v5972_v20 = vpop.permute.xlu0 %5971  ;;  %v5979_v30 = vunpack.i.h.bf16 %v5977_v38  ;;  %v5978_v40 = vunpack.i.l.bf16 %v5977_v38 }
 0x12a   : > { %v5974_v58 = vunpack.i.h.bf16 %v5972_v20  ;;  %v5973_v55 = vunpack.i.l.bf16 %v5972_v20 }
 0x12b   : > { %v1292_v60 = vsel %vm1275_vm4, %v1259_v21, %v5978_v40  ;;  %v1293_v37 = vsel %vm1275_vm4, %v1260_v33, %v5979_v30 }
 0x12c   : > { %v5987_v22 = vpop.permute.xlu1 %5986  ;;  %v1389_v32 = vsel %vm1275_vm4, %v1357_v27, %v5973_v55  ;;  %v1390_v16 = vsel %vm1275_vm4, %v1358_v28, %v5974_v58 }
 0x12d   : > { %v5982_v11 = vpop.permute.xlu0 %5981  ;;  %v5989_v59 = vunpack.i.h.bf16 %v5987_v22  ;;  %v5988_v1 = vunpack.i.l.bf16 %v5987_v22 }
 0x12e   : > { %v5984_v36 = vunpack.i.h.bf16 %v5982_v11  ;;  %v5983_v10 = vunpack.i.l.bf16 %v5982_v11 }
 0x12f   : > { %v1325_v12 = vsel %vm1308_vm5, %v1292_v60, %v5988_v1  ;;  %v1326_v5 = vsel %vm1308_vm5, %v1293_v37, %v5989_v59  ;;  %v6736_v37 = vld [vmem:[#allocation2 + $0xf8] sm:$0xff] }
 0x130   : > { %v1421_v51 = vsel %vm1308_vm5, %v1389_v32, %v5983_v10  ;;  %v1422_v45 = vsel %vm1308_vm5, %v1390_v16, %v5984_v36  ;;  %v5997_v6 = vpop.permute.xlu1 %5996  ;;  %v1461_v56 = vpack.c.bf16 %v1326_v5, %v1325_v12 }
 0x131   : > { %v5992_v47 = vpop.permute.xlu0 %5991  ;;  %v1462_v9 = vpack.c.bf16 %v1422_v45, %v1421_v51  ;;  %v5999_v39 = vunpack.i.h.bf16 %v5997_v6  ;;  %v5998_v29 = vunpack.i.l.bf16 %v5997_v6 }
 0x132   : > { %v5994_v35 = vunpack.i.h.bf16 %v5992_v47  ;;  %v5993_v7 = vunpack.i.l.bf16 %v5992_v47 }
 0x133   : > { %1773 = vmatprep.mubr.bf16.mxu0 %v1462_v9  ;;  %v1262_v8 = vsel %vm192_vm0, %v6734_v0, %v5999_v39  ;;  %v1261_v13 = vsel %vm192_vm0, %v6735_v23, %v5998_v29  ;;  %v6737_v9 = vld [vmem:[#allocation2 + $0xf0] sm:$0xff] }
 0x134   : > { %1774 = vmatmul.mubr.bf16.gmra.mrb[32].mxu0 %v1461_v56  ;;  %v6007_v57 = vpop.permute.xlu1 %6006  ;;  %v1360_v41 = vsel %vm192_vm0, %v7376_v34, %v5994_v35  ;;  %v1359_v4 = vsel %vm192_vm0, %v7370_v50, %v5993_v7 }
 0x135   : > { %v6002_v25 = vpop.permute.xlu0 %6001  ;;  %v6009_v17 = vunpack.i.h.bf16 %v6007_v57  ;;  %v6008_v14 = vunpack.i.l.bf16 %v6007_v57 }
 0x136   : > { %v6004_v2 = vunpack.i.h.bf16 %v6002_v25  ;;  %v6003_v44 = vunpack.i.l.bf16 %v6002_v25 }
 0x137   : > { %v1294_v58 = vsel %vm1275_vm4, %v1261_v13, %v6008_v14  ;;  %v1295_v55 = vsel %vm1275_vm4, %v1262_v8, %v6009_v17 }
 0x138   : > { %v6017_v26 = vpop.permute.xlu1 %6016  ;;  %v1391_v49 = vsel %vm1275_vm4, %v1359_v4, %v6003_v44  ;;  %v1392_v38 = vsel %vm1275_vm4, %v1360_v41, %v6004_v2 }
 0x139   : > { %v6012_v42 = vpop.permute.xlu0 %6011  ;;  %v6019_v20 = vunpack.i.h.bf16 %v6017_v26  ;;  %v6018_v43 = vunpack.i.l.bf16 %v6017_v26 }
 0x13a   : > { %v6014_v54 = vunpack.i.h.bf16 %v6012_v42  ;;  %v6013_v31 = vunpack.i.l.bf16 %v6012_v42 }
 0x13b   : > { %v1327_v28 = vsel %vm1308_vm5, %v1294_v58, %v6018_v43  ;;  %v1328_v27 = vsel %vm1308_vm5, %v1295_v55, %v6019_v20  ;;  %v6739_v55 = vld [vmem:[#allocation2 + $0x108] sm:$0xff] }
 0x13c   : > { %v1423_v34 = vsel %vm1308_vm5, %v1391_v49, %v6013_v31  ;;  %v1424_v50 = vsel %vm1308_vm5, %v1392_v38, %v6014_v54  ;;  %v6027_v11 = vpop.permute.xlu1 %6026  ;;  %v1464_v52 = vpack.c.bf16 %v1328_v27, %v1327_v28 }
 0x13d   : > { %v6022_v30 = vpop.permute.xlu0 %6021  ;;  %v1465_v40 = vpack.c.bf16 %v1424_v50, %v1423_v34  ;;  %v6029_v22 = vunpack.i.h.bf16 %v6027_v11  ;;  %v6028_v36 = vunpack.i.l.bf16 %v6027_v11  ;;  %v6738_v50 = vld [vmem:[#allocation2 + $0x110] sm:$0xff] }
 0x13e   : > { %v6024_v33 = vunpack.i.h.bf16 %v6022_v30  ;;  %v6023_v53 = vunpack.i.l.bf16 %v6022_v30 }
 0x13f   : > { %1781 = vmatprep.mubr.bf16.mxu0 %v1465_v40  ;;  %v1264_v47 = vsel %vm192_vm0, %v6736_v37, %v6029_v22  ;;  %v1263_v12 = vsel %vm192_vm0, %v6737_v9, %v6028_v36 }
 0x140   : > { %1782 = vmatmul.mubr.bf16.gmra.mrb[36].mxu0 %v1464_v52  ;;  %v6037_v10 = vpop.permute.xlu1 %6036  ;;  %v1362_v51 = vsel %vm192_vm0, %v7399_v61, %v6024_v33  ;;  %v1361_v45 = vsel %vm192_vm0, %v7396_v48, %v6023_v53 }
 0x141   : > { %v6032_v21 = vpop.permute.xlu0 %6031  ;;  %v6039_v32 = vunpack.i.h.bf16 %v6037_v10  ;;  %v6038_v16 = vunpack.i.l.bf16 %v6037_v10 }
 0x142   : > { %v6034_v59 = vunpack.i.h.bf16 %v6032_v21  ;;  %v6033_v1 = vunpack.i.l.bf16 %v6032_v21 }
 0x143   : > { %v1296_v29 = vsel %vm1275_vm4, %v1263_v12, %v6038_v16  ;;  %v1297_v57 = vsel %vm1275_vm4, %v1264_v47, %v6039_v32 }
 0x144   : > { %v6047_v5 = vpop.permute.xlu1 %6046  ;;  %v1393_v25 = vsel %vm1275_vm4, %v1361_v45, %v6033_v1  ;;  %v1394_v39 = vsel %vm1275_vm4, %v1362_v51, %v6034_v59 }
 0x145   : > { %v6042_v60 = vpop.permute.xlu0 %6041  ;;  %v6049_v35 = vunpack.i.h.bf16 %v6047_v5  ;;  %v6048_v7 = vunpack.i.l.bf16 %v6047_v5 }
 0x146   : > { %v6044_v6 = vunpack.i.h.bf16 %v6042_v60  ;;  %v6043_v56 = vunpack.i.l.bf16 %v6042_v60 }
 0x147   : > { %v1329_v17 = vsel %vm1308_vm5, %v1296_v29, %v6048_v7  ;;  %v1330_v14 = vsel %vm1308_vm5, %v1297_v57, %v6049_v35  ;;  %v9801_v29 = vld [vmem:[#allocation22_spill] sm:$0xff] }
 0x148   : > { %v1425_v61 = vsel %vm1308_vm5, %v1393_v25, %v6043_v56  ;;  %v1426_v48 = vsel %vm1308_vm5, %v1394_v39, %v6044_v6  ;;  %v6057_v41 = vpop.permute.xlu1 %6056  ;;  %v1467_v4 = vpack.c.bf16 %v1330_v14, %v1329_v17  ;;  %v6741_v14 = vld [vmem:[#allocation2 + $0x120] sm:$0xff] }
 0x149   : > { %v6052_v2 = vpop.permute.xlu0 %6051  ;;  %v1468_v44 = vpack.c.bf16 %v1426_v48, %v1425_v61  ;;  %v6059_v23 = vunpack.i.h.bf16 %v6057_v41  ;;  %v6058_v13 = vunpack.i.l.bf16 %v6057_v41  ;;  %v9800_v61 = vld [vmem:[#allocation23_spill] sm:$0xff] }
 0x14a   : > { %v6054_v42 = vunpack.i.h.bf16 %v6052_v2  ;;  %v6053_v0 = vunpack.i.l.bf16 %v6052_v2 }
 0x14b   : > { %1789 = vmatprep.mubr.bf16.mxu0 %v1468_v44  ;;  %v1266_v58 = vsel %vm192_vm0, %v6738_v50, %v6059_v23  ;;  %v1265_v30 = vsel %vm192_vm0, %v6739_v55, %v6058_v13  ;;  %v6740_v44 = vld [vmem:[#allocation2 + $0x128] sm:$0xff] }
 0x14c   : > { %1790 = vmatmul.mubr.bf16.gmra.mrb[40].mxu0 %v1467_v4  ;;  %v6067_v26 = vpop.permute.xlu1 %6066  ;;  %v1364_v49 = vsel %vm192_vm0, %v7421_v19, %v6054_v42  ;;  %v1363_v38 = vsel %vm192_vm0, %v7418_v62, %v6053_v0 }
 0x14d   : > { %v6062_v8 = vpop.permute.xlu0 %6061  ;;  %v6069_v20 = vunpack.i.h.bf16 %v6067_v26  ;;  %v6068_v43 = vunpack.i.l.bf16 %v6067_v26 }
 0x14e   : > { %v6064_v54 = vunpack.i.h.bf16 %v6062_v8  ;;  %v6063_v31 = vunpack.i.l.bf16 %v6062_v8 }
 0x14f   : > { %v1298_v21 = vsel %vm1275_vm4, %v1265_v30, %v6068_v43  ;;  %v1299_v22 = vsel %vm1275_vm4, %v1266_v58, %v6069_v20 }
 0x150   : > { %v6077_v40 = vpop.permute.xlu1 %6076  ;;  %v1395_v33 = vsel %vm1275_vm4, %v1363_v38, %v6063_v31  ;;  %v1396_v53 = vsel %vm1275_vm4, %v1364_v49, %v6064_v54  ;;  %v7839_v37 = vpop.f32.mrb[0].mxu1 }
 0x151   : > { %v6072_v34 = vpop.permute.xlu0 %6071  ;;  %v6079_v11 = vunpack.i.h.bf16 %v6077_v40  ;;  %v6078_v52 = vunpack.i.l.bf16 %v6077_v40  ;;  %v7841_v5 = vpop.f32.mrb[1].mxu1 }
 0x152   : > { %v6074_v28 = vunpack.i.h.bf16 %v6072_v34  ;;  %v6073_v27 = vunpack.i.l.bf16 %v6072_v34  ;;  %v7843_v35 = vpop.f32.mrb[2].mxu1 }
 0x153   : > { %v1331_v59 = vsel %vm1308_vm5, %v1298_v21, %v6078_v52  ;;  %v1332_v1 = vsel %vm1308_vm5, %v1299_v22, %v6079_v11  ;;  %v7845_v39 = vpop.f32.mrb[3].mxu1 }
 0x154   : > { %v1427_v19 = vsel %vm1308_vm5, %v1395_v33, %v6073_v27  ;;  %v1428_v62 = vsel %vm1308_vm5, %v1396_v53, %v6074_v28  ;;  %v6087_v32 = vpop.permute.xlu1 %6086  ;;  %v1470_v16 = vpack.c.bf16 %v1332_v1, %v1331_v59 }
 0x155   : > { %v6082_v36 = vpop.permute.xlu0 %6081  ;;  %v1471_v10 = vpack.c.bf16 %v1428_v62, %v1427_v19  ;;  %v6089_v47 = vunpack.i.h.bf16 %v6087_v32  ;;  %v6088_v9 = vunpack.i.l.bf16 %v6087_v32 }
 0x156   : > { %v6084_v51 = vunpack.i.h.bf16 %v6082_v36  ;;  %v6083_v45 = vunpack.i.l.bf16 %v6082_v36 }
 0x157   : > { %1797 = vmatprep.mubr.bf16.mxu0 %v1471_v10  ;;  %v1268_v17 = vsel %vm192_vm0, %v6740_v44, %v6089_v47  ;;  %v1267_v41 = vsel %vm192_vm0, %v6741_v14, %v6088_v9 }
 0x158   : > { %1798 = vmatmul.mubr.bf16.gmra.mrb[44].mxu0 %v1470_v16  ;;  %v6097_v12 = vpop.permute.xlu1 %6096  ;;  %v1366_v48 = vsel %vm192_vm0, %v9800_v61, %v6084_v51  ;;  %v1365_v57 = vsel %vm192_vm0, %v9801_v29, %v6083_v45  ;;  %v7861_v58 = vpop.f32.mrb[4].mxu1  ;;  %v6742_v51 = vld [vmem:[#allocation2 + $0x140] sm:$0xff] }
 0x159   : > { %v6092_v60 = vpop.permute.xlu0 %6091  ;;  %v6099_v7 = vunpack.i.h.bf16 %v6097_v12  ;;  %v6098_v25 = vunpack.i.l.bf16 %v6097_v12  ;;  %v7863_v40 = vpop.f32.mrb[5].mxu1 }
 0x15a   : > { %v6094_v6 = vunpack.i.h.bf16 %v6092_v60  ;;  %v6093_v56 = vunpack.i.l.bf16 %v6092_v60  ;;  %v7865_v28 = vpop.f32.mrb[6].mxu1  ;;  %v6743_v60 = vld [vmem:[#allocation2 + $0x138] sm:$0xff] }
 0x15b   : > { %v1300_v20 = vsel %vm1275_vm4, %v1267_v41, %v6098_v25  ;;  %v1301_v43 = vsel %vm1275_vm4, %v1268_v17, %v6099_v7  ;;  %v7867_v27 = vpop.f32.mrb[7].mxu1 }
 0x15c   : > { %v6107_v4 = vpop.permute.xlu1 %6106  ;;  %v1397_v13 = vsel %vm1275_vm4, %v1365_v57, %v6093_v56  ;;  %v1398_v26 = vsel %vm1275_vm4, %v1366_v48, %v6094_v6 }
 0x15d   : > { %v6102_v2 = vpop.permute.xlu0 %6101  ;;  %v6109_v8 = vunpack.i.h.bf16 %v6107_v4  ;;  %v6108_v23 = vunpack.i.l.bf16 %v6107_v4 }
 0x15e   : > { %v6104_v42 = vunpack.i.h.bf16 %v6102_v2  ;;  %v6103_v0 = vunpack.i.l.bf16 %v6102_v2 }
 0x15f   : > { %v1333_v34 = vsel %vm1308_vm5, %v1300_v20, %v6108_v23  ;;  %v1334_v50 = vsel %vm1308_vm5, %v1301_v43, %v6109_v8 }
 0x160   : > { %v1429_v54 = vsel %vm1308_vm5, %v1397_v13, %v6103_v0  ;;  %v1430_v31 = vsel %vm1308_vm5, %v1398_v26, %v6104_v42  ;;  %v6117_v55 = vpop.permute.xlu1 %6116  ;;  %v1473_v30 = vpack.c.bf16 %v1334_v50, %v1333_v34  ;;  %v7873_v16 = vpop.f32.mrb[8].mxu1 }
 0x161   : > { %v6112_v49 = vpop.permute.xlu0 %6111  ;;  %v1474_v38 = vpack.c.bf16 %v1430_v31, %v1429_v54  ;;  %v6119_v53 = vunpack.i.h.bf16 %v6117_v55  ;;  %v6118_v19 = vunpack.i.l.bf16 %v6117_v55  ;;  %v7877_v56 = vpop.f32.mrb[9].mxu1 }
 0x162   : > { %v6114_v11 = vunpack.i.h.bf16 %v6112_v49  ;;  %v6113_v52 = vunpack.i.l.bf16 %v6112_v49  ;;  %v7881_v61 = vpop.f32.mrb[10].mxu1 }
 0x163   : > { %1805 = vmatprep.mubr.bf16.mxu0 %v1474_v38  ;;  %v1270_v45 = vsel %vm192_vm0, %v6742_v51, %v6119_v53  ;;  %v1269_v47 = vsel %vm192_vm0, %v6743_v60, %v6118_v19  ;;  %v7887_v44 = vpop.f32.mrb[11].mxu1  ;;  %v6744_v53 = vld [vmem:[#allocation2 + $0x158] sm:$0xff] }
 0x164   : > { %1806 = vmatmul.mubr.bf16.gmra.mrb[48].mxu0 %v1473_v30  ;;  %v6127_v62 = vpop.permute.xlu1 %6126  ;;  %v1368_v59 = vsel %vm192_vm0, %v7483_v24, %v6114_v11  ;;  %v1367_v1 = vsel %vm192_vm0, %v7480_v15, %v6113_v52 }
 0x165   : > { %v6122_v33 = vpop.permute.xlu0 %6121  ;;  %v6129_v36 = vunpack.i.h.bf16 %v6127_v62  ;;  %v6128_v10 = vunpack.i.l.bf16 %v6127_v62  ;;  %v6745_v62 = vld [vmem:[#allocation2 + $0x150] sm:$0xff] }
 0x166   : > { %v6124_v21 = vunpack.i.h.bf16 %v6122_v33  ;;  %v6123_v22 = vunpack.i.l.bf16 %v6122_v33 }
 0x167   : > { %v1302_v57 = vsel %vm1275_vm4, %v1269_v47, %v6128_v10  ;;  %v1303_v2 = vsel %vm1275_vm4, %v1270_v45, %v6129_v36 }
 0x168   : > { %v6137_v9 = vpop.permute.xlu1 %6136  ;;  %v1399_v24 = vsel %vm1275_vm4, %v1367_v1, %v6123_v22  ;;  %v1400_v15 = vsel %vm1275_vm4, %v1368_v59, %v6124_v21 }
 0x169   : > { %v6132_v32 = vpop.permute.xlu0 %6131  ;;  %v6139_v7 = vunpack.i.h.bf16 %v6137_v9  ;;  %v6138_v25 = vunpack.i.l.bf16 %v6137_v9 }
 0x16a   : > { %v6134_v12 = vunpack.i.h.bf16 %v6132_v32  ;;  %v6133_v6 = vunpack.i.l.bf16 %v6132_v32 }
 0x16b   : > { %v1335_v41 = vsel %vm1308_vm5, %v1302_v57, %v6138_v25  ;;  %v1336_v4 = vsel %vm1308_vm5, %v1303_v2, %v6139_v7 }
 0x16c   : > { %v1431_v48 = vsel %vm1308_vm5, %v1399_v24, %v6133_v6  ;;  %v1432_v29 = vsel %vm1308_vm5, %v1400_v15, %v6134_v12  ;;  %v6147_v42 = vpop.permute.xlu1 %6146  ;;  %v1476_v0 = vpack.c.bf16 %v1336_v4, %v1335_v41  ;;  %v7891_v20 = vpop.f32.mrb[12].mxu1 }
 0x16d   : > { %v6142_v17 = vpop.permute.xlu0 %6141  ;;  %v1477_v14 = vpack.c.bf16 %v1432_v29, %v1431_v48  ;;  %v6149_v26 = vunpack.i.h.bf16 %v6147_v42  ;;  %v6148_v54 = vunpack.i.l.bf16 %v6147_v42  ;;  %v7893_v38 = vpop.f32.mrb[13].mxu1 }
 0x16e   : > { %v6144_v8 = vunpack.i.h.bf16 %v6142_v17  ;;  %v6143_v23 = vunpack.i.l.bf16 %v6142_v17  ;;  %v7895_v55 = vpop.f32.mrb[14].mxu1 }
 0x16f   : > { %1813 = vmatprep.mubr.bf16.mxu0 %v1477_v14  ;;  %v7901_v33 = vpop.f32.mrb[15].mxu1  ;;  %v1272_v19 = vsel %vm192_vm0, %v6744_v53, %v6149_v26  ;;  %v1271_v21 = vsel %vm192_vm0, %v6745_v62, %v6148_v54  ;;  %v6747_v26 = vld [vmem:[#allocation2 + $0x168] sm:$0xff] }
 0x170   : > { %1814 = vmatmul.mubr.bf16.gmra.mrb[52].mxu0 %v1476_v0  ;;  %v6157_v31 = vpop.permute.xlu1 %6156  ;;  %v1370_v30 = vsel %vm192_vm0, %v7628_v63, %v6144_v8  ;;  %v1369_v11 = vsel %vm192_vm0, %v7625_v18, %v6143_v23  ;;  %v6746_v23 = vld [vmem:[#allocation2 + $0x170] sm:$0xff] }
 0x171   : > { %v6152_v13 = vpop.permute.xlu0 %6151  ;;  %v6159_v34 = vunpack.i.h.bf16 %v6157_v31  ;;  %v6158_v50 = vunpack.i.l.bf16 %v6157_v31 }
 0x172   : > { %v6154_v43 = vunpack.i.h.bf16 %v6152_v13  ;;  %v6153_v49 = vunpack.i.l.bf16 %v6152_v13 }
 0x173   : > { %v1304_v45 = vsel %vm1275_vm4, %v1271_v21, %v6158_v50  ;;  %v1305_v60 = vsel %vm1275_vm4, %v1272_v19, %v6159_v34 }
 0x174   : > { %v6167_v22 = vpop.permute.xlu1 %6166  ;;  %v1401_v32 = vsel %vm1275_vm4, %v1369_v11, %v6153_v49  ;;  %v1402_v63 = vsel %vm1275_vm4, %v1370_v30, %v6154_v43 }
 0x175   : > { %v6162_v52 = vpop.permute.xlu0 %6161  ;;  %v6169_v59 = vunpack.i.h.bf16 %v6167_v22  ;;  %v6168_v1 = vunpack.i.l.bf16 %v6167_v22 }
 0x176   : > { %v6164_v36 = vunpack.i.h.bf16 %v6162_v52  ;;  %v6163_v10 = vunpack.i.l.bf16 %v6162_v52 }
 0x177   : > { %v1337_v12 = vsel %vm1308_vm5, %v1304_v45, %v6168_v1  ;;  %v1338_v6 = vsel %vm1308_vm5, %v1305_v60, %v6169_v59 }
 0x178   : > { %v1433_v18 = vsel %vm1308_vm5, %v1401_v32, %v6163_v10  ;;  %v1434_v51 = vsel %vm1308_vm5, %v1402_v63, %v6164_v36  ;;  %v6177_v7 = vpop.permute.xlu1 %6176  ;;  %v1479_v25 = vpack.c.bf16 %v1338_v6, %v1337_v12 }
 0x179   : > { %v6172_v47 = vpop.permute.xlu0 %6171  ;;  %v1480_v9 = vpack.c.bf16 %v1434_v51, %v1433_v18  ;;  %v6179_v29 = vunpack.i.h.bf16 %v6177_v7  ;;  %v6178_v57 = vunpack.i.l.bf16 %v6177_v7 }
 0x17a   : > { %v6174_v24 = vunpack.i.h.bf16 %v6172_v47  ;;  %v6173_v15 = vunpack.i.l.bf16 %v6172_v47 }
 0x17b   : > { %1821 = vmatprep.mubr.bf16.mxu0 %v1480_v9  ;;  %v1274_v13 = vsel %vm192_vm0, %v6746_v23, %v6179_v29  ;;  %v1273_v54 = vsel %vm192_vm0, %v6747_v26, %v6178_v57 }
 0x17c   : > { %1822 = vmatmul.mubr.bf16.gmra.mrb[56].mxu0 %v1479_v25  ;;  %v6187_v2 = vpop.permute.xlu1 %6186  ;;  %v1372_v42 = vsel %vm192_vm0, %v7684_v3, %v6174_v24  ;;  %v1371_v0 = vsel %vm192_vm0, %v7681_v46, %v6173_v15 }
 0x17d   : > { %v6182_v48 = vpop.permute.xlu0 %6181  ;;  %v6189_v41 = vunpack.i.h.bf16 %v6187_v2  ;;  %v6188_v4 = vunpack.i.l.bf16 %v6187_v2 }
 0x17e   : > { %v6184_v17 = vunpack.i.h.bf16 %v6182_v48  ;;  %v6183_v14 = vunpack.i.l.bf16 %v6182_v48 }
 0x17f   : > { %v1306_v52 = vsel %vm1275_vm4, %v1273_v54, %v6188_v4  ;;  %v1307_v53 = vsel %vm1275_vm4, %v1274_v13, %v6189_v41 }
 0x180   : > { %v6197_v31 = vpop.permute.xlu1 %6196  ;;  %v1403_v30 = vsel %vm1275_vm4, %v1371_v0, %v6183_v14  ;;  %v1404_v11 = vsel %vm1275_vm4, %v1372_v42, %v6184_v17 }
 0x181   : > { %v6192_v8 = vpop.permute.xlu0 %6191  ;;  %v6199_v34 = vunpack.i.h.bf16 %v6197_v31  ;;  %v6198_v50 = vunpack.i.l.bf16 %v6197_v31 }
 0x182   : > { %v6194_v43 = vunpack.i.h.bf16 %v6192_v8  ;;  %v6193_v49 = vunpack.i.l.bf16 %v6192_v8 }
 0x183   : > { %v1339_v62 = vsel %vm1308_vm5, %v1306_v52, %v6198_v50  ;;  %v1340_v21 = vsel %vm1308_vm5, %v1307_v53, %v6199_v34 }
 0x184   : > { %v1435_v3 = vsel %vm1308_vm5, %v1403_v30, %v6193_v49  ;;  %v1436_v46 = vsel %vm1308_vm5, %v1404_v11, %v6194_v43  ;;  %v1482_v22 = vpack.c.bf16 %v1340_v21, %v1339_v62  ;;  %v7927_v36 = vpop.f32.mrb[16].mxu1 }
 0x185   : > { %v1483_v19 = vpack.c.bf16 %v1436_v46, %v1435_v3  ;;  %v7929_v10 = vpop.f32.mrb[17].mxu1 }
 0x186   : > { %v7931_v59 = vpop.f32.mrb[18].mxu1 }
 0x187   : > { %1829 = vmatprep.mubr.bf16.mxu0 %v1483_v19  ;;  %v7933_v1 = vpop.f32.mrb[19].mxu1 }
 0x188   : > { %1830 = vmatmul.mubr.bf16.gmra.mrb[60].mxu0 %v1482_v22 }
 0x19d   : > { %v7935_v32 = vpop.f32.mrb[20].mxu1 }
 0x19e   : > { %v7937_v63 = vpop.f32.mrb[21].mxu1 }
 0x19f   : > { %v7939_v18 = vpop.f32.mrb[22].mxu1 }
 0x1a0   : > { %v7941_v51 = vpop.f32.mrb[23].mxu1 }
 0x1af   : > { %v5251_v45 = vpop.f32.mrb[0].mxu0 }
 0x1b0   : > { %v5252_v60 = vpop.f32.mrb[1].mxu0 }
 0x1b1   : > { %v5253_v47 = vadd.f32 %v5252_v60, %v5251_v45  ;;  %v5254_v9 = vpop.f32.mrb[2].mxu0 }
 0x1b2   : > { %v5255_v12 = vpop.f32.mrb[3].mxu0 }
 0x1b3   : > { %v5256_v6 = vadd.f32 %v5255_v12, %v5254_v9  ;;  %v1873_v7 = vadd.f32 %v5253_v47, %v7841_v5 }
 0x1b5   : > { %v1876_v25 = vadd.f32 %v5256_v6, %v7845_v39  ;;  %v1999_v24 = vmax.f32 %v1873_v7, 0.0 }
 0x1b7   : > { %v2000_v15 = vmax.f32 %v1876_v25, 0.0 }
 0x1b8   : > { %v5257_v48 = vpop.f32.mrb[4].mxu0 }
 0x1b9   : > { %v5258_v29 = vpop.f32.mrb[5].mxu0  ;;  %v2031_v2 = vpack.c.bf16 %v2000_v15, %v1999_v24 }
 0x1ba   : > { %v7945_v57 = vpop.f32.mrb[24].mxu1  ;;  %v5259_v17 = vadd.f32 %v5258_v29, %v5257_v48  ;;  %v5260_v14 = vpop.f32.mrb[6].mxu0 }
 0x1bb   : > { %v7947_v41 = vpop.f32.mrb[25].mxu1  ;;  %v5261_v4 = vpop.f32.mrb[7].mxu0  ;;  %5567 = vmatprep.mubr.msk.bf16.mxu1 %vm2055_vm6, %v2031_v2 }
 0x1bc   : > { %v7949_v42 = vpop.f32.mrb[26].mxu1  ;;  %v1881_v0 = vadd.f32 %v7839_v37, %v5259_v17  ;;  %v5262_v5 = vadd.f32 %v5261_v4, %v5260_v14 }
 0x1bd   : > { %v7953_v39 = vpop.f32.mrb[27].mxu1 }
 0x1be   : > { %v1884_v8 = vadd.f32 %v7843_v35, %v5262_v5  ;;  %v2001_v23 = vmax.f32 %v1881_v0, 0.0 }
 0x1c0   : > { %v2002_v13 = vmax.f32 %v1884_v8, 0.0  ;;  %v5263_v26 = vpop.f32.mrb[8].mxu0 }
 0x1c1   : > { %v5264_v54 = vpop.f32.mrb[9].mxu0 }
 0x1c2   : > { %v2032_v31 = vpack.c.bf16 %v2002_v13, %v2001_v23  ;;  %v5265_v43 = vadd.f32 %v5264_v54, %v5263_v26  ;;  %v5266_v49 = vpop.f32.mrb[10].mxu0 }
 0x1c3   : > { %v5267_v34 = vpop.f32.mrb[11].mxu0 }
 0x1c4   : > { %v5268_v50 = vadd.f32 %v5267_v34, %v5266_v49  ;;  %v1889_v30 = vadd.f32 %v5265_v43, %v7863_v40  ;;  %5568 = vmatmul.mubr.msk.bf16.vlgmr.msra.gmra.mrb[32].mxu1 %vm2055_vm6, %v2032_v31 }
 0x1c6   : > { %v1892_v37 = vadd.f32 %v5268_v50, %v7867_v27  ;;  %v2003_v11 = vmax.f32 %v1889_v30, 0.0 }
 0x1c8   : > { %v2004_v3 = vmax.f32 %v1892_v37, 0.0 }
 0x1ca   : > { %v2033_v46 = vpack.c.bf16 %v2004_v3, %v2003_v11 }
 0x1cb   : > { %v5269_v52 = vpop.f32.mrb[12].mxu0 }
 0x1cc   : > { %v5270_v35 = vpop.f32.mrb[13].mxu0  ;;  %5571 = vmatprep.mubr.msk.bf16.mxu1 %vm2055_vm6, %v2033_v46  ;;  %v7962_v40 = vpop.f32.mrb[28].mxu1 }
 0x1cd   : > { %v5271_v53 = vadd.f32 %v5270_v35, %v5269_v52  ;;  %v5272_v19 = vpop.f32.mrb[14].mxu0  ;;  %v7964_v27 = vpop.f32.mrb[29].mxu1 }
 0x1ce   : > { %v5273_v62 = vpop.f32.mrb[15].mxu0  ;;  %v7966_v9 = vpop.f32.mrb[30].mxu1 }
 0x1cf   : > { %v1897_v21 = vadd.f32 %v7861_v58, %v5271_v53  ;;  %v5274_v22 = vadd.f32 %v5273_v62, %v5272_v19  ;;  %v7968_v6 = vpop.f32.mrb[31].mxu1 }
 0x1d1   : > { %v1900_v45 = vadd.f32 %v7865_v28, %v5274_v22  ;;  %v2005_v60 = vmax.f32 %v1897_v21, 0.0 }
 0x1d3   : > { %v2006_v47 = vmax.f32 %v1900_v45, 0.0 }
 0x1d5   : > { %v2034_v12 = vpack.c.bf16 %v2006_v47, %v2005_v60 }
 0x1d7   : > { %v5275_v7 = vpop.f32.mrb[16].mxu0  ;;  %5572 = vmatmul.mubr.msk.bf16.gmra.mrb[36].mxu1 %vm2055_vm6, %v2034_v12 }
 0x1d8   : > { %v5276_v25 = vpop.f32.mrb[17].mxu0 }
 0x1d9   : > { %v5277_v24 = vadd.f32 %v5276_v25, %v5275_v7  ;;  %v5278_v58 = vpop.f32.mrb[18].mxu0 }
 0x1da   : > { %v5279_v15 = vpop.f32.mrb[19].mxu0 }
 0x1db   : > { %v5280_v48 = vadd.f32 %v5279_v15, %v5278_v58  ;;  %v1905_v28 = vadd.f32 %v5277_v24, %v7877_v56 }
 0x1dd   : > { %v1908_v29 = vadd.f32 %v5280_v48, %v7887_v44  ;;  %v2007_v2 = vmax.f32 %v1905_v28, 0.0 }
 0x1df   : > { %v2008_v17 = vmax.f32 %v1908_v29, 0.0 }
 0x1e1   : > { %v2035_v14 = vpack.c.bf16 %v2008_v17, %v2007_v2 }
 0x1e3   : > { %v5281_v4 = vpop.f32.mrb[20].mxu0  ;;  %5575 = vmatprep.mubr.msk.bf16.mxu1 %vm2055_vm6, %v2035_v14 }
 0x1e4   : > { %v5282_v0 = vpop.f32.mrb[21].mxu0 }
 0x1e5   : > { %v5283_v5 = vadd.f32 %v5282_v0, %v5281_v4  ;;  %v5284_v8 = vpop.f32.mrb[22].mxu0 }
 0x1e6   : > { %v5285_v23 = vpop.f32.mrb[23].mxu0 }
 0x1e7   : > { %v1913_v13 = vadd.f32 %v7873_v16, %v5283_v5  ;;  %v5286_v26 = vadd.f32 %v5285_v23, %v5284_v8  ;;  %v7989_v23 = vld [vmem:[%s6962_s28] sm:$0xff] }
 0x1e8   : > { %281 = vst.msk [vmem:[#allocation2 + $0x19] sm:$0xff] %vm192_vm0, %v7989_v23 }
 0x1e9   : > { %v1916_v54 = vadd.f32 %v7881_v61, %v5286_v26  ;;  %v2009_v31 = vmax.f32 %v1913_v13, 0.0  ;;  %v7994_v13 = vld [vmem:[%s6962_s28 + $0x8] sm:$0xff]  ;;  %v2329_v26 = vld [vmem:[#allocation2] sm:$0xff] }
 0x1ea   : > { %282 = vst.msk [vmem:[#allocation2 + $0x21] sm:$0xff] %vm192_vm0, %v7994_v13 }
 0x1eb   : > { %v2010_v43 = vmax.f32 %v1916_v54, 0.0  ;;  %v2330_v54 = vld [vmem:[#allocation2 + $0x8] sm:$0xff] }
 0x1ed   : > { %v2036_v56 = vpack.c.bf16 %v2010_v43, %v2009_v31  ;;  %v2331_v31 = vld [vmem:[#allocation2 + $0x10] sm:$0x3]  ;;  %v2431_v43 = vrot.slane %v2329_v26, 1 }
 0x1ef   : > { %v5287_v49 = vpop.f32.mrb[24].mxu0  ;;  %5576 = vmatmul.mubr.msk.bf16.gmra.mrb[40].mxu1 %vm2055_vm6, %v2036_v56 }
 0x1f0   : > { %v5288_v44 = vpop.f32.mrb[25].mxu0 }
 0x1f1   : > { %v5289_v34 = vadd.f32 %v5288_v44, %v5287_v49  ;;  %v5290_v50 = vpop.f32.mrb[26].mxu0  ;;  %v2434_v49 = vrot.slane %v2331_v31, 1 }
 0x1f2   : > { %v5291_v30 = vpop.f32.mrb[27].mxu0 }
 0x1f3   : > { %v5292_v37 = vadd.f32 %v5291_v30, %v5290_v50  ;;  %v1921_v11 = vadd.f32 %v5289_v34, %v7893_v38  ;;  %v2514_v30 = vrot.slane %v2331_v31, 2 }
 0x1f5   : > { %v1924_v3 = vadd.f32 %v5292_v37, %v7901_v33  ;;  %v2011_v46 = vmax.f32 %v1921_v11, 0.0  ;;  %v2511_v11 = vrot.slane %v2329_v26, 2 }
 0x1f7   : > { %v2012_v16 = vmax.f32 %v1924_v3, 0.0  ;;  %v2512_v3 = vrot.slane %v2330_v54, 2 }
 0x1f9   : > { %v2037_v52 = vpack.c.bf16 %v2012_v16, %v2011_v46 }
 0x1fb   : > { %v5293_v35 = vpop.f32.mrb[28].mxu0  ;;  %5579 = vmatprep.mubr.msk.bf16.mxu1 %vm2055_vm6, %v2037_v52 }
 0x1fc   : > { %v5294_v61 = vpop.f32.mrb[29].mxu0 }
 0x1fd   : > { %v5295_v53 = vadd.f32 %v5294_v61, %v5293_v35  ;;  %v5296_v19 = vpop.f32.mrb[30].mxu0  ;;  %v2513_v35 = vsel %vm496_vm2, %v2511_v11, %v2512_v3  ;;  %v2515_v61 = vsel %vm496_vm2, %v2512_v3, %v2514_v30 }
 0x1fe   : > { %v5297_v62 = vpop.f32.mrb[31].mxu0 }
 0x1ff   : > { %v1929_v21 = vadd.f32 %v7891_v20, %v5295_v53  ;;  %v5298_v22 = vadd.f32 %v5297_v62, %v5296_v19  ;;  %v6205_v62 = vpack.i.bf16 %v2515_v61, %v2513_v35 }
 0x201   : > { %v1932_v45 = vadd.f32 %v7895_v55, %v5298_v22  ;;  %v2013_v60 = vmax.f32 %v1929_v21, 0.0 }
 0x203   : > { %v2014_v47 = vmax.f32 %v1932_v45, 0.0 }
 0x205   : > { %v2038_v38 = vpack.c.bf16 %v2014_v47, %v2013_v60 }
 0x207   : > { %v5299_v12 = vpop.f32.mrb[32].mxu0  ;;  %5580 = vmatmul.mubr.msk.bf16.gmra.mrb[44].mxu1 %vm2055_vm6, %v2038_v38 }
 0x208   : > { %v5300_v33 = vpop.f32.mrb[33].mxu0 }
 0x209   : > { %v5301_v7 = vadd.f32 %v5300_v33, %v5299_v12  ;;  %v5302_v25 = vpop.f32.mrb[34].mxu0  ;;  %v8009_v12 = vld [vmem:[%s6962_s28 + $0x20] sm:$0xff] }
 0x20a   : > { %v5303_v24 = vpop.f32.mrb[35].mxu0  ;;  %285 = vst.msk [vmem:[#allocation2 + $0x49] sm:$0xff] %vm192_vm0, %v8009_v12 }
 0x20b   : > { %v5304_v58 = vadd.f32 %v5303_v24, %v5302_v25  ;;  %v1937_v15 = vadd.f32 %v5301_v7, %v7929_v10  ;;  %v8015_v24 = vld [vmem:[%s6962_s28 + $0x28] sm:$0xff] }
 0x20c   : > { %286 = vst.msk [vmem:[#allocation2 + $0x51] sm:$0xff] %vm192_vm0, %v8015_v24 }
 0x20d   : > { %v1940_v48 = vadd.f32 %v5304_v58, %v7933_v1  ;;  %v2015_v20 = vmax.f32 %v1937_v15, 0.0 }
 0x20f   : > { %v2016_v28 = vmax.f32 %v1940_v48, 0.0 }
 0x211   : > { %v2039_v55 = vpack.c.bf16 %v2016_v28, %v2015_v20  ;;  %v8023_v28 = vld [vmem:[%s9689_s1 + $0x110] sm:$0xff]  }
 0x212   : > { %5599 = vmatprep.subr.bf16.mxu0 %v8023_v28 }
 0x213   : > { %v5305_v29 = vpop.f32.mrb[36].mxu0  ;;  %5583 = vmatprep.mubr.msk.bf16.mxu1 %vm2055_vm6, %v2039_v55  ;;  %5600 = vmatpush3.bf16.msra.mxu0 %v8023_v28 }
 0x214   : > { %v5306_v2 = vpop.f32.mrb[37].mxu0 }
 0x215   : > { %v5307_v17 = vadd.f32 %v5306_v2, %v5305_v29  ;;  %v5308_v14 = vpop.f32.mrb[38].mxu0 }
 0x216   : > { %v5309_v4 = vpop.f32.mrb[39].mxu0 }
 0x217   : > { %v1945_v0 = vadd.f32 %v7927_v36, %v5307_v17  ;;  %v5310_v5 = vadd.f32 %v5309_v4, %v5308_v14  ;;  %v2432_v36 = vrot.slane %v2330_v54, 1 }
 0x219   : > { %v1948_v8 = vadd.f32 %v7931_v59, %v5310_v5  ;;  %v2017_v10 = vmax.f32 %v1945_v0, 0.0  ;;  %v2433_v59 = vsel %vm415_vm3, %v2431_v43, %v2432_v36  ;;  %v2435_v34 = vsel %vm415_vm3, %v2432_v36, %v2434_v49  ;;  %v8036_v49 = vld [vmem:[%s6962_s28 + $0x40] sm:$0xff] }
 0x21a   : > { %v6200_v37 = vpack.i.bf16 %v2435_v34, %v2433_v59  ;;  %289 = vst.msk [vmem:[#allocation2 + $0x79] sm:$0xff] %vm192_vm0, %v8036_v49 }
 0x21b   : > { %v2018_v1 = vmax.f32 %v1948_v8, 0.0 }
 0x21c   : > { %6201 = vrot.lane.b32.xlu1 %v6200_v37, %s6853_s27 }
 0x21d   : > { %v2040_v56 = vpack.c.bf16 %v2018_v1, %v2017_v10 }
 0x21f   : > { %v5311_v44 = vpop.f32.mrb[40].mxu0  ;;  %5584 = vmatmul.mubr.msk.bf16.gmra.mrb[48].mxu1 %vm2055_vm6, %v2040_v56 }
 0x220   : > { %v5312_v50 = vpop.f32.mrb[41].mxu0  ;;  %6206 = vrot.lane.b32.xlu1 %v6205_v62, %s6851_s15 }
 0x221   : > { %v5313_v46 = vadd.f32 %v5312_v50, %v5311_v44  ;;  %v5314_v16 = vpop.f32.mrb[42].mxu0 }
 0x222   : > { %v5315_v52 = vpop.f32.mrb[43].mxu0 }
 0x223   : > { %v5316_v53 = vadd.f32 %v5315_v52, %v5314_v16  ;;  %v1953_v19 = vadd.f32 %v5313_v46, %v7937_v63 }
 0x225   : > { %v1956_v21 = vadd.f32 %v5316_v53, %v7941_v51  ;;  %v2019_v22 = vmax.f32 %v1953_v19, 0.0 }
 0x227   : > { %v2020_v45 = vmax.f32 %v1956_v21, 0.0 }
 0x229   : > { %v2041_v60 = vpack.c.bf16 %v2020_v45, %v2019_v22 }
 0x22b   : > { %v5317_v47 = vpop.f32.mrb[44].mxu0  ;;  %5587 = vmatprep.mubr.msk.bf16.mxu1 %vm2055_vm6, %v2041_v60  ;;  %v8058_v60 = vld [vmem:[%s6962_s28 + $0x68] sm:$0xff] }
 0x22c   : > { %v5318_v38 = vpop.f32.mrb[45].mxu0  ;;  %294 = vst.msk [vmem:[#allocation2 + $0xb1] sm:$0xff] %vm192_vm0, %v8058_v60 }
 0x22d   : > { %v5319_v33 = vadd.f32 %v5318_v38, %v5317_v47  ;;  %v5320_v7 = vpop.f32.mrb[46].mxu0 }
 0x22e   : > { %v5321_v63 = vpop.f32.mrb[47].mxu0 }
 0x22f   : > { %v1961_v25 = vadd.f32 %v7935_v32, %v5319_v33  ;;  %v5322_v51 = vadd.f32 %v5321_v63, %v5320_v7  ;;  %v8069_v7 = vld [vmem:[%s6962_s28 + $0x88] sm:$0xff] }
 0x230   : > { %298 = vst.msk [vmem:[#allocation2 + $0xe1] sm:$0xff] %vm192_vm0, %v8069_v7  ;;  %v8079_v63 = vld [vmem:[%s6962_s28 + $0xa8] sm:$0xff] }
 0x231   : > { %v1964_v58 = vadd.f32 %v7939_v18, %v5322_v51  ;;  %v2021_v15 = vmax.f32 %v1961_v25, 0.0  ;;  %v6700_v18 = vld [vmem:[%s9689_s1 + $0x118] sm:$0xff]   ;;  %302 = vst.msk [vmem:[#allocation2 + $0x111] sm:$0xff] %vm192_vm0, %v8079_v63  ;;  %v6701_v25 = vld [vmem:[%s9689_s1 + $0xd0] sm:$0xff]  }
 0x232   : > { %5601 = vmatprep.subr.bf16.mxu0 %v6700_v18  ;;  %v6702_v51 = vld [vmem:[%s9689_s1 + $0x90] sm:$0xff]   ;;  %5382 = vmatprep.subr.bf16.mxu1 %v6701_v25  ;;  %v6714_v25 = vld [vmem:[%s9689_s1 + $0xc0] sm:$0xff]  }
 0x233   : > { %v2022_v48 = vmax.f32 %v1964_v58, 0.0  ;;  %5602 = vmatpush3.bf16.msra.mxu0 %v6700_v18  ;;  %v6703_v58 = vld [vmem:[%s9689_s1 + $0xd8] sm:$0xff]   ;;  %5383 = vmatpush3.bf16.msra.mxu1 %v6702_v51 }
 0x234   : > { %5384 = vmatprep.subr.bf16.mxu1 %v6703_v58 }
 0x235   : > { %v2042_v20 = vpack.c.bf16 %v2022_v48, %v2021_v15  ;;  %v6704_v15 = vld [vmem:[%s9689_s1 + $0x98] sm:$0xff]   ;;  %v6705_v48 = vld [vmem:[%s9689_s1 + $0xe0] sm:$0xff]  }
 0x237   : > { %v5323_v55 = vpop.f32.mrb[48].mxu0  ;;  %5588 = vmatmul.mubr.msk.bf16.gmra.mrb[52].mxu1 %vm2055_vm6, %v2042_v20 }
 0x238   : > { %v5324_v32 = vpop.f32.mrb[49].mxu0  ;;  %5385 = vmatpush3.bf16.msra.mxu1 %v6704_v15 }
 0x239   : > { %v5325_v29 = vadd.f32 %v5324_v32, %v5323_v55  ;;  %v5326_v2 = vpop.f32.mrb[50].mxu0  ;;  %v9802_v55 = vld [vmem:[#allocation6_spill] sm:$0xff]  ;;  %5386 = vmatprep.subr.bf16.mxu1 %v6705_v48 }
 0x23a   : > { %v5327_v17 = vpop.f32.mrb[51].mxu0 }
 0x23b   : > { %v5328_v14 = vadd.f32 %v5327_v17, %v5326_v2  ;;  %v1969_v4 = vadd.f32 %v5325_v29, %v7947_v41  ;;  %v6706_v2 = vld [vmem:[%s9689_s1 + $0xa0] sm:$0xff]  }
 0x23c   : > { %5387 = vmatpush3.bf16.msra.mxu1 %v6706_v2 }
 0x23d   : > { %v1972_v0 = vadd.f32 %v5328_v14, %v7953_v39  ;;  %v2023_v5 = vmax.f32 %v1969_v4, 0.0  ;;  %v8042_v39 = vld [vmem:[%s6962_s28 + $0x48] sm:$0xff] }
 0x23e   : > { %290 = vst.msk [vmem:[#allocation2 + $0x81] sm:$0xff] %vm192_vm0, %v8042_v39  ;;  %v9805_v4 = vld [vmem:[#allocation7_spill] sm:$0xff] }
 0x23f   : > { %v2024_v8 = vmax.f32 %v1972_v0, 0.0 }
 0x241   : > { %v2043_v10 = vpack.c.bf16 %v2024_v8, %v2023_v5 }
 0x243   : > { %v5329_v1 = vpop.f32.mrb[52].mxu0  ;;  %5591 = vmatprep.mubr.msk.bf16.mxu1 %vm2055_vm6, %v2043_v10 }
 0x244   : > { %v5330_v26 = vpop.f32.mrb[53].mxu0 }
 0x245   : > { %v5331_v54 = vadd.f32 %v5330_v26, %v5329_v1  ;;  %v5332_v31 = vpop.f32.mrb[54].mxu0  ;;  %v6707_v1 = vld [vmem:[%s9689_s1 + $0xe8] sm:$0xff]  }
 0x246   : > { %v5333_v43 = vpop.f32.mrb[55].mxu0  ;;  %v6708_v26 = vld [vmem:[%s9689_s1 + $0xa8] sm:$0xff]   ;;  %5388 = vmatprep.subr.bf16.mxu1 %v6707_v1 }
 0x247   : > { %v1977_v36 = vadd.f32 %v7945_v57, %v5331_v54  ;;  %v5334_v56 = vadd.f32 %v5333_v43, %v5332_v31  ;;  %5389 = vmatpush3.bf16.msra.mxu1 %v6708_v26  ;;  %v6709_v54 = vld [vmem:[%s9689_s1 + $0xf0] sm:$0xff]  }
 0x248   : > { %v6710_v31 = vld [vmem:[%s9689_s1 + $0xb0] sm:$0xff]   ;;  %5390 = vmatprep.subr.bf16.mxu1 %v6709_v54 }
 0x249   : > { %v1980_v41 = vadd.f32 %v7949_v42, %v5334_v56  ;;  %v2025_v59 = vmax.f32 %v1977_v36, 0.0 }
 0x24b   : > { %v2026_v44 = vmax.f32 %v1980_v41, 0.0  ;;  %5391 = vmatpush3.bf16.msra.mxu1 %v6710_v31 }
 0x24d   : > { %v2044_v34 = vpack.c.bf16 %v2026_v44, %v2025_v59 }
 0x24f   : > { %v5335_v50 = vpop.f32.mrb[56].mxu0  ;;  %5592 = vmatmul.mubr.msk.bf16.gmra.mrb[56].mxu1 %vm2055_vm6, %v2044_v34 }
 0x250   : > { %v5336_v57 = vpop.f32.mrb[57].mxu0 }
 0x251   : > { %v5337_v30 = vadd.f32 %v5336_v57, %v5335_v50  ;;  %v5338_v37 = vpop.f32.mrb[58].mxu0  ;;  %v8142_v50 = vld [vmem:[%s6962_s28 + $0xc0] sm:$0xff] }
 0x252   : > { %v5339_v11 = vpop.f32.mrb[59].mxu0  ;;  %305 = vst.msk [vmem:[#allocation2 + $0x139] sm:$0xff] %vm192_vm0, %v8142_v50 }
 0x253   : > { %v5340_v3 = vadd.f32 %v5339_v11, %v5338_v37  ;;  %v1985_v46 = vadd.f32 %v5337_v30, %v7964_v27  ;;  %v8052_v27 = vld [vmem:[%s6962_s28 + $0x60] sm:$0xff] }
 0x254   : > { %293 = vst.msk [vmem:[#allocation2 + $0xa9] sm:$0xff] %vm192_vm0, %v8052_v27 }
 0x255   : > { %v1988_v42 = vadd.f32 %v5340_v3, %v7968_v6  ;;  %v2027_v16 = vmax.f32 %v1985_v46, 0.0  ;;  %v6711_v3 = vld [vmem:[%s9689_s1 + $0xf8] sm:$0xff]  }
 0x256   : > { %v6712_v46 = vld [vmem:[%s9689_s1 + $0xb8] sm:$0xff]   ;;  %5392 = vmatprep.subr.bf16.mxu1 %v6711_v3 }
 0x257   : > { %v2028_v52 = vmax.f32 %v1988_v42, 0.0  ;;  %5393 = vmatpush3.bf16.msra.mxu1 %v6712_v46 }
 0x259   : > { %v2045_v35 = vpack.c.bf16 %v2028_v52, %v2027_v16 }
 0x25b   : > { %v5341_v61 = vpop.f32.mrb[60].mxu0  ;;  %5595 = vmatprep.mubr.msk.bf16.mxu1 %vm2055_vm6, %v2045_v35 }
 0x25c   : > { %v5342_v53 = vpop.f32.mrb[61].mxu0 }
 0x25d   : > { %v5343_v19 = vadd.f32 %v5342_v53, %v5341_v61  ;;  %v5344_v62 = vpop.f32.mrb[62].mxu0 }
 0x25e   : > { %v5345_v21 = vpop.f32.mrb[63].mxu0 }
 0x25f   : > { %v1993_v22 = vadd.f32 %v7962_v40, %v5343_v19  ;;  %v5346_v45 = vadd.f32 %v5345_v21, %v5344_v62  ;;  %v8064_v40 = vld [vmem:[%s6962_s28 + $0x80] sm:$0xff]  ;;  %v9808_v21 = vld [vmem:[#allocation8_spill] sm:$0xff] }
 0x260   : > { %297 = vst.msk [vmem:[#allocation2 + $0xd9] sm:$0xff] %vm192_vm0, %v8064_v40 }
 0x261   : > { %v1996_v6 = vadd.f32 %v7966_v9, %v5346_v45  ;;  %v2029_v47 = vmax.f32 %v1993_v22, 0.0  ;;  %v8074_v9 = vld [vmem:[%s6962_s28 + $0xa0] sm:$0xff] }
 0x262   : > { %301 = vst.msk [vmem:[#allocation2 + $0x109] sm:$0xff] %vm192_vm0, %v8074_v9 }
 0x263   : > { %v2030_v38 = vmax.f32 %v1996_v6, 0.0 }
 0x265   : > { %v2046_v33 = vpack.c.bf16 %v2030_v38, %v2029_v47  ;;  %v8171_v38 = vld [vmem:[%s6962_s28 + $0xc8] sm:$0xff] }
 0x266   : > { %306 = vst.msk [vmem:[#allocation2 + $0x141] sm:$0xff] %vm192_vm0, %v8171_v38 }
 0x267   : > { %5596 = vmatmul.mubr.msk.bf16.gmra.mrb[60].mxu1 %vm2055_vm6, %v2046_v33  ;;  %v6713_v33 = vld [vmem:[%s9689_s1 + $0x100] sm:$0xff]  }
 0x268   : > { %5394 = vmatprep.subr.bf16.mxu1 %v6713_v33 }
 0x269   : > { %5395 = vmatpush3.bf16.msra.mxu1 %v6714_v25 }
 0x297   : > { %v5569_v20 = vpop.f32.mrb[32].mxu1 }
 0x298   : > { %v8099_v32 = vadd.f32 %v5569_v20, %v9802_v55  ;;  %v2138_v29 = vpop.f32.mrb[33].mxu1  ;;  %v9811_v55 = vld [vmem:[#allocation9_spill] sm:$0xff] }
 0x299   : > { %v8105_v18 = vadd.f32 %v2138_v29, %v7989_v23  ;;  %v5570_v17 = vpop.f32.mrb[34].mxu1 }
 0x29a   : > { %9803 = vst [vmem:[#allocation23_spill] sm:$0xff] %v8099_v32  ;;  %v9725_v14 = vmax.f32 %v8099_v32, 0.0  ;;  %v8109_v0 = vadd.f32 %v5570_v17, %v9805_v4  ;;  %v2141_v5 = vpop.f32.mrb[35].mxu1 }
 0x29b   : > { %9804 = vst [vmem:[#allocation22_spill] sm:$0xff] %v8105_v18  ;;  %v9724_v8 = vmax.f32 %v8105_v18, 0.0  ;;  %v8113_v10 = vadd.f32 %v2141_v5, %v7994_v13  ;;  %v6715_v5 = vld [vmem:[%s9689_s1 + $0x108] sm:$0xff]  }
 0x29c   : > { %9806 = vst [vmem:[#allocation6_spill] sm:$0xff] %v8109_v0  ;;  %2299 = vst.msk [vmem:[#allocation2 + $0x31] sm:$0xff] %vm192_vm0, %v9725_v14  ;;  %v9723_v23 = vmax.f32 %v8109_v0, 0.0  ;;  %5396 = vmatprep.subr.bf16.mxu1 %v6715_v5 }
 0x29d   : > { %9807 = vst [vmem:[#allocation7_spill] sm:$0xff] %v8113_v10  ;;  %2297 = vst.msk [vmem:[#allocation2 + $0x19] sm:$0xff] %vm192_vm0, %v9724_v8  ;;  %v9722_v13 = vmax.f32 %v8113_v10, 0.0 }
 0x29e   : > { %2300 = vst.msk [vmem:[#allocation2 + $0x39] sm:$0xff] %vm192_vm0, %v9723_v23 }
 0x29f   : > { %2298 = vst.msk [vmem:[#allocation2 + $0x21] sm:$0xff] %vm192_vm0, %v9722_v13 }
 0x2a3   : > { %v2335_v43 = vld [vmem:[#allocation2 + $0x30] sm:$0xff] }
 0x2a4   : > { %v2521_v41 = vrot.slane %v2335_v43, 2  ;;  %v2441_v57 = vrot.slane %v2335_v43, 1  ;;  %v8162_v62 = vld [vmem:[#allocation2 + $0x18] sm:$0xff] }
 0x2a5   : > { %v2336_v36 = vld [vmem:[#allocation2 + $0x38] sm:$0xff]  ;;  %v2337_v56 = vld [vmem:[#allocation2 + $0x40] sm:$0x3]  ;;  %v2516_v4 = vrot.slane %v8162_v62, 2 }
 0x2a6   : > { %v6215_v59 = vpack.i.bf16 %v2336_v36, %v2335_v43  ;;  %v2522_v44 = vrot.slane %v2336_v36, 2  ;;  %v2524_v34 = vrot.slane %v2337_v56, 2  ;;  %v2442_v30 = vrot.slane %v2336_v36, 1  ;;  %v2333_v11 = vld [vmem:[#allocation2 + $0x20] sm:$0xff]  ;;  %v2334_v52 = vld [vmem:[#allocation2 + $0x28] sm:$0x3] }
 0x2a7   : > { %v2444_v37 = vrot.slane %v2337_v56, 1  ;;  %v6220_v47 = vpack.i.bf16 %v2333_v11, %v8162_v62  ;;  %v2517_v15 = vrot.slane %v2333_v11, 2  ;;  %v2519_v48 = vrot.slane %v2334_v52, 2 }
 0x2a8   : > { %6216 = vrot.lane.b32.xlu1 %v6215_v59, %s6852_s21  ;;  %6211 = vrot.lane.b32.xlu0 %v6215_v59, %s6851_s15  ;;  %v2523_v42 = vsel %vm496_vm2, %v2521_v41, %v2522_v44  ;;  %v2525_v16 = vsel %vm496_vm2, %v2522_v44, %v2524_v34  ;;  %v8157_v53 = vsel %vm415_vm3, %v2441_v57, %v2442_v30  ;;  %v2437_v54 = vrot.slane %v2333_v11, 1 }
 0x2a9   : > { %v3451_v61 = vpack.c.bf16 %v2525_v16, %v2523_v42  ;;  %v8160_v19 = vsel %vm415_vm3, %v2442_v30, %v2444_v37  ;;  %v6230_v26 = vpack.i.bf16 %v2525_v16, %v2523_v42  ;;  %v2518_v43 = vsel %vm496_vm2, %v2516_v4, %v2517_v15 }
 0x2aa   : > { %v5573_v35 = vpop.f32.mrb[36].mxu1  ;;  %v6225_v6 = vpack.i.bf16 %v8160_v19, %v8157_v53  ;;  %v2520_v36 = vsel %vm496_vm2, %v2517_v15, %v2519_v48  ;;  %v2439_v56 = vrot.slane %v2334_v52, 1  ;;  %v2436_v41 = vrot.slane %v8162_v62, 1 }
 0x2ab   : > { %v8165_v22 = vadd.f32 %v5573_v35, %v9808_v21  ;;  %v2154_v45 = vpop.f32.mrb[37].mxu1  ;;  %5603 = vmatprep.mubr.msk.bf16.mxu0 %vm192_vm0, %v3451_v61  ;;  %v6245_v59 = vpack.i.bf16 %v2520_v36, %v2518_v43  ;;  %v8257_v43 = vld [vmem:[%s6962_s28 + $0xe8] sm:$0xff] }
 0x2ac   : > { %v8180_v51 = vadd.f32 %v2154_v45, %v8009_v12  ;;  %v5574_v58 = vpop.f32.mrb[38].mxu1  ;;  %6226 = vrot.lane.b32.xlu0 %v6225_v6, %s6852_s21  ;;  %6221 = vrot.lane.b32.xlu1 %v6220_v47, %s6852_s21  ;;  %v8222_v44 = vsel %vm415_vm3, %v2436_v41, %v2437_v54  ;;  %v8225_v34 = vsel %vm415_vm3, %v2437_v54, %v2439_v56  ;;  %v8248_v54 = vld [vmem:[%s6962_s28 + $0xe0] sm:$0xff] }
 0x2ad   : > { %9809 = vst [vmem:[#allocation8_spill] sm:$0xff] %v8165_v22  ;;  %v9721_v20 = vmax.f32 %v8165_v22, 0.0  ;;  %v8188_v29 = vadd.f32 %v5574_v58, %v9811_v55  ;;  %v2157_v2 = vpop.f32.mrb[39].mxu1  ;;  %v6250_v30 = vpack.i.bf16 %v8225_v34, %v8222_v44  ;;  %309 = vst.msk [vmem:[#allocation2 + $0x169] sm:$0xff] %vm192_vm0, %v8248_v54 }
 0x2ae   : > { %9810 = vst [vmem:[#allocation24_spill] sm:$0xff] %v8180_v51  ;;  %v9720_v12 = vmax.f32 %v8180_v51, 0.0  ;;  %v8193_v17 = vadd.f32 %v2157_v2, %v8015_v24  ;;  %v6716_v24 = vld [vmem:[%s9689_s1 + $0xc8] sm:$0xff]   ;;  %310 = vst.msk [vmem:[#allocation2 + $0x171] sm:$0xff] %vm192_vm0, %v8257_v43 }
 0x2af   : > { %9812 = vst [vmem:[#allocation9_spill] sm:$0xff] %v8188_v29  ;;  %2303 = vst.msk [vmem:[#allocation2 + $0x61] sm:$0xff] %vm192_vm0, %v9721_v20  ;;  %v9719_v1 = vmax.f32 %v8188_v29, 0.0  ;;  %5397 = vmatpush3.bf16.msra.mxu1 %v6716_v24 }
 0x2b0   : > { %9813 = vst [vmem:[#allocation25_spill] sm:$0xff] %v8193_v17  ;;  %2301 = vst.msk [vmem:[#allocation2 + $0x49] sm:$0xff] %vm192_vm0, %v9720_v12  ;;  %v9718_v31 = vmax.f32 %v8193_v17, 0.0  ;;  %6231 = vrot.lane.b32.xlu0 %v6230_v26, %s6853_s27  ;;  %6236 = vrot.lane.b32.xlu1 %v6225_v6, %s6853_s27 }
 0x2b1   : > { %2304 = vst.msk [vmem:[#allocation2 + $0x69] sm:$0xff] %vm192_vm0, %v9719_v1  ;;  %5669 = vmatprep.subr.bf16.mxu1 %v8023_v28 }
 0x2b2   : > { %2302 = vst.msk [vmem:[#allocation2 + $0x51] sm:$0xff] %vm192_vm0, %v9718_v31 }
 0x2b4   : > { %6241 = vrot.lane.b32.xlu1 %v6230_v26, %s6851_s15  ;;  %6246 = vrot.lane.b32.xlu0 %v6245_v59, %s6853_s27 }
 0x2b6   : > { %v2341_v57 = vld [vmem:[#allocation2 + $0x60] sm:$0xff] }
 0x2b7   : > { %v2338_v37 = vld [vmem:[#allocation2 + $0x48] sm:$0xff]  ;;  %v2531_v52 = vrot.slane %v2341_v57, 2  ;;  %v2451_v48 = vrot.slane %v2341_v57, 1 }
 0x2b8   : > { %v2342_v11 = vld [vmem:[#allocation2 + $0x68] sm:$0xff]  ;;  %v2343_v3 = vld [vmem:[#allocation2 + $0x70] sm:$0x3]  ;;  %6251 = vrot.lane.b32.xlu1 %v6250_v30, %s6853_s27  ;;  %v2526_v28 = vrot.slane %v2338_v37, 2 }
 0x2b9   : > { %v6260_v46 = vpack.i.bf16 %v2342_v11, %v2341_v57  ;;  %v2339_v42 = vld [vmem:[#allocation2 + $0x50] sm:$0xff]  ;;  %v2340_v16 = vld [vmem:[#allocation2 + $0x58] sm:$0x3]  ;;  %v2532_v35 = vrot.slane %v2342_v11, 2  ;;  %v2534_v61 = vrot.slane %v2343_v3, 2  ;;  %v2452_v6 = vrot.slane %v2342_v11, 1 }
 0x2ba   : > { %v2527_v21 = vrot.slane %v2339_v42, 2  ;;  %v2529_v45 = vrot.slane %v2340_v16, 2  ;;  %v2454_v25 = vrot.slane %v2343_v3, 1  ;;  %v6270_v2 = vpack.i.bf16 %v2339_v42, %v2338_v37 }
 0x2bb   : > { %6261 = vrot.lane.b32.xlu0 %v6260_v46, %s6851_s15  ;;  %v2533_v47 = vsel %vm496_vm2, %v2531_v52, %v2532_v35  ;;  %v2535_v33 = vsel %vm496_vm2, %v2532_v35, %v2534_v61  ;;  %v8240_v5 = vsel %vm415_vm3, %v2451_v48, %v2452_v6  ;;  %v2447_v56 = vrot.slane %v2339_v42, 1  ;;  %v9817_v35 = vld [vmem:[#allocation11_spill] sm:$0xff] }
 0x2bc   : > { %v2528_v58 = vsel %vm496_vm2, %v2526_v28, %v2527_v21  ;;  %v2530_v15 = vsel %vm496_vm2, %v2527_v21, %v2529_v45  ;;  %6256 = vrot.lane.b32.xlu1 %v6245_v59, %s6851_s15  ;;  %v3457_v4 = vpack.c.bf16 %v2535_v33, %v2533_v47  ;;  %v8243_v26 = vsel %vm415_vm3, %v2452_v6, %v2454_v25  ;;  %v9814_v59 = vld [vmem:[#allocation10_spill] sm:$0xff] }
 0x2bd   : > { %v3454_v55 = vpack.c.bf16 %v2530_v15, %v2528_v58  ;;  %v6280_v24 = vpack.i.bf16 %v8243_v26, %v8240_v5  ;;  %v2449_v41 = vrot.slane %v2340_v16, 1  ;;  %v6285_v16 = vpack.i.bf16 %v2535_v33, %v2533_v47 }
 0x2be   : > { %v6305_v47 = vpack.i.bf16 %v2530_v15, %v2528_v58 }
 0x2bf   : > { %5604 = vmatmul.mubr.msk.bf16.vlgmr.msra.gmra.mrb[64].mxu0 %vm192_vm0, %v3454_v55  ;;  %6271 = vrot.lane.b32.xlu0 %v6270_v2, %s6851_s15 }
 0x2c0   : > { %5607 = vmatprep.mubr.msk.bf16.mxu0 %vm192_vm0, %v3457_v4  ;;  %6266 = vrot.lane.b32.xlu1 %v6260_v46, %s6852_s21  ;;  %v2446_v46 = vrot.slane %v2338_v37, 1 }
 0x2c2   : > { %v5577_v36 = vpop.f32.mrb[40].mxu1  ;;  %v8278_v45 = vsel %vm415_vm3, %v2446_v46, %v2447_v56 }
 0x2c3   : > { %v8262_v57 = vadd.f32 %v5577_v36, %v9814_v59  ;;  %v2170_v30 = vpop.f32.mrb[41].mxu1  ;;  %6281 = vrot.lane.b32.xlu0 %v6280_v24, %s6852_s21 }
 0x2c4   : > { %v8266_v11 = vadd.f32 %v2170_v30, %v8036_v49  ;;  %v5578_v3 = vpop.f32.mrb[42].mxu1  ;;  %6276 = vrot.lane.b32.xlu1 %v6270_v2, %s6852_s21  ;;  %v8281_v49 = vsel %vm415_vm3, %v2447_v56, %v2449_v41 }
 0x2c5   : > { %9815 = vst [vmem:[#allocation10_spill] sm:$0xff] %v8262_v57  ;;  %v9713_v52 = vmax.f32 %v8262_v57, 0.0  ;;  %v8270_v61 = vadd.f32 %v5578_v3, %v9817_v35  ;;  %v2173_v42 = vpop.f32.mrb[43].mxu1  ;;  %v6300_v6 = vpack.i.bf16 %v8281_v49, %v8278_v45 }
 0x2c6   : > { %9816 = vst [vmem:[#allocation26_spill] sm:$0xff] %v8266_v11  ;;  %v9712_v28 = vmax.f32 %v8266_v11, 0.0  ;;  %v8275_v21 = vadd.f32 %v2173_v42, %v8042_v39 }
 0x2c7   : > { %9818 = vst [vmem:[#allocation11_spill] sm:$0xff] %v8270_v61  ;;  %2307 = vst.msk [vmem:[#allocation2 + $0x91] sm:$0xff] %vm192_vm0, %v9713_v52  ;;  %v9711_v37 = vmax.f32 %v8270_v61, 0.0  ;;  %6286 = vrot.lane.b32.xlu0 %v6285_v16, %s6853_s27 }
 0x2c8   : > { %9819 = vst [vmem:[#allocation27_spill] sm:$0xff] %v8275_v21  ;;  %2305 = vst.msk [vmem:[#allocation2 + $0x79] sm:$0xff] %vm192_vm0, %v9712_v28  ;;  %v9710_v39 = vmax.f32 %v8275_v21, 0.0  ;;  %6291 = vrot.lane.b32.xlu1 %v6280_v24, %s6853_s27 }
 0x2c9   : > { %2308 = vst.msk [vmem:[#allocation2 + $0x99] sm:$0xff] %vm192_vm0, %v9711_v37 }
 0x2ca   : > { %2306 = vst.msk [vmem:[#allocation2 + $0x81] sm:$0xff] %vm192_vm0, %v9710_v39 }
 0x2cb   : > { %6301 = vrot.lane.b32.xlu0 %v6300_v6, %s6852_s21 }
 0x2cc   : > { %6296 = vrot.lane.b32.xlu1 %v6285_v16, %s6851_s15 }
 0x2ce   : > { %v2347_v33 = vld [vmem:[#allocation2 + $0x90] sm:$0xff] }
 0x2cf   : > { %6306 = vrot.lane.b32.xlu0 %v6305_v47, %s6853_s27  ;;  %v2344_v25 = vld [vmem:[#allocation2 + $0x78] sm:$0xff]  ;;  %v2541_v36 = vrot.slane %v2347_v33, 2 }
 0x2d0   : > { %v2348_v48 = vld [vmem:[#allocation2 + $0x98] sm:$0xff]  ;;  %v2349_v55 = vld [vmem:[#allocation2 + $0xa0] sm:$0x3]  ;;  %6311 = vrot.lane.b32.xlu1 %v6300_v6, %s6853_s27  ;;  %v2536_v59 = vrot.slane %v2344_v25, 2  ;;  %v2461_v6 = vrot.slane %v2347_v33, 1 }
 0x2d1   : > { %v6320_v2 = vpack.i.bf16 %v2348_v48, %v2347_v33  ;;  %v2345_v4 = vld [vmem:[#allocation2 + $0x80] sm:$0xff]  ;;  %v2346_v24 = vld [vmem:[#allocation2 + $0x88] sm:$0x3]  ;;  %v2542_v56 = vrot.slane %v2348_v48, 2  ;;  %v2544_v41 = vrot.slane %v2349_v55, 2  ;;  %v2462_v46 = vrot.slane %v2348_v48, 1 }
 0x2d2   : > { %v2537_v30 = vrot.slane %v2345_v4, 2  ;;  %v2539_v3 = vrot.slane %v2346_v24, 2  ;;  %v2464_v35 = vrot.slane %v2349_v55, 1  ;;  %v6330_v37 = vpack.i.bf16 %v2345_v4, %v2344_v25 }
 0x2d3   : > { %6321 = vrot.lane.b32.xlu0 %v6320_v2, %s6851_s15  ;;  %v2543_v58 = vsel %vm496_vm2, %v2541_v36, %v2542_v56  ;;  %v2545_v15 = vsel %vm496_vm2, %v2542_v56, %v2544_v41  ;;  %v8312_v52 = vsel %vm415_vm3, %v2461_v6, %v2462_v46  ;;  %v2457_v55 = vrot.slane %v2345_v4, 1  ;;  %v9820_v56 = vld [vmem:[#allocation12_spill] sm:$0xff] }
 0x2d4   : > { %v2538_v42 = vsel %vm496_vm2, %v2536_v59, %v2537_v30  ;;  %v2540_v16 = vsel %vm496_vm2, %v2537_v30, %v2539_v3  ;;  %6316 = vrot.lane.b32.xlu1 %v6305_v47, %s6851_s15  ;;  %v3463_v28 = vpack.c.bf16 %v2545_v15, %v2543_v58  ;;  %v8315_v48 = vsel %vm415_vm3, %v2462_v46, %v2464_v35 }
 0x2d5   : > { %v3460_v39 = vpack.c.bf16 %v2540_v16, %v2538_v42  ;;  %v6340_v47 = vpack.i.bf16 %v8315_v48, %v8312_v52  ;;  %v2459_v36 = vrot.slane %v2346_v24, 1  ;;  %v2456_v3 = vrot.slane %v2344_v25, 1 }
 0x2d6   : > { %v6345_v24 = vpack.i.bf16 %v2545_v15, %v2543_v58  ;;  %v8364_v58 = vld [vmem:[#allocation2 + $0x1a0] sm:$0xff]  ;;  %v6365_v15 = vpack.i.bf16 %v2540_v16, %v2538_v42 }
 0x2d7   : > { %5608 = vmatmul.mubr.msk.bf16.gmra.mrb[68].mxu0 %vm192_vm0, %v3460_v39  ;;  %6331 = vrot.lane.b32.xlu0 %v6330_v37, %s6851_s15 }
 0x2d8   : > { %5611 = vmatprep.mubr.msk.bf16.mxu0 %vm192_vm0, %v3463_v28  ;;  %6326 = vrot.lane.b32.xlu1 %v6320_v2, %s6852_s21  ;;  %v9823_v2 = vld [vmem:[#allocation13_spill] sm:$0xff] }
 0x2da   : > { %v5581_v33 = vpop.f32.mrb[44].mxu1 }
 0x2db   : > { %v8324_v41 = vadd.f32 %v5581_v33, %v9820_v56  ;;  %v2186_v59 = vpop.f32.mrb[45].mxu1  ;;  %6341 = vrot.lane.b32.xlu0 %v6340_v47, %s6852_s21  ;;  %v8340_v33 = vsel %vm415_vm3, %v2456_v3, %v2457_v55 }
 0x2dc   : > { %v8328_v39 = vadd.f32 %v2186_v59, %v8052_v27  ;;  %v5582_v30 = vpop.f32.mrb[46].mxu1  ;;  %6336 = vrot.lane.b32.xlu1 %v6330_v37, %s6852_s21  ;;  %v8343_v27 = vsel %vm415_vm3, %v2457_v55, %v2459_v36  ;;  %v8367_v55 = vld [vmem:[#allocation2 + $0x198] sm:$0xff]  ;;  %v9726_v36 = vrot.slane %v8364_v58, 2 }
 0x2dd   : > { %9821 = vst [vmem:[#allocation12_spill] sm:$0xff] %v8324_v41  ;;  %v9717_v28 = vmax.f32 %v8324_v41, 0.0  ;;  %v8332_v46 = vadd.f32 %v5582_v30, %v9823_v2  ;;  %v2189_v4 = vpop.f32.mrb[47].mxu1  ;;  %v6360_v37 = vpack.i.bf16 %v8343_v27, %v8340_v33 }
 0x2de   : > { %9822 = vst [vmem:[#allocation28_spill] sm:$0xff] %v8328_v39  ;;  %v9716_v35 = vmax.f32 %v8328_v39, 0.0  ;;  %v8337_v6 = vadd.f32 %v2189_v4, %v8058_v60 }
 0x2df   : > { %9824 = vst [vmem:[#allocation13_spill] sm:$0xff] %v8332_v46  ;;  %2311 = vst.msk [vmem:[#allocation2 + $0xc1] sm:$0xff] %vm192_vm0, %v9717_v28  ;;  %v9715_v25 = vmax.f32 %v8332_v46, 0.0  ;;  %6346 = vrot.lane.b32.xlu0 %v6345_v24, %s6853_s27 }
 0x2e0   : > { %9825 = vst [vmem:[#allocation29_spill] sm:$0xff] %v8337_v6  ;;  %2309 = vst.msk [vmem:[#allocation2 + $0xa9] sm:$0xff] %vm192_vm0, %v9716_v35  ;;  %v9714_v60 = vmax.f32 %v8337_v6, 0.0  ;;  %6351 = vrot.lane.b32.xlu1 %v6340_v47, %s6853_s27  ;;  %v2644_v47 = vrot.slane %v8367_v55, 2 }
 0x2e1   : > { %2312 = vst.msk [vmem:[#allocation2 + $0xc9] sm:$0xff] %vm192_vm0, %v9715_v25 }
 0x2e2   : > { %2310 = vst.msk [vmem:[#allocation2 + $0xb1] sm:$0xff] %vm192_vm0, %v9714_v60  ;;  %v8375_v2 = vsel %vm496_vm2, %v2644_v47, %v9726_v36 }
 0x2e3   : > { %6361 = vrot.lane.b32.xlu0 %v6360_v37, %s6852_s21 }
 0x2e4   : > { %6356 = vrot.lane.b32.xlu1 %v6345_v24, %s6851_s15 }
 0x2e6   : > { %v2353_v56 = vld [vmem:[#allocation2 + $0xc0] sm:$0xff] }
 0x2e7   : > { %6366 = vrot.lane.b32.xlu0 %v6365_v15, %s6853_s27  ;;  %v2350_v59 = vld [vmem:[#allocation2 + $0xa8] sm:$0xff]  ;;  %v2551_v24 = vrot.slane %v2353_v56, 2  ;;  %v2471_v23 = vrot.slane %v2353_v56, 1 }
 0x2e8   : > { %v2354_v30 = vld [vmem:[#allocation2 + $0xc8] sm:$0xff]  ;;  %v2355_v3 = vld [vmem:[#allocation2 + $0xd0] sm:$0x3]  ;;  %6371 = vrot.lane.b32.xlu1 %v6360_v37, %s6853_s27  ;;  %v2546_v35 = vrot.slane %v2350_v59, 2 }
 0x2e9   : > { %v6380_v42 = vpack.i.bf16 %v2354_v30, %v2353_v56  ;;  %v2351_v16 = vld [vmem:[#allocation2 + $0xb0] sm:$0xff]  ;;  %v2352_v4 = vld [vmem:[#allocation2 + $0xb8] sm:$0x3]  ;;  %v2552_v60 = vrot.slane %v2354_v30, 2  ;;  %v2554_v25 = vrot.slane %v2355_v3, 2  ;;  %v2472_v1 = vrot.slane %v2354_v30, 1 }
 0x2ea   : > { %v2547_v28 = vrot.slane %v2351_v16, 2  ;;  %v2549_v31 = vrot.slane %v2352_v4, 2  ;;  %v2474_v47 = vrot.slane %v2355_v3, 1  ;;  %v6390_v14 = vpack.i.bf16 %v2351_v16, %v2350_v59  ;;  %v9829_v3 = vld [vmem:[#allocation15_spill] sm:$0xff] }
 0x2eb   : > { %6381 = vrot.lane.b32.xlu0 %v6380_v42, %s6851_s15  ;;  %v2553_v12 = vsel %vm496_vm2, %v2551_v24, %v2552_v60  ;;  %v2555_v20 = vsel %vm496_vm2, %v2552_v60, %v2554_v25  ;;  %v8385_v6 = vsel %vm415_vm3, %v2471_v23, %v2472_v1  ;;  %v2469_v25 = vrot.slane %v2352_v4, 1  ;;  %v9826_v60 = vld [vmem:[#allocation14_spill] sm:$0xff] }
 0x2ec   : > { %v2548_v13 = vsel %vm496_vm2, %v2546_v35, %v2547_v28  ;;  %v2550_v37 = vsel %vm496_vm2, %v2547_v28, %v2549_v31  ;;  %6376 = vrot.lane.b32.xlu1 %v6365_v15, %s6851_s15  ;;  %v3469_v36 = vpack.c.bf16 %v2555_v20, %v2553_v12  ;;  %v8388_v30 = vsel %vm415_vm3, %v2472_v1, %v2474_v47 }
 0x2ed   : > { %v3466_v8 = vpack.c.bf16 %v2550_v37, %v2548_v13  ;;  %v6400_v31 = vpack.i.bf16 %v8388_v30, %v8385_v6  ;;  %v2467_v35 = vrot.slane %v2351_v16, 1  ;;  %v2466_v56 = vrot.slane %v2350_v59, 1 }
 0x2ee   : > { %v6405_v4 = vpack.i.bf16 %v2555_v20, %v2553_v12  ;;  %v6425_v20 = vpack.i.bf16 %v2550_v37, %v2548_v13 }
 0x2ef   : > { %5612 = vmatmul.mubr.msk.bf16.gmra.mrb[72].mxu0 %vm192_vm0, %v3466_v8  ;;  %6391 = vrot.lane.b32.xlu0 %v6390_v14, %s6851_s15 }
 0x2f0   : > { %5615 = vmatprep.mubr.msk.bf16.mxu0 %vm192_vm0, %v3469_v36  ;;  %6386 = vrot.lane.b32.xlu1 %v6380_v42, %s6852_s21 }
 0x2f2   : > { %v5585_v28 = vpop.f32.mrb[48].mxu1 }
 0x2f3   : > { %v8397_v23 = vadd.f32 %v5585_v28, %v9826_v60  ;;  %v2202_v15 = vpop.f32.mrb[49].mxu1  ;;  %6401 = vrot.lane.b32.xlu0 %v6400_v31, %s6852_s21  ;;  %v8413_v28 = vsel %vm415_vm3, %v2466_v56, %v2467_v35 }
 0x2f4   : > { %v8401_v8 = vadd.f32 %v2202_v15, %v8064_v40  ;;  %v5586_v1 = vpop.f32.mrb[50].mxu1  ;;  %6396 = vrot.lane.b32.xlu1 %v6390_v14, %s6852_s21  ;;  %v8416_v40 = vsel %vm415_vm3, %v2467_v35, %v2469_v25 }
 0x2f5   : > { %9827 = vst [vmem:[#allocation14_spill] sm:$0xff] %v8397_v23  ;;  %v9731_v36 = vmax.f32 %v8397_v23, 0.0  ;;  %v8405_v42 = vadd.f32 %v5586_v1, %v9829_v3  ;;  %v2205_v16 = vpop.f32.mrb[51].mxu1  ;;  %v6420_v14 = vpack.i.bf16 %v8416_v40, %v8413_v28 }
 0x2f6   : > { %9828 = vst [vmem:[#allocation30_spill] sm:$0xff] %v8401_v8  ;;  %v9730_v24 = vmax.f32 %v8401_v8, 0.0  ;;  %v8410_v47 = vadd.f32 %v2205_v16, %v8069_v7 }
 0x2f7   : > { %9830 = vst [vmem:[#allocation15_spill] sm:$0xff] %v8405_v42  ;;  %2315 = vst.msk [vmem:[#allocation2 + $0xf1] sm:$0xff] %vm192_vm0, %v9731_v36  ;;  %v9729_v59 = vmax.f32 %v8405_v42, 0.0  ;;  %6406 = vrot.lane.b32.xlu0 %v6405_v4, %s6853_s27 }
 0x2f8   : > { %9831 = vst [vmem:[#allocation31_spill] sm:$0xff] %v8410_v47  ;;  %2313 = vst.msk [vmem:[#allocation2 + $0xd9] sm:$0xff] %vm192_vm0, %v9730_v24  ;;  %v9728_v7 = vmax.f32 %v8410_v47, 0.0  ;;  %6411 = vrot.lane.b32.xlu1 %v6400_v31, %s6853_s27 }
 0x2f9   : > { %2316 = vst.msk [vmem:[#allocation2 + $0xf9] sm:$0xff] %vm192_vm0, %v9729_v59 }
 0x2fa   : > { %2314 = vst.msk [vmem:[#allocation2 + $0xe1] sm:$0xff] %vm192_vm0, %v9728_v7 }
 0x2fb   : > { %6421 = vrot.lane.b32.xlu0 %v6420_v14, %s6852_s21 }
 0x2fc   : > { %6416 = vrot.lane.b32.xlu1 %v6405_v4, %s6851_s15 }
 0x2fe   : > { %v2359_v12 = vld [vmem:[#allocation2 + $0xf0] sm:$0xff] }
 0x2ff   : > { %6426 = vrot.lane.b32.xlu0 %v6425_v20, %s6853_s27  ;;  %v2356_v35 = vld [vmem:[#allocation2 + $0xd8] sm:$0xff]  ;;  %v2561_v56 = vrot.slane %v2359_v12, 2  ;;  %v2481_v42 = vrot.slane %v2359_v12, 1 }
 0x300   : > { %v2360_v25 = vld [vmem:[#allocation2 + $0xf8] sm:$0xff]  ;;  %v2361_v60 = vld [vmem:[#allocation2 + $0x100] sm:$0x3]  ;;  %6431 = vrot.lane.b32.xlu1 %v6420_v14, %s6853_s27  ;;  %v2556_v7 = vrot.slane %v2356_v35, 2 }
 0x301   : > { %v6440_v31 = vpack.i.bf16 %v2360_v25, %v2359_v12  ;;  %v2357_v15 = vld [vmem:[#allocation2 + $0xe0] sm:$0xff]  ;;  %v2358_v1 = vld [vmem:[#allocation2 + $0xe8] sm:$0x3]  ;;  %v2562_v3 = vrot.slane %v2360_v25, 2  ;;  %v2564_v16 = vrot.slane %v2361_v60, 2  ;;  %v2482_v36 = vrot.slane %v2360_v25, 1 }
 0x302   : > { %v2557_v59 = vrot.slane %v2357_v15, 2  ;;  %v2559_v24 = vrot.slane %v2358_v1, 2  ;;  %v2484_v4 = vrot.slane %v2361_v60, 1  ;;  %v6450_v23 = vpack.i.bf16 %v2357_v15, %v2356_v35  ;;  %v9832_v12 = vld [vmem:[#allocation16_spill] sm:$0xff] }
 0x303   : > { %6441 = vrot.lane.b32.xlu0 %v6440_v31, %s6851_s15  ;;  %v2563_v13 = vsel %vm496_vm2, %v2561_v56, %v2562_v3  ;;  %v2565_v37 = vsel %vm496_vm2, %v2562_v3, %v2564_v16  ;;  %v8447_v39 = vsel %vm415_vm3, %v2481_v42, %v2482_v36  ;;  %v2476_v56 = vrot.slane %v2356_v35, 1 }
 0x304   : > { %v2558_v47 = vsel %vm496_vm2, %v2556_v7, %v2557_v59  ;;  %v2560_v14 = vsel %vm496_vm2, %v2557_v59, %v2559_v24  ;;  %6436 = vrot.lane.b32.xlu1 %v6425_v20, %s6851_s15  ;;  %v3475_v46 = vpack.c.bf16 %v2565_v37, %v2563_v13  ;;  %v8450_v25 = vsel %vm415_vm3, %v2482_v36, %v2484_v4 }
 0x305   : > { %v3472_v8 = vpack.c.bf16 %v2560_v14, %v2558_v47  ;;  %v6460_v24 = vpack.i.bf16 %v8450_v25, %v8447_v39  ;;  %v2477_v7 = vrot.slane %v2357_v15, 1  ;;  %v2479_v20 = vrot.slane %v2358_v1, 1 }
 0x306   : > { %v6465_v1 = vpack.i.bf16 %v2565_v37, %v2563_v13 }
 0x307   : > { %5616 = vmatmul.mubr.msk.bf16.gmra.mrb[76].mxu0 %vm192_vm0, %v3472_v8  ;;  %6451 = vrot.lane.b32.xlu0 %v6450_v23, %s6851_s15 }
 0x308   : > { %5619 = vmatprep.mubr.msk.bf16.mxu0 %vm192_vm0, %v3475_v46  ;;  %6446 = vrot.lane.b32.xlu1 %v6440_v31, %s6852_s21  ;;  %v9835_v31 = vld [vmem:[#allocation17_spill] sm:$0xff] }
 0x30a   : > { %v5589_v59 = vpop.f32.mrb[52].mxu1 }
 0x30b   : > { %v8459_v42 = vadd.f32 %v5589_v59, %v9832_v12  ;;  %v2218_v60 = vpop.f32.mrb[53].mxu1  ;;  %6461 = vrot.lane.b32.xlu0 %v6460_v24, %s6852_s21  ;;  %v8475_v59 = vsel %vm415_vm3, %v2476_v56, %v2477_v7 }
 0x30c   : > { %v8463_v8 = vadd.f32 %v2218_v60, %v8074_v9  ;;  %v5590_v36 = vpop.f32.mrb[54].mxu1  ;;  %6456 = vrot.lane.b32.xlu1 %v6450_v23, %s6852_s21  ;;  %v8478_v9 = vsel %vm415_vm3, %v2477_v7, %v2479_v20  ;;  %v6202_v23 = vpop.permute.xlu1 %6201  ;;  %v6485_v7 = vpack.i.bf16 %v2560_v14, %v2558_v47 }
 0x30d   : > { %9833 = vst [vmem:[#allocation16_spill] sm:$0xff] %v8459_v42  ;;  %v9741_v46 = vmax.f32 %v8459_v42, 0.0  ;;  %v8467_v3 = vadd.f32 %v5590_v36, %v9835_v31  ;;  %v2221_v15 = vpop.f32.mrb[55].mxu1  ;;  %v6480_v13 = vpack.i.bf16 %v8478_v9, %v8475_v59  ;;  %v6203_v41 = vunpack.i.l.bf16 %v6202_v23 }
 0x30e   : > { %9834 = vst [vmem:[#allocation32_spill] sm:$0xff] %v8463_v8  ;;  %v9740_v16 = vmax.f32 %v8463_v8, 0.0  ;;  %v8472_v4 = vadd.f32 %v2221_v15, %v8079_v63  ;;  %v6204_v11 = vunpack.i.h.bf16 %v6202_v23 }
 0x30f   : > { %9836 = vst [vmem:[#allocation17_spill] sm:$0xff] %v8467_v3  ;;  %2319 = vst.msk [vmem:[#allocation2 + $0x121] sm:$0xff] %vm192_vm0, %v9741_v46  ;;  %v9739_v35 = vmax.f32 %v8467_v3, 0.0  ;;  %6466 = vrot.lane.b32.xlu0 %v6465_v1, %s6853_s27 }
 0x310   : > { %9837 = vst [vmem:[#allocation33_spill] sm:$0xff] %v8472_v4  ;;  %2317 = vst.msk [vmem:[#allocation2 + $0x109] sm:$0xff] %vm192_vm0, %v9740_v16  ;;  %v9738_v63 = vmax.f32 %v8472_v4, 0.0  ;;  %6471 = vrot.lane.b32.xlu1 %v6460_v24, %s6853_s27  ;;  %v6207_v37 = vpop.permute.xlu1 %6206 }
 0x311   : > { %2320 = vst.msk [vmem:[#allocation2 + $0x129] sm:$0xff] %vm192_vm0, %v9739_v35 }
 0x312   : > { %2318 = vst.msk [vmem:[#allocation2 + $0x111] sm:$0xff] %vm192_vm0, %v9738_v63 }
 0x313   : > { %6481 = vrot.lane.b32.xlu0 %v6480_v13, %s6852_s21 }
 0x314   : > { %6476 = vrot.lane.b32.xlu1 %v6465_v1, %s6851_s15 }
 0x316   : > { %v2365_v20 = vld [vmem:[#allocation2 + $0x120] sm:$0xff] }
 0x317   : > { %6486 = vrot.lane.b32.xlu0 %v6485_v7, %s6853_s27  ;;  %v8501_v60 = vld [vmem:[#allocation2 + $0x108] sm:$0xff]  ;;  %v2571_v46 = vrot.slane %v2365_v20, 2  ;;  %v2491_v42 = vrot.slane %v2365_v20, 1 }
 0x318   : > { %v2366_v12 = vld [vmem:[#allocation2 + $0x128] sm:$0xff]  ;;  %v2367_v24 = vld [vmem:[#allocation2 + $0x130] sm:$0x3]  ;;  %6491 = vrot.lane.b32.xlu1 %v6480_v13, %s6853_s27  ;;  %v2566_v14 = vrot.slane %v8501_v60, 2 }
 0x319   : > { %v6500_v36 = vpack.i.bf16 %v2366_v12, %v2365_v20  ;;  %v2363_v56 = vld [vmem:[#allocation2 + $0x110] sm:$0xff]  ;;  %v2364_v31 = vld [vmem:[#allocation2 + $0x118] sm:$0x3]  ;;  %v2572_v15 = vrot.slane %v2366_v12, 2  ;;  %v2574_v63 = vrot.slane %v2367_v24, 2  ;;  %v2492_v1 = vrot.slane %v2366_v12, 1 }
 0x31a   : > { %v2567_v35 = vrot.slane %v2363_v56, 2  ;;  %v2569_v16 = vrot.slane %v2364_v31, 2  ;;  %v8504_v4 = vpop.permute.xlu1 %6216  ;;  %v8506_v47 = vpop.permute.xlu0 %6211  ;;  %v2494_v3 = vrot.slane %v2367_v24, 1  ;;  %v6510_v61 = vpack.i.bf16 %v2363_v56, %v8501_v60 }
 0x31b   : > { %6501 = vrot.lane.b32.xlu0 %v6500_v36, %s6851_s15  ;;  %v2573_v13 = vsel %vm496_vm2, %v2571_v46, %v2572_v15  ;;  %v2575_v8 = vsel %vm496_vm2, %v2572_v15, %v2574_v63  ;;  %v8523_v46 = vsel %vm415_vm3, %v2491_v42, %v2492_v1  ;;  %v2487_v17 = vrot.slane %v2363_v56, 1 }
 0x31c   : > { %6496 = vrot.lane.b32.xlu1 %v6485_v7, %s6851_s15  ;;  %v8514_v21 = vsel %vm496_vm2, %v2566_v14, %v2567_v35  ;;  %v8517_v12 = vsel %vm496_vm2, %v2567_v35, %v2569_v16  ;;  %v8526_v63 = vsel %vm415_vm3, %v2492_v1, %v2494_v3  ;;  %v3481_v15 = vpack.c.bf16 %v2575_v8, %v2573_v13  ;;  %v6748_v35 = vld [vmem:[#allocation2] sm:$0xff]  ;;  %v6749_v3 = vld [vmem:[#allocation2 + $0x8] sm:$0xff] }
 0x31d   : > { %v3478_v24 = vpack.c.bf16 %v8517_v12, %v8514_v21  ;;  %v6208_v16 = vunpack.i.l.bf16 %v6207_v37  ;;  %v3257_v23 = vsel %vm192_vm0, %v6748_v35, %v6203_v41  ;;  %v6209_v14 = vunpack.i.h.bf16 %v6207_v37 }
 0x31e   : > { %v8528_v20 = vpop.permute.xlu0 %6226  ;;  %v6222_v7 = vpop.permute.xlu1 %6221  ;;  %v6520_v42 = vpack.i.bf16 %v8526_v63, %v8523_v46  ;;  %v3258_v1 = vsel %vm192_vm0, %v6749_v3, %v6204_v11  ;;  %v2489_v29 = vrot.slane %v2364_v31, 1 }
 0x31f   : > { %6511 = vrot.lane.b32.xlu0 %v6510_v61, %s6851_s15  ;;  %5620 = vmatmul.mubr.msk.bf16.gmra.mrb[80].mxu0 %vm192_vm0, %v3478_v24  ;;  %v9838_v24 = vld [vmem:[#allocation18_spill] sm:$0xff]  ;;  %v3289_v37 = vsel %vm1275_vm4, %v3257_v23, %v6208_v16  ;;  %v3290_v35 = vsel %vm1275_vm4, %v3258_v1, %v6209_v14  ;;  %v6224_v3 = vunpack.i.h.bf16 %v6222_v7  ;;  %v9841_v23 = vld [vmem:[#allocation19_spill] sm:$0xff] }
 0x320   : > { %5623 = vmatprep.mubr.msk.bf16.mxu0 %vm192_vm0, %v3481_v15  ;;  %6506 = vrot.lane.b32.xlu1 %v6500_v36, %s6852_s21  ;;  %v2486_v15 = vrot.slane %v8501_v60, 1  ;;  %v8558_v16 = vsel %vm415_vm3, %v2487_v17, %v2489_v29  ;;  %v6223_v60 = vunpack.i.l.bf16 %v6222_v7  ;;  %v6214_v29 = vunpack.i.h.bf16 %v8506_v47 }
 0x322   : > { %v5593_v57 = vpop.f32.mrb[56].mxu1  ;;  %v8538_v51 = vpop.permute.xlu0 %6231  ;;  %v8555_v10 = vsel %vm415_vm3, %v2486_v15, %v2487_v17  ;;  %v6213_v17 = vunpack.i.l.bf16 %v8506_v47 }
 0x323   : > { %v8541_v22 = vadd.f32 %v5593_v57, %v9838_v24  ;;  %v8543_v41 = vpop.permute.xlu1 %6236  ;;  %6521 = vrot.lane.b32.xlu0 %v6520_v42, %s6852_s21  ;;  %v2234_v36 = vpop.f32.mrb[57].mxu1  ;;  %v6525_v57 = vpack.i.bf16 %v2575_v8, %v2573_v13  ;;  %v6540_v15 = vpack.i.bf16 %v8558_v16, %v8555_v10 }
 0x324   : > { %v8551_v56 = vadd.f32 %v2234_v36, %v8142_v50  ;;  %v5594_v31 = vpop.f32.mrb[58].mxu1  ;;  %6516 = vrot.lane.b32.xlu1 %v6510_v61, %s6852_s21 }
 0x325   : > { %9839 = vst [vmem:[#allocation18_spill] sm:$0xff] %v8541_v22  ;;  %v9759_v11 = vmax.f32 %v8541_v22, 0.0  ;;  %v2237_v24 = vpop.f32.mrb[59].mxu1  ;;  %v8565_v14 = vadd.f32 %v5594_v31, %v9841_v23  ;;  %v6229_v31 = vunpack.i.h.bf16 %v8528_v20 }
 0x326   : > { %9840 = vst [vmem:[#allocation34_spill] sm:$0xff] %v8551_v56  ;;  %v9756_v50 = vmax.f32 %v8551_v56, 0.0  ;;  %v8568_v61 = vadd.f32 %v2237_v24, %v8171_v38  ;;  %v6247_v13 = vpop.permute.xlu0 %6246  ;;  %v6228_v24 = vunpack.i.l.bf16 %v8528_v20 }
 0x327   : > { %2323 = vst.msk [vmem:[#allocation2 + $0x151] sm:$0xff] %vm192_vm0, %v9759_v11  ;;  %9842 = vst [vmem:[#allocation19_spill] sm:$0xff] %v8565_v14  ;;  %v8570_v8 = vpop.permute.xlu1 %6241  ;;  %6526 = vrot.lane.b32.xlu0 %v6525_v57, %s6853_s27  ;;  %v6249_v7 = vunpack.i.h.bf16 %v6247_v13  ;;  %v6248_v1 = vunpack.i.l.bf16 %v6247_v13  ;;  %v9758_v36 = vmax.f32 %v8565_v14, 0.0  ;;  %v3322_v13 = vsel %vm1308_vm5, %v3290_v35, %v6224_v3 }
 0x328   : > { %9843 = vst [vmem:[#allocation35_spill] sm:$0xff] %v8568_v61  ;;  %2321 = vst.msk [vmem:[#allocation2 + $0x139] sm:$0xff] %vm192_vm0, %v9756_v50  ;;  %v9757_v38 = vmax.f32 %v8568_v61, 0.0  ;;  %6531 = vrot.lane.b32.xlu1 %v6520_v42, %s6853_s27  ;;  %v3321_v50 = vsel %vm1308_vm5, %v3289_v37, %v6223_v60  ;;  %v6545_v60 = vpack.i.bf16 %v8517_v12, %v8514_v21  ;;  %v6750_v21 = vld [vmem:[%s9689_s1 + $0x110] sm:$0xff]   ;;  %v6234_v12 = vunpack.i.h.bf16 %v8538_v51 }
 0x329   : > { %v3354_v47 = vsel %vm192_vm0, %v8225_v34, %v6249_v7  ;;  %v3353_v23 = vsel %vm192_vm0, %v8222_v44, %v6248_v1  ;;  %2324 = vst.msk [vmem:[#allocation2 + $0x159] sm:$0xff] %vm192_vm0, %v9758_v36  ;;  %v3449_v7 = vpack.c.bf16 %v3322_v13, %v3321_v50  ;;  %v6233_v50 = vunpack.i.l.bf16 %v8538_v51 }
 0x32a   : > { %2322 = vst.msk [vmem:[#allocation2 + $0x141] sm:$0xff] %vm192_vm0, %v9757_v38  ;;  %v3385_v34 = vsel %vm1275_vm4, %v3353_v23, %v6213_v17  ;;  %v3386_v44 = vsel %vm1275_vm4, %v3354_v47, %v6214_v29 }
 0x32b   : > { %v8597_v42 = vpop.permute.xlu1 %6251  ;;  %6541 = vrot.lane.b32.xlu0 %v6540_v15, %s6852_s21  ;;  %v3417_v20 = vsel %vm1308_vm5, %v3385_v34, %v6228_v24  ;;  %v3418_v37 = vsel %vm1308_vm5, %v3386_v44, %v6229_v31 }
 0x32c   : > { %6536 = vrot.lane.b32.xlu1 %v6525_v57, %s6851_s15  ;;  %v3450_v3 = vpack.c.bf16 %v3418_v37, %v3417_v20  ;;  %v6254_v47 = vunpack.i.h.bf16 %v8597_v42 }
 0x32d   : > { %v8605_v35 = vpop.permute.xlu0 %6261 }
 0x32e   : > { %3722 = vmatprep.mubr.bf16.mxu1 %v3450_v3  ;;  %v2371_v24 = vld [vmem:[#allocation2 + $0x150] sm:$0xff] }
 0x32f   : > { %v8609_v1 = vpop.permute.xlu1 %6256  ;;  %6546 = vrot.lane.b32.xlu0 %v6545_v60, %s6853_s27  ;;  %3723 = vmatmul.mubr.bf16.vlgmr.msra.gmra.mrb[64].mxu1 %v3449_v7  ;;  %v8612_v29 = vld [vmem:[#allocation2 + $0x138] sm:$0xff]  ;;  %v2581_v38 = vrot.slane %v2371_v24, 2  ;;  %v2501_v0 = vrot.slane %v2371_v24, 1 }
 0x330   : > { %6551 = vrot.lane.b32.xlu1 %v6540_v15, %s6853_s27  ;;  %5671 = vmatpush3.bf16.msra.mxu1 %v6750_v21  ;;  %v2372_v23 = vld [vmem:[#allocation2 + $0x158] sm:$0xff]  ;;  %v2576_v37 = vrot.slane %v8612_v29, 2  ;;  %v2373_v7 = vld [vmem:[#allocation2 + $0x160] sm:$0x3]  ;;  %v6253_v21 = vunpack.i.l.bf16 %v8597_v42 }
 0x331   : > { %v8617_v57 = vpop.permute.xlu0 %6271  ;;  %v8625_v13 = vld [vmem:[#allocation2 + $0x140] sm:$0xff]  ;;  %v8627_v34 = vld [vmem:[#allocation2 + $0x148] sm:$0x3]  ;;  %v6751_v15 = vld [vmem:[%s9689_s1 + $0x118] sm:$0xff]   ;;  %v6560_v20 = vpack.i.bf16 %v2372_v23, %v2371_v24  ;;  %v2582_v36 = vrot.slane %v2372_v23, 2  ;;  %v2584_v11 = vrot.slane %v2373_v7, 2  ;;  %v3355_v24 = vsel %vm192_vm0, %v8157_v53, %v6233_v50 }
 0x332   : > { %5670 = vmatprep.subr.bf16.mxu1 %v6751_v15  ;;  %v2577_v3 = vrot.slane %v8625_v13, 2  ;;  %v2579_v51 = vrot.slane %v8627_v34, 2  ;;  %v2502_v14 = vrot.slane %v2372_v23, 1  ;;  %v2504_v32 = vrot.slane %v2373_v7, 1 }
 0x333   : > { %v8632_v44 = vpop.permute.xlu1 %6266  ;;  %6561 = vrot.lane.b32.xlu0 %v6560_v20, %s6851_s15  ;;  %v2583_v22 = vsel %vm496_vm2, %v2581_v38, %v2582_v36  ;;  %v6258_v23 = vunpack.i.l.bf16 %v8609_v1  ;;  %v3356_v38 = vsel %vm192_vm0, %v8160_v19, %v6234_v12  ;;  %v3259_v19 = vsel %vm192_vm0, %v8162_v62, %v6253_v21 }
 0x334   : > { %6556 = vrot.lane.b32.xlu1 %v6545_v60, %s6851_s15  ;;  %v8644_v31 = vsel %vm496_vm2, %v2576_v37, %v2577_v3  ;;  %v8647_v61 = vsel %vm496_vm2, %v2577_v3, %v2579_v51  ;;  %5672 = vmatpush3.bf16.msra.mxu1 %v6751_v15  ;;  %v6570_v60 = vpack.i.bf16 %v8625_v13, %v8612_v29  ;;  %v6259_v3 = vunpack.i.h.bf16 %v8609_v1 }
 0x335   : > { %v8641_v17 = vpop.permute.xlu0 %6281  ;;  %v3484_v56 = vpack.c.bf16 %v8647_v61, %v8644_v31  ;;  %v2585_v37 = vsel %vm496_vm2, %v2582_v36, %v2584_v11  ;;  %v8662_v51 = vsel %vm415_vm3, %v2501_v0, %v2502_v14  ;;  %v6752_v36 = vld [vmem:[#allocation2 + $0x20] sm:$0xff]  ;;  %v6273_v1 = vunpack.i.l.bf16 %v8617_v57 }
 0x336   : > { %v3487_v42 = vpack.c.bf16 %v2585_v37, %v2583_v22  ;;  %9844 = vst [vmem:[#allocation36_spill] sm:$0xff] %v8662_v51  ;;  %v3260_v0 = vsel %vm192_vm0, %v6752_v36, %v6254_v47  ;;  %v2496_v12 = vrot.slane %v8612_v29, 1  ;;  %v6274_v50 = vunpack.i.h.bf16 %v8617_v57 }
 0x337   : > { %v8653_v18 = vpop.permute.xlu1 %6276  ;;  %5624 = vmatmul.mubr.msk.bf16.gmra.mrb[84].mxu0 %vm192_vm0, %v3484_v56  ;;  %6571 = vrot.lane.b32.xlu0 %v6570_v60, %s6851_s15  ;;  %v8674_v56 = vsel %vm415_vm3, %v2502_v14, %v2504_v32  ;;  %v2497_v62 = vrot.slane %v8625_v13, 1  ;;  %v2499_v21 = vrot.slane %v8627_v34, 1  ;;  %v3292_v29 = vsel %vm1275_vm4, %v3260_v0, %v6259_v3 }
 0x338   : > { %6566 = vrot.lane.b32.xlu1 %v6560_v20, %s6852_s21  ;;  %9845 = vst [vmem:[#allocation37_spill] sm:$0xff] %v8674_v56  ;;  %5627 = vmatprep.mubr.msk.bf16.mxu0 %vm192_vm0, %v3487_v42  ;;  %v9846_v20 = vld [vmem:[#allocation20_spill] sm:$0xff]  ;;  %v6580_v47 = vpack.i.bf16 %v8674_v56, %v8662_v51  ;;  %v3291_v42 = vsel %vm1275_vm4, %v3259_v19, %v6258_v23 }
 0x339   : > { %v8671_v11 = vpop.permute.xlu0 %6286  ;;  %v8703_v56 = vpack.i.bf16 %v2585_v37, %v2583_v22  ;;  %v3387_v23 = vsel %vm1275_vm4, %v3355_v24, %v6273_v1  ;;  %v3388_v22 = vsel %vm1275_vm4, %v3356_v38, %v6274_v50  ;;  %v6243_v1 = vunpack.i.l.bf16 %v8570_v8 }
 0x33a   : > { %v5597_v53 = vpop.f32.mrb[60].mxu1  ;;  %v9850_v50 = vunpack.i.l.bf16 %v8504_v4 }
 0x33b   : > { %v8684_v7 = vadd.f32 %v5597_v53, %v9846_v20  ;;  %v8686_v32 = vpop.permute.xlu1 %6291  ;;  %v2250_v14 = vpop.f32.mrb[61].mxu1  ;;  %6581 = vrot.lane.b32.xlu0 %v6580_v47, %s6852_s21  ;;  %v9847_v20 = vld [vmem:[#allocation21_spill] sm:$0xff] }
 0x33c   : > { %v5598_v36 = vpop.f32.mrb[62].mxu1  ;;  %v8696_v53 = vadd.f32 %v2250_v14, %v8248_v54  ;;  %6576 = vrot.lane.b32.xlu1 %v6570_v60, %s6852_s21  ;;  %v3323_v14 = vsel %vm1308_vm5, %v3291_v42, %v9850_v50  ;;  %v6279_v50 = vunpack.i.h.bf16 %v8653_v18 }
 0x33d   : > { %v9772_v57 = vmax.f32 %v8684_v7, 0.0  ;;  %v8700_v15 = vadd.f32 %v5598_v36, %v9847_v20  ;;  %v2253_v51 = vpop.f32.mrb[63].mxu1  ;;  %v6302_v13 = vpop.permute.xlu0 %6301  ;;  %v9851_v36 = vunpack.i.h.bf16 %v8504_v4  ;;  %v6263_v20 = vunpack.i.l.bf16 %v8605_v35 }
 0x33e   : > { %v8706_v34 = vadd.f32 %v2253_v51, %v8257_v43  ;;  %v6304_v3 = vunpack.i.h.bf16 %v6302_v13  ;;  %v9771_v54 = vmax.f32 %v8696_v53, 0.0  ;;  %v6303_v19 = vunpack.i.l.bf16 %v6302_v13 }
 0x33f   : > { %9848 = vst [vmem:[#allocation20_spill] sm:$0xff] %v8700_v15  ;;  %2327 = vst.msk [vmem:[#allocation2 + $0x181] sm:$0xff] %vm192_vm0, %v9772_v57  ;;  %v9770_v0 = vmax.f32 %v8700_v15, 0.0  ;;  %v8714_v60 = vpop.permute.xlu1 %6296  ;;  %v8719_v43 = vsel %vm415_vm3, %v2496_v12, %v2497_v62  ;;  %v8722_v51 = vsel %vm415_vm3, %v2497_v62, %v2499_v21  ;;  %6586 = vrot.lane.b32.xlu0 %v8703_v56, %s6853_s27  ;;  %v6264_v21 = vunpack.i.h.bf16 %v8605_v35 }
 0x340   : > { %9849 = vst [vmem:[#allocation21_spill] sm:$0xff] %v8706_v34  ;;  %v9769_v37 = vmax.f32 %v8706_v34, 0.0  ;;  %v3420_v24 = vsel %vm1308_vm5, %v3388_v22, %v6304_v3  ;;  %2325 = vst.msk [vmem:[#allocation2 + $0x169] sm:$0xff] %vm192_vm0, %v9771_v54  ;;  %6591 = vrot.lane.b32.xlu1 %v6580_v47, %s6853_s27  ;;  %v3419_v12 = vsel %vm1308_vm5, %v3387_v23, %v6303_v19  ;;  %v6284_v3 = vunpack.i.h.bf16 %v8641_v17 }
 0x341   : > { %2328 = vst.msk [vmem:[#allocation2 + $0x189] sm:$0xff] %vm192_vm0, %v9770_v0  ;;  %v6307_v38 = vpop.permute.xlu0 %6306  ;;  %v3324_v62 = vsel %vm1308_vm5, %v3292_v29, %v9851_v36  ;;  %v6283_v23 = vunpack.i.l.bf16 %v8641_v17  ;;  %v6595_v4 = vpack.i.bf16 %v8722_v51, %v8719_v43  ;;  %v3453_v42 = vpack.c.bf16 %v3420_v24, %v3419_v12  ;;  %v6753_v12 = vld [vmem:[#allocation2 + $0x38] sm:$0xff] }
 0x342   : > { %2326 = vst.msk [vmem:[#allocation2 + $0x171] sm:$0xff] %vm192_vm0, %v9769_v37  ;;  %v6309_v47 = vunpack.i.h.bf16 %v6307_v38  ;;  %v6308_v13 = vunpack.i.l.bf16 %v6307_v38  ;;  %v3452_v22 = vpack.c.bf16 %v3324_v62, %v3323_v14  ;;  %v6278_v38 = vunpack.i.l.bf16 %v8653_v18 }
 0x343   : > { %v8749_v19 = vpop.permute.xlu1 %6311  ;;  %6596 = vrot.lane.b32.xlu0 %v6595_v4, %s6852_s21  ;;  %3730 = vmatprep.mubr.bf16.mxu1 %v3453_v42  ;;  %v9853_v18 = vunpack.i.l.bf16 %v8543_v41 }
 0x344   : > { %v3358_v29 = vsel %vm192_vm0, %v8281_v49, %v6309_v47  ;;  %v3357_v35 = vsel %vm192_vm0, %v8278_v45, %v6308_v13  ;;  %v9852_v49 = vunpack.i.h.bf16 %v8543_v41  ;;  %6606 = vrot.lane.b32.xlu1 %v6595_v4, %s6853_s27  ;;  %3731 = vmatmul.mubr.bf16.gmra.mrb[68].mxu1 %v3452_v22  ;;  %v6754_v45 = vld [vmem:[#allocation2 + $0x30] sm:$0xff]  ;;  %v9854_v41 = vunpack.i.h.bf16 %v8570_v8 }
 0x345   : > { %v8760_v17 = vpop.permute.xlu0 %6321  ;;  %v3389_v36 = vsel %vm1275_vm4, %v3357_v35, %v6263_v20  ;;  %v3390_v24 = vsel %vm1275_vm4, %v3358_v29, %v6264_v21  ;;  %v3261_v14 = vsel %vm192_vm0, %v6754_v45, %v9853_v18  ;;  %v6600_v20 = vpack.i.bf16 %v8647_v61, %v8644_v31 }
 0x346   : > { %v3262_v47 = vsel %vm192_vm0, %v6753_v12, %v9852_v49  ;;  %v3421_v21 = vsel %vm1308_vm5, %v3389_v36, %v6283_v23  ;;  %v3422_v13 = vsel %vm1308_vm5, %v3390_v24, %v6284_v3  ;;  %v8777_v29 = vld [vmem:[#allocation2 + $0x180] sm:$0xff]  ;;  %v3293_v4 = vsel %vm1275_vm4, %v3261_v14, %v6243_v1 }
 0x347   : > { %v8771_v62 = vpop.permute.xlu1 %6316  ;;  %v3456_v42 = vpack.c.bf16 %v3422_v13, %v3421_v21  ;;  %v3294_v22 = vsel %vm1275_vm4, %v3262_v47, %v9854_v41  ;;  %v8785_v12 = vld [vmem:[#allocation2 + $0x168] sm:$0xff]  ;;  %6601 = vrot.lane.b32.xlu0 %v6600_v20, %s6853_s27  ;;  %v3325_v3 = vsel %vm1308_vm5, %v3293_v4, %v6278_v38  ;;  %v6289_v45 = vunpack.i.h.bf16 %v8671_v11 }
 0x348   : > { %v8779_v35 = vld [vmem:[#allocation2 + $0x188] sm:$0xff]  ;;  %v3326_v23 = vsel %vm1308_vm5, %v3294_v22, %v6279_v50  ;;  %6611 = vrot.lane.b32.xlu1 %v6600_v20, %s6851_s15  ;;  %v2379_v24 = vld [vmem:[#allocation2 + $0x190] sm:$0x3]  ;;  %v2586_v38 = vrot.slane %v8785_v12, 2  ;;  %v6288_v21 = vunpack.i.l.bf16 %v8671_v11  ;;  %v6313_v0 = vunpack.i.l.bf16 %v8749_v19 }
 0x349   : > { %v8788_v61 = vpop.permute.xlu0 %6331  ;;  %v8792_v31 = vpack.i.bf16 %v8779_v35, %v8777_v29  ;;  %v8796_v36 = vld [vmem:[#allocation2 + $0x170] sm:$0xff]  ;;  %v2376_v1 = vld [vmem:[#allocation2 + $0x178] sm:$0x3]  ;;  %3738 = vmatprep.mubr.bf16.mxu1 %v3456_v42  ;;  %v3455_v13 = vpack.c.bf16 %v3326_v23, %v3325_v3  ;;  %v2595_v20 = vrot.slane %v8779_v35, 1  ;;  %v6314_v42 = vunpack.i.h.bf16 %v8749_v19 }
 0x34a   : > { %v2587_v50 = vrot.slane %v8796_v36, 2  ;;  %v2589_v14 = vrot.slane %v2376_v1, 2  ;;  %v2597_v37 = vrot.slane %v2379_v24, 1  ;;  %v6319_v54 = vunpack.i.h.bf16 %v8771_v62 }
 0x34b   : > { %v8803_v18 = vpop.permute.xlu1 %6326  ;;  %6621 = vrot.lane.b32.xlu0 %v8792_v31, %s6851_s15  ;;  %v2594_v3 = vrot.slane %v8777_v29, 1  ;;  %v6625_v57 = vpack.i.bf16 %v8796_v36, %v8785_v12  ;;  %v6318_v19 = vunpack.i.l.bf16 %v8771_v62  ;;  %v6268_v47 = vunpack.i.l.bf16 %v8632_v44 }
 0x34c   : > { %v2588_v41 = vsel %vm496_vm2, %v2586_v38, %v2587_v50  ;;  %v2590_v22 = vsel %vm496_vm2, %v2587_v50, %v2589_v14  ;;  %6616 = vrot.lane.b32.xlu1 %v8703_v56, %s6851_s15  ;;  %3739 = vmatmul.mubr.bf16.gmra.mrb[72].mxu1 %v3455_v13  ;;  %v2506_v38 = vrot.slane %v8785_v12, 1  ;;  %v2507_v50 = vrot.slane %v8796_v36, 1 }
 0x34d   : > { %v8812_v4 = vpop.permute.xlu0 %6341  ;;  %v3490_v11 = vpack.c.bf16 %v2590_v22, %v2588_v41  ;;  %v2509_v14 = vrot.slane %v2376_v1, 1  ;;  %v8830_v56 = vsel %vm415_vm3, %v2594_v3, %v2595_v20  ;;  %v8833_v13 = vsel %vm415_vm3, %v2595_v20, %v2597_v37  ;;  %v6756_v37 = vld [vmem:[#allocation2 + $0x48] sm:$0xff] }
 0x34e   : > { %v3360_v49 = vsel %vm192_vm0, %v8243_v26, %v6289_v45  ;;  %v8842_v1 = vsel %vm415_vm3, %v2506_v38, %v2507_v50  ;;  %v3263_v20 = vsel %vm192_vm0, %v6756_v37, %v6313_v0  ;;  %v6334_v34 = vunpack.i.h.bf16 %v8788_v61 }
 0x34f   : > { %v8821_v23 = vpop.permute.xlu1 %6336  ;;  %5628 = vmatmul.mubr.msk.bf16.gmra.mrb[88].mxu0 %vm192_vm0, %v3490_v11  ;;  %6626 = vrot.lane.b32.xlu0 %v6625_v57, %s6851_s15  ;;  %v8845_v62 = vsel %vm415_vm3, %v2507_v50, %v2509_v14  ;;  %v6755_v11 = vld [vmem:[#allocation2 + $0x50] sm:$0xff]  ;;  %v6333_v26 = vunpack.i.l.bf16 %v8788_v61  ;;  %v6635_v38 = vpack.i.bf16 %v8833_v13, %v8830_v56  ;;  %v2631_v50 = vrot.slane %v8777_v29, 2 }
 0x350   : > { %v3264_v3 = vsel %vm192_vm0, %v6755_v11, %v6314_v42  ;;  %6631 = vrot.lane.b32.xlu1 %v6625_v57, %s6852_s21  ;;  %v2632_v14 = vrot.slane %v8779_v35, 2  ;;  %v2634_v15 = vrot.slane %v2379_v24, 2  ;;  %v3359_v42 = vsel %vm192_vm0, %v8240_v5, %v6288_v21 }
 0x351   : > { %v8839_v8 = vpop.permute.xlu0 %6346  ;;  %v3295_v0 = vsel %vm1275_vm4, %v3263_v20, %v6318_v19  ;;  %v3296_v11 = vsel %vm1275_vm4, %v3264_v3, %v6319_v54  ;;  %v6665_v57 = vpack.i.bf16 %v8845_v62, %v8842_v1  ;;  %v6294_v61 = vunpack.i.h.bf16 %v8686_v32 }
 0x352   : > { %v6293_v37 = vunpack.i.l.bf16 %v8686_v32  ;;  %v8868_v35 = vsel %vm496_vm2, %v2631_v50, %v2632_v14  ;;  %v8871_v24 = vsel %vm496_vm2, %v2632_v14, %v2634_v15  ;;  %v3391_v5 = vsel %vm1275_vm4, %v3359_v42, %v6333_v26  ;;  %v6757_v14 = vld [vmem:[#allocation2 + $0x68] sm:$0xff] }
 0x353   : > { %v8852_v45 = vpop.permute.xlu1 %6351  ;;  %6636 = vrot.lane.b32.xlu0 %v6635_v38, %s6852_s21  ;;  %v3392_v54 = vsel %vm1275_vm4, %v3360_v49, %v6334_v34  ;;  %v3327_v32 = vsel %vm1308_vm5, %v3295_v0, %v6268_v47  ;;  %v9855_v20 = vunpack.i.h.bf16 %v8632_v44  ;;  %v3493_v15 = vpack.c.bf16 %v8871_v24, %v8868_v35 }
 0x354   : > { %6666 = vrot.lane.b32.xlu1 %v6665_v57, %s6853_s27  ;;  %v6298_v50 = vunpack.i.l.bf16 %v8714_v60  ;;  %v6670_v26 = vpack.i.bf16 %v2590_v22, %v2588_v41  ;;  %v3266_v42 = vsel %vm192_vm0, %v6757_v14, %v6294_v61  ;;  %v6299_v44 = vunpack.i.h.bf16 %v8714_v60  ;;  %v2382_v60 = vld [vmem:[#allocation2 + $0x1a8] sm:$0x3] }
 0x355   : > { %v6362_v29 = vpop.permute.xlu0 %6361  ;;  %v3328_v38 = vsel %vm1308_vm5, %v3296_v11, %v9855_v20  ;;  %v6338_v20 = vunpack.i.l.bf16 %v8821_v23  ;;  %v6323_v61 = vunpack.i.l.bf16 %v8760_v17  ;;  %v2647_v14 = vrot.slane %v2382_v60, 2 }
 0x356   : > { %v6364_v21 = vunpack.i.h.bf16 %v6362_v29  ;;  %v6363_v19 = vunpack.i.l.bf16 %v6362_v29  ;;  %v6758_v29 = vld [vmem:[#allocation2 + $0x60] sm:$0xff] }
 0x357   : > { %v8876_v3 = vpop.permute.xlu1 %6356  ;;  %v3265_v47 = vsel %vm192_vm0, %v6758_v29, %v6293_v37  ;;  %6641 = vrot.lane.b32.xlu0 %v6665_v57, %s6852_s21 }
 0x358   : > { %v3423_v34 = vsel %vm1308_vm5, %v3391_v5, %v6363_v19  ;;  %v3424_v49 = vsel %vm1308_vm5, %v3392_v54, %v6364_v21  ;;  %6671 = vrot.lane.b32.xlu1 %v6670_v26, %s6851_s15  ;;  %v3458_v5 = vpack.c.bf16 %v3328_v38, %v3327_v32  ;;  %v6324_v54 = vunpack.i.h.bf16 %v8760_v17 }
 0x359   : > { %v6367_v0 = vpop.permute.xlu0 %6366  ;;  %v3459_v11 = vpack.c.bf16 %v3424_v49, %v3423_v34  ;;  %v6339_v21 = vunpack.i.h.bf16 %v8821_v23  ;;  %v3297_v57 = vsel %vm1275_vm4, %v3265_v47, %v6298_v50  ;;  %v6344_v32 = vunpack.i.h.bf16 %v8812_v4 }
 0x35a   : > { %v6369_v41 = vunpack.i.h.bf16 %v6367_v0  ;;  %v6368_v22 = vunpack.i.l.bf16 %v6367_v0  ;;  %v6343_v38 = vunpack.i.l.bf16 %v8812_v4  ;;  %v3298_v50 = vsel %vm1275_vm4, %v3266_v42, %v6299_v44  ;;  %v6759_v44 = vld [vmem:[#allocation2 + $0x1a0] sm:$0xff] }
 0x35b   : > { %v6372_v37 = vpop.permute.xlu1 %6371  ;;  %3746 = vmatprep.mubr.bf16.mxu1 %v3459_v11  ;;  %6646 = vrot.lane.b32.xlu0 %v6670_v26, %s6853_s27  ;;  %v6650_v4 = vpack.i.bf16 %v8871_v24, %v8868_v35  ;;  %v3330_v0 = vsel %vm1308_vm5, %v3298_v50, %v6339_v21 }
 0x35c   : > { %v3362_v19 = vsel %vm192_vm0, %v8343_v27, %v6369_v41  ;;  %v3361_v34 = vsel %vm192_vm0, %v8340_v33, %v6368_v22  ;;  %3747 = vmatmul.mubr.bf16.gmra.mrb[76].mxu1 %v3458_v5  ;;  %6676 = vrot.lane.b32.xlu1 %v8792_v31, %s6852_s21  ;;  %v3329_v33 = vsel %vm1308_vm5, %v3297_v57, %v6338_v20  ;;  %v2642_v27 = vrot.slane %v2382_v60, 1  ;;  %v6760_v31 = vld [vmem:[#allocation2 + $0x198] sm:$0xff] }
 0x35d   : > { %v8904_v17 = vpop.permute.xlu0 %6381  ;;  %v3393_v23 = vsel %vm1275_vm4, %v3361_v34, %v6323_v61  ;;  %v3394_v49 = vsel %vm1275_vm4, %v3362_v19, %v6324_v54  ;;  %v6655_v41 = vpack.i.bf16 %v6759_v44, %v6760_v31  ;;  %v3461_v20 = vpack.c.bf16 %v3330_v0, %v3329_v33 }
 0x35e   : > { %v3425_v26 = vsel %vm1308_vm5, %v3393_v23, %v6343_v38  ;;  %v3426_v47 = vsel %vm1308_vm5, %v3394_v49, %v6344_v32  ;;  %v9856_v22 = vrot.slane %v8364_v58, 1  ;;  %v9857_v5 = vrot.slane %v8367_v55, 1 }
 0x35f   : > { %v6377_v29 = vpop.permute.xlu1 %6376  ;;  %v3462_v11 = vpack.c.bf16 %v3426_v47, %v3425_v26  ;;  %6651 = vrot.lane.b32.xlu0 %v6650_v4, %s6853_s27  ;;  %v9859_v57 = vrot.slane %v8364_v58, 2  ;;  %v6374_v38 = vunpack.i.h.bf16 %v6372_v37  ;;  %v6373_v23 = vunpack.i.l.bf16 %v6372_v37  ;;  %v6761_v4 = vld [vmem:[#allocation2 + $0x80] sm:$0xff]  ;;  %v6762_v47 = vld [vmem:[#allocation2 + $0x78] sm:$0xff] }
 0x360   : > { %v2641_v54 = vsel %vm415_vm3, %v9857_v5, %v9856_v22  ;;  %v9858_v61 = vmov %v9856_v22  ;;  %v6379_v50 = vunpack.i.h.bf16 %v6377_v29  ;;  %v6378_v33 = vunpack.i.l.bf16 %v6377_v29 }
 0x361   : > { %v6392_v42 = vpop.permute.xlu0 %6391  ;;  %3754 = vmatprep.mubr.bf16.mxu1 %v3462_v11  ;;  %v2643_v60 = vsel %vm415_vm3, %v9858_v61, %v2642_v27  ;;  %v8931_v19 = vsel %vm496_vm2, %v9859_v57, %v2647_v14  ;;  %v6349_v27 = vunpack.i.h.bf16 %v8839_v8  ;;  %v6348_v14 = vunpack.i.l.bf16 %v8839_v8 }
 0x362   : > { %v6660_v32 = vpack.i.bf16 %v2643_v60, %v2641_v54  ;;  %v3496_v55 = vpack.c.bf16 %v8931_v19, %v8375_v2  ;;  %v3268_v26 = vsel %vm192_vm0, %v6761_v4, %v6374_v38  ;;  %v3267_v0 = vsel %vm192_vm0, %v6762_v47, %v6373_v23 }
 0x363   : > { %v8926_v21 = vpop.permute.xlu1 %6386  ;;  %6656 = vrot.lane.b32.xlu0 %v6655_v41, %s6851_s15  ;;  %v6394_v11 = vunpack.i.h.bf16 %v6392_v42  ;;  %v6393_v37 = vunpack.i.l.bf16 %v6392_v42  ;;  %v3299_v29 = vsel %vm1275_vm4, %v3267_v0, %v6378_v33  ;;  %v3300_v31 = vsel %vm1275_vm4, %v3268_v26, %v6379_v50 }
 0x364   : > { %3755 = vmatmul.mubr.bf16.gmra.mrb[80].mxu1 %v3461_v20  ;;  %v6329_v41 = vunpack.i.h.bf16 %v8803_v18  ;;  %v6328_v20 = vunpack.i.l.bf16 %v8803_v18  ;;  %v3364_v8 = vsel %vm192_vm0, %v8315_v48, %v6349_v27  ;;  %v3363_v5 = vsel %vm192_vm0, %v8312_v52, %v6348_v14 }
 0x365   : > { %v8934_v34 = vpop.permute.xlu0 %6401  ;;  %v3395_v42 = vsel %vm1275_vm4, %v3363_v5, %v6393_v37  ;;  %v3396_v60 = vsel %vm1275_vm4, %v3364_v8, %v6394_v11  ;;  %v6354_v18 = vunpack.i.h.bf16 %v8852_v45  ;;  %v6353_v23 = vunpack.i.l.bf16 %v8852_v45 }
 0x366   : > { %v3332_v38 = vsel %vm1308_vm5, %v3300_v31, %v6329_v41  ;;  %v6359_v50 = vunpack.i.h.bf16 %v8876_v3  ;;  %v6358_v14 = vunpack.i.l.bf16 %v8876_v3  ;;  %v6384_v0 = vunpack.i.h.bf16 %v8904_v17  ;;  %v6763_v31 = vld [vmem:[#allocation2 + $0x98] sm:$0xff] }
 0x367   : > { %v8938_v49 = vpop.permute.xlu1 %6396  ;;  %6661 = vrot.lane.b32.xlu0 %v6660_v32, %s6852_s21  ;;  %v3331_v32 = vsel %vm1308_vm5, %v3299_v29, %v6328_v20  ;;  %v6383_v11 = vunpack.i.l.bf16 %v8904_v17  ;;  %v3270_v41 = vsel %vm192_vm0, %v6763_v31, %v6354_v18  ;;  %v6764_v20 = vld [vmem:[#allocation2 + $0x90] sm:$0xff]  ;;  %v6404_v17 = vunpack.i.h.bf16 %v8934_v34  ;;  %v6766_v31 = vld [vmem:[#allocation2 + $0xa8] sm:$0xff] }
 0x368   : > { %v3464_v47 = vpack.c.bf16 %v3332_v38, %v3331_v32  ;;  %v6399_v37 = vunpack.i.h.bf16 %v8938_v49  ;;  %v6398_v45 = vunpack.i.l.bf16 %v8938_v49  ;;  %v6403_v5 = vunpack.i.l.bf16 %v8934_v34 }
 0x369   : > { %v8941_v58 = vpop.permute.xlu0 %6406 }
 0x36b   : > { %v8947_v44 = vpop.permute.xlu1 %6411 }
 0x36d   : > { %v6422_v22 = vpop.permute.xlu0 %6421 }
 0x36e   : > { %v6424_v54 = vunpack.i.h.bf16 %v6422_v22  ;;  %v6423_v61 = vunpack.i.l.bf16 %v6422_v22  ;;  %v3269_v22 = vsel %vm192_vm0, %v6764_v20, %v6353_v23 }
 0x36f   : > { %v8959_v57 = vpop.permute.xlu1 %6416 }
 0x370   : > { %v3427_v48 = vsel %vm1308_vm5, %v3395_v42, %v6423_v61  ;;  %v3428_v52 = vsel %vm1308_vm5, %v3396_v60, %v6424_v54  ;;  %v3301_v42 = vsel %vm1275_vm4, %v3269_v22, %v6358_v14  ;;  %v3302_v60 = vsel %vm1275_vm4, %v3270_v41, %v6359_v50 }
 0x371   : > { %v6427_v33 = vpop.permute.xlu0 %6426  ;;  %v3465_v27 = vpack.c.bf16 %v3428_v52, %v3427_v48  ;;  %v3333_v38 = vsel %vm1308_vm5, %v3301_v42, %v6398_v45  ;;  %v3334_v18 = vsel %vm1308_vm5, %v3302_v60, %v6399_v37  ;;  %v6765_v37 = vld [vmem:[#allocation2 + $0xb0] sm:$0xff] }
 0x372   : > { %v6429_v4 = vunpack.i.h.bf16 %v6427_v33  ;;  %v6428_v26 = vunpack.i.l.bf16 %v6427_v33  ;;  %v3467_v48 = vpack.c.bf16 %v3334_v18, %v3333_v38 }
 0x373   : > { %v6432_v29 = vpop.permute.xlu1 %6431  ;;  %3762 = vmatprep.mubr.bf16.mxu1 %v3465_v27 }
 0x374   : > { %v3366_v3 = vsel %vm192_vm0, %v8416_v40, %v6429_v4  ;;  %v3365_v8 = vsel %vm192_vm0, %v8413_v28, %v6428_v26  ;;  %3763 = vmatmul.mubr.bf16.gmra.mrb[84].mxu1 %v3464_v47  ;;  %v6434_v27 = vunpack.i.h.bf16 %v6432_v29  ;;  %v6433_v50 = vunpack.i.l.bf16 %v6432_v29 }
 0x375   : > { %v8981_v49 = vpop.permute.xlu0 %6441  ;;  %v3397_v54 = vsel %vm1275_vm4, %v3365_v8, %v6383_v11  ;;  %v3398_v61 = vsel %vm1275_vm4, %v3366_v3, %v6384_v0  ;;  %v6409_v0 = vunpack.i.h.bf16 %v8941_v58  ;;  %v6408_v11 = vunpack.i.l.bf16 %v8941_v58 }
 0x376   : > { %v3429_v40 = vsel %vm1308_vm5, %v3397_v54, %v6403_v5  ;;  %v3430_v28 = vsel %vm1308_vm5, %v3398_v61, %v6404_v17  ;;  %v3272_v45 = vsel %vm192_vm0, %v6765_v37, %v6434_v27  ;;  %v3271_v41 = vsel %vm192_vm0, %v6766_v31, %v6433_v50 }
 0x377   : > { %v6437_v32 = vpop.permute.xlu1 %6436  ;;  %v3468_v34 = vpack.c.bf16 %v3430_v28, %v3429_v40  ;;  %v6389_v17 = vunpack.i.h.bf16 %v8926_v21  ;;  %v6388_v5 = vunpack.i.l.bf16 %v8926_v21  ;;  %v3368_v58 = vsel %vm192_vm0, %v8388_v30, %v6409_v0 }
 0x378   : > { %v6439_v4 = vunpack.i.h.bf16 %v6437_v32  ;;  %v6438_v26 = vunpack.i.l.bf16 %v6437_v32  ;;  %v3367_v61 = vsel %vm192_vm0, %v8385_v6, %v6408_v11  ;;  %v6414_v21 = vunpack.i.h.bf16 %v8947_v44 }
 0x379   : > { %v6452_v23 = vpop.permute.xlu0 %6451  ;;  %3770 = vmatprep.mubr.bf16.mxu1 %v3468_v34  ;;  %v6413_v34 = vunpack.i.l.bf16 %v8947_v44  ;;  %v6418_v50 = vunpack.i.l.bf16 %v8959_v57  ;;  %v6444_v11 = vunpack.i.h.bf16 %v8981_v49  ;;  %v6443_v37 = vunpack.i.l.bf16 %v8981_v49 }
 0x37a   : > { %v6454_v20 = vunpack.i.h.bf16 %v6452_v23  ;;  %v6453_v22 = vunpack.i.l.bf16 %v6452_v23  ;;  %v3303_v29 = vsel %vm1275_vm4, %v3271_v41, %v6438_v26  ;;  %v3304_v8 = vsel %vm1275_vm4, %v3272_v45, %v6439_v4  ;;  %v6767_v41 = vld [vmem:[#allocation2 + $0xc8] sm:$0xff] }
 0x37b   : > { %v8991_v52 = vpop.permute.xlu1 %6446  ;;  %v3335_v38 = vsel %vm1308_vm5, %v3303_v29, %v6388_v5  ;;  %v3336_v18 = vsel %vm1308_vm5, %v3304_v8, %v6389_v17  ;;  %v6419_v23 = vunpack.i.h.bf16 %v8959_v57 }
 0x37c   : > { %3771 = vmatmul.mubr.bf16.gmra.mrb[88].mxu1 %v3467_v48  ;;  %v3399_v32 = vsel %vm1275_vm4, %v3367_v61, %v6453_v22  ;;  %v3400_v40 = vsel %vm1275_vm4, %v3368_v58, %v6454_v20  ;;  %v3470_v0 = vpack.c.bf16 %v3336_v18, %v3335_v38  ;;  %v3274_v20 = vsel %vm192_vm0, %v6767_v41, %v6414_v21  ;;  %v6768_v22 = vld [vmem:[#allocation2 + $0xc0] sm:$0xff]  ;;  %v6770_v41 = vld [vmem:[#allocation2 + $0xd8] sm:$0xff] }
 0x37d   : > { %v8993_v33 = vpop.permute.xlu0 %6461  ;;  %v3273_v29 = vsel %vm192_vm0, %v6768_v22, %v6413_v34  ;;  %v3306_v61 = vsel %vm1275_vm4, %v3274_v20, %v6419_v23 }
 0x37e   : > { %v6464_v49 = vunpack.i.h.bf16 %v8993_v33  ;;  %v6463_v17 = vunpack.i.l.bf16 %v8993_v33  ;;  %v3305_v58 = vsel %vm1275_vm4, %v3273_v29, %v6418_v50 }
 0x37f   : > { %v8995_v14 = vpop.permute.xlu1 %6456 }
 0x380   : > { %v6459_v45 = vunpack.i.h.bf16 %v8995_v14  ;;  %v6458_v44 = vunpack.i.l.bf16 %v8995_v14 }
 0x381   : > { %v8997_v47 = vpop.permute.xlu0 %6466 }
 0x383   : > { %v9003_v3 = vpop.permute.xlu1 %6471 }
 0x385   : > { %v6482_v54 = vpop.permute.xlu0 %6481 }
 0x386   : > { %v6484_v42 = vunpack.i.h.bf16 %v6482_v54  ;;  %v6483_v60 = vunpack.i.l.bf16 %v6482_v54 }
 0x387   : > { %v9015_v28 = vpop.permute.xlu1 %6476 }
 0x388   : > { %v3431_v30 = vsel %vm1308_vm5, %v3399_v32, %v6483_v60  ;;  %v3432_v6 = vsel %vm1308_vm5, %v3400_v40, %v6484_v42  ;;  %v3337_v60 = vsel %vm1308_vm5, %v3305_v58, %v6458_v44  ;;  %v3338_v32 = vsel %vm1308_vm5, %v3306_v61, %v6459_v45  ;;  %v6769_v45 = vld [vmem:[#allocation2 + $0xe0] sm:$0xff] }
 0x389   : > { %v6487_v48 = vpop.permute.xlu0 %6486  ;;  %v3471_v27 = vpack.c.bf16 %v3432_v6, %v3431_v30  ;;  %v3473_v18 = vpack.c.bf16 %v3338_v32, %v3337_v60 }
 0x38a   : > { %v6489_v4 = vunpack.i.h.bf16 %v6487_v48  ;;  %v6488_v26 = vunpack.i.l.bf16 %v6487_v48 }
 0x38b   : > { %v6492_v31 = vpop.permute.xlu1 %6491  ;;  %3778 = vmatprep.mubr.bf16.mxu1 %v3471_v27 }
 0x38c   : > { %v3370_v57 = vsel %vm192_vm0, %v8478_v9, %v6489_v4  ;;  %v3369_v8 = vsel %vm192_vm0, %v8475_v59, %v6488_v26  ;;  %3779 = vmatmul.mubr.bf16.gmra.mrb[92].mxu1 %v3470_v0  ;;  %v6494_v48 = vunpack.i.h.bf16 %v6492_v31  ;;  %v6493_v27 = vunpack.i.l.bf16 %v6492_v31 }
 0x38d   : > { %v9037_v14 = vpop.permute.xlu0 %6501  ;;  %v3401_v5 = vsel %vm1275_vm4, %v3369_v8, %v6443_v37  ;;  %v3402_v54 = vsel %vm1275_vm4, %v3370_v57, %v6444_v11  ;;  %v6469_v11 = vunpack.i.h.bf16 %v8997_v47  ;;  %v6468_v37 = vunpack.i.l.bf16 %v8997_v47 }
 0x38e   : > { %v3433_v9 = vsel %vm1308_vm5, %v3401_v5, %v6463_v17  ;;  %v3434_v59 = vsel %vm1308_vm5, %v3402_v54, %v6464_v49  ;;  %v3276_v44 = vsel %vm192_vm0, %v6769_v45, %v6494_v48  ;;  %v3275_v20 = vsel %vm192_vm0, %v6770_v41, %v6493_v27 }
 0x38f   : > { %v6497_v42 = vpop.permute.xlu1 %6496  ;;  %v3474_v33 = vpack.c.bf16 %v3434_v59, %v3433_v9  ;;  %v6449_v49 = vunpack.i.h.bf16 %v8991_v52  ;;  %v6448_v17 = vunpack.i.l.bf16 %v8991_v52  ;;  %v3372_v47 = vsel %vm192_vm0, %v8450_v25, %v6469_v11 }
 0x390   : > { %v6499_v4 = vunpack.i.h.bf16 %v6497_v42  ;;  %v6498_v26 = vunpack.i.l.bf16 %v6497_v42  ;;  %v3371_v54 = vsel %vm192_vm0, %v8447_v39, %v6468_v37  ;;  %v6474_v25 = vunpack.i.h.bf16 %v9003_v3 }
 0x391   : > { %v6512_v40 = vpop.permute.xlu0 %6511  ;;  %3786 = vmatprep.mubr.bf16.mxu1 %v3474_v33  ;;  %v6473_v39 = vunpack.i.l.bf16 %v9003_v3  ;;  %v6478_v27 = vunpack.i.l.bf16 %v9015_v28  ;;  %v6504_v37 = vunpack.i.h.bf16 %v9037_v14  ;;  %v6503_v45 = vunpack.i.l.bf16 %v9037_v14  ;;  %v6717_v3 = vld [vmem:[%s9690_s2 + $0x8] sm:$0xff]  }
 0x392   : > { %v9047_v38 = vpop.f32.mrb[64].mxu0  ;;  %v6514_v22 = vunpack.i.h.bf16 %v6512_v40  ;;  %v6513_v29 = vunpack.i.l.bf16 %v6512_v40  ;;  %v3307_v31 = vsel %vm1275_vm4, %v3275_v20, %v6498_v26  ;;  %v3308_v8 = vsel %vm1275_vm4, %v3276_v44, %v6499_v4  ;;  %5635 = vmatprep.subr.bf16.mxu0 %v6717_v3 }
 0x393   : > { %v9049_v21 = vpop.permute.xlu1 %6506  ;;  %v9051_v34 = vpop.f32.mrb[65].mxu0  ;;  %v3339_v60 = vsel %vm1308_vm5, %v3307_v31, %v6448_v17  ;;  %v3340_v32 = vsel %vm1308_vm5, %v3308_v8, %v6449_v49  ;;  %v6479_v40 = vunpack.i.h.bf16 %v9015_v28  ;;  %v6771_v31 = vld [vmem:[#allocation2 + $0xf8] sm:$0xff]  ;;  %v6772_v8 = vld [vmem:[#allocation2 + $0xf0] sm:$0xff]  ;;  %5636 = vmatpush3.bf16.msra.mxu0 %v6717_v3 }
 0x394   : > { %3787 = vmatmul.mubr.bf16.gmra.mrb[96].mxu1 %v3473_v18  ;;  %v9053_v30 = vpop.f32.mrb[66].mxu0  ;;  %v3403_v42 = vsel %vm1275_vm4, %v3371_v54, %v6513_v29  ;;  %v3404_v9 = vsel %vm1275_vm4, %v3372_v47, %v6514_v22  ;;  %v3476_v11 = vpack.c.bf16 %v3340_v32, %v3339_v60  ;;  %v3277_v49 = vsel %vm192_vm0, %v6772_v8, %v6473_v39  ;;  %v6773_v3 = vld [vmem:[#allocation2 + $0x110] sm:$0xff] }
 0x395   : > { %v9055_v6 = vpop.f32.mrb[67].mxu0  ;;  %v9057_v23 = vpop.permute.xlu0 %6521  ;;  %v6509_v8 = vunpack.i.h.bf16 %v9049_v21 }
 0x396   : > { %v6524_v22 = vunpack.i.h.bf16 %v9057_v23  ;;  %v6523_v28 = vunpack.i.l.bf16 %v9057_v23  ;;  %v3309_v23 = vsel %vm1275_vm4, %v3277_v49, %v6478_v27  ;;  %v6508_v49 = vunpack.i.l.bf16 %v9049_v21 }
 0x397   : > { %v9059_v50 = vpop.permute.xlu1 %6516 }
 0x398   : > { %v6519_v44 = vunpack.i.h.bf16 %v9059_v50  ;;  %v6518_v41 = vunpack.i.l.bf16 %v9059_v50  ;;  %v3278_v50 = vsel %vm192_vm0, %v6771_v31, %v6474_v25 }
 0x399   : > { %v9061_v0 = vpop.permute.xlu0 %6526  ;;  %v3310_v47 = vsel %vm1275_vm4, %v3278_v50, %v6479_v40 }
 0x39b   : > { %v9067_v57 = vpop.permute.xlu1 %6531 }
 0x39d   : > { %v6542_v5 = vpop.permute.xlu0 %6541 }
 0x39e   : > { %v6544_v58 = vunpack.i.h.bf16 %v6542_v5  ;;  %v6543_v61 = vunpack.i.l.bf16 %v6542_v5 }
 0x39f   : > { %v9079_v59 = vpop.permute.xlu1 %6536 }
 0x3a0   : > { %v3435_v52 = vsel %vm1308_vm5, %v3403_v42, %v6543_v61  ;;  %v3436_v33 = vsel %vm1308_vm5, %v3404_v9, %v6544_v58  ;;  %v3341_v42 = vsel %vm1308_vm5, %v3309_v23, %v6518_v41  ;;  %v3342_v9 = vsel %vm1308_vm5, %v3310_v47, %v6519_v44 }
 0x3a1   : > { %v6547_v18 = vpop.permute.xlu0 %6546  ;;  %v3477_v48 = vpack.c.bf16 %v3436_v33, %v3435_v52  ;;  %v3479_v32 = vpack.c.bf16 %v3342_v9, %v3341_v42  ;;  %v6529_v44 = vunpack.i.h.bf16 %v9061_v0  ;;  %v6528_v41 = vunpack.i.l.bf16 %v9061_v0 }
 0x3a2   : > { %v6549_v4 = vunpack.i.h.bf16 %v6547_v18  ;;  %v6548_v26 = vunpack.i.l.bf16 %v6547_v18 }
 0x3a3   : > { %v6552_v20 = vpop.permute.xlu1 %6551  ;;  %3794 = vmatprep.mubr.bf16.mxu1 %v3477_v48  ;;  %v3376_v0 = vsel %vm192_vm0, %v8526_v63, %v6529_v44  ;;  %v6534_v63 = vunpack.i.h.bf16 %v9067_v57 }
 0x3a4   : > { %v3374_v29 = vsel %vm192_vm0, %v8558_v16, %v6549_v4  ;;  %v3373_v14 = vsel %vm192_vm0, %v8555_v10, %v6548_v26  ;;  %3795 = vmatmul.mubr.bf16.gmra.mrb[100].mxu1 %v3476_v11  ;;  %v6554_v27 = vunpack.i.h.bf16 %v6552_v20  ;;  %v6553_v4 = vunpack.i.l.bf16 %v6552_v20 }
 0x3a5   : > { %v3405_v17 = vsel %vm1275_vm4, %v3373_v14, %v6503_v45  ;;  %v3406_v5 = vsel %vm1275_vm4, %v3374_v29, %v6504_v37  ;;  %v9110_v54 = vpop.permute.xlu0 %6561 }
 0x3a6   : > { %v3437_v16 = vsel %vm1308_vm5, %v3405_v17, %v6523_v28  ;;  %v3438_v10 = vsel %vm1308_vm5, %v3406_v5, %v6524_v22  ;;  %v3280_v22 = vsel %vm192_vm0, %v6773_v3, %v6554_v27  ;;  %v6774_v28 = vld [vmem:[#allocation2 + $0x108] sm:$0xff]  ;;  %v3375_v5 = vsel %vm192_vm0, %v8523_v46, %v6528_v41 }
 0x3a7   : > { %v6557_v58 = vpop.permute.xlu1 %6556  ;;  %v3480_v61 = vpack.c.bf16 %v3438_v10, %v3437_v16  ;;  %v3279_v29 = vsel %vm192_vm0, %v6774_v28, %v6553_v4  ;;  %v6533_v46 = vunpack.i.l.bf16 %v9067_v57  ;;  %v6538_v4 = vunpack.i.l.bf16 %v9079_v59 }
 0x3a8   : > { %v6559_v26 = vunpack.i.h.bf16 %v6557_v58  ;;  %v6558_v11 = vunpack.i.l.bf16 %v6557_v58  ;;  %v6564_v3 = vunpack.i.h.bf16 %v9110_v54 }
 0x3a9   : > { %3802 = vmatprep.mubr.bf16.mxu1 %v3480_v61  ;;  %v6572_v52 = vpop.permute.xlu0 %6571 }
 0x3aa   : > { %v9114_v60 = vpop.f32.mrb[68].mxu0  ;;  %v6574_v14 = vunpack.i.h.bf16 %v6572_v52  ;;  %v6573_v31 = vunpack.i.l.bf16 %v6572_v52  ;;  %v3311_v20 = vsel %vm1275_vm4, %v3279_v29, %v6558_v11  ;;  %v3312_v50 = vsel %vm1275_vm4, %v3280_v22, %v6559_v26 }
 0x3ab   : > { %v9116_v33 = vpop.permute.xlu1 %6566  ;;  %v9118_v25 = vpop.f32.mrb[69].mxu0  ;;  %v3343_v61 = vsel %vm1308_vm5, %v3311_v20, %v6508_v49  ;;  %v3344_v42 = vsel %vm1308_vm5, %v3312_v50, %v6509_v8  ;;  %v6563_v22 = vunpack.i.l.bf16 %v9110_v54  ;;  %v6775_v20 = vld [vmem:[#allocation2 + $0x128] sm:$0xff]  ;;  %v6776_v54 = vld [vmem:[#allocation2 + $0x120] sm:$0xff] }
 0x3ac   : > { %3803 = vmatmul.mubr.bf16.gmra.mrb[104].mxu1 %v3479_v32  ;;  %v9120_v39 = vpop.f32.mrb[70].mxu0  ;;  %v3407_v10 = vsel %vm1275_vm4, %v3375_v5, %v6573_v31  ;;  %v3408_v58 = vsel %vm1275_vm4, %v3376_v0, %v6574_v14  ;;  %v6539_v32 = vunpack.i.h.bf16 %v9079_v59  ;;  %v3482_v41 = vpack.c.bf16 %v3344_v42, %v3343_v61 }
 0x3ad   : > { %v9122_v40 = vpop.f32.mrb[71].mxu0  ;;  %v9124_v18 = vpop.permute.xlu0 %6581  ;;  %v3282_v50 = vsel %vm192_vm0, %v6775_v20, %v6534_v63  ;;  %v3281_v8 = vsel %vm192_vm0, %v6776_v54, %v6533_v46  ;;  %v6568_v20 = vunpack.i.l.bf16 %v9116_v33 }
 0x3ae   : > { %v6584_v57 = vunpack.i.h.bf16 %v9124_v18  ;;  %v6583_v14 = vunpack.i.l.bf16 %v9124_v18  ;;  %v3313_v18 = vsel %vm1275_vm4, %v3281_v8, %v6538_v4  ;;  %v9861_v8 = vld [vmem:[#allocation36_spill] sm:$0xff] }
 0x3af   : > { %v9126_v48 = vpop.permute.xlu1 %6576 }
 0x3b0   : > { %v6579_v28 = vunpack.i.h.bf16 %v9126_v48  ;;  %v6578_v29 = vunpack.i.l.bf16 %v9126_v48 }
 0x3b1   : > { %v9128_v37 = vpop.permute.xlu0 %6586 }
 0x3b3   : > { %v9130_v45 = vpop.permute.xlu1 %6591 }
 0x3b5   : > { %v6597_v17 = vpop.permute.xlu0 %6596 }
 0x3b6   : > { %v6599_v23 = vunpack.i.h.bf16 %v6597_v17  ;;  %v6598_v47 = vunpack.i.l.bf16 %v6597_v17 }
 0x3b7   : > { %v9144_v16 = vpop.permute.xlu1 %6606 }
 0x3b8   : > { %v3439_v21 = vsel %vm1308_vm5, %v3407_v10, %v6598_v47  ;;  %v3440_v9 = vsel %vm1308_vm5, %v3408_v58, %v6599_v23  ;;  %v3345_v47 = vsel %vm1308_vm5, %v3313_v18, %v6578_v29  ;;  %v6609_v46 = vunpack.i.h.bf16 %v9144_v16 }
 0x3b9   : > { %v6602_v52 = vpop.permute.xlu0 %6601  ;;  %v3483_v27 = vpack.c.bf16 %v3440_v9, %v3439_v21 }
 0x3ba   : > { %v6604_v26 = vunpack.i.h.bf16 %v6602_v52  ;;  %v6603_v11 = vunpack.i.l.bf16 %v6602_v52 }
 0x3bb   : > { %v6612_v44 = vpop.permute.xlu1 %6611  ;;  %3810 = vmatprep.mubr.bf16.mxu1 %v3483_v27 }
 0x3bc   : > { %v3378_v59 = vsel %vm192_vm0, %v8722_v51, %v6604_v26  ;;  %v3377_v31 = vsel %vm192_vm0, %v8719_v43, %v6603_v11  ;;  %3811 = vmatmul.mubr.bf16.gmra.mrb[108].mxu1 %v3482_v41  ;;  %v3314_v51 = vsel %vm1275_vm4, %v3282_v50, %v6539_v32  ;;  %v6608_v32 = vunpack.i.l.bf16 %v9144_v16 }
 0x3bd   : > { %v9168_v49 = vpop.permute.xlu0 %6621  ;;  %v3409_v48 = vsel %vm1275_vm4, %v3377_v31, %v6563_v22  ;;  %v3410_v17 = vsel %vm1275_vm4, %v3378_v59, %v6564_v3  ;;  %v3346_v10 = vsel %vm1308_vm5, %v3314_v51, %v6579_v28  ;;  %v6614_v27 = vunpack.i.h.bf16 %v6612_v44  ;;  %v6777_v3 = vld [vmem:[#allocation2 + $0x140] sm:$0xff]  ;;  %v6778_v28 = vld [vmem:[#allocation2 + $0x138] sm:$0xff] }
 0x3be   : > { %v3441_v43 = vsel %vm1308_vm5, %v3409_v48, %v6583_v14  ;;  %v3442_v5 = vsel %vm1308_vm5, %v3410_v17, %v6584_v57  ;;  %v3485_v9 = vpack.c.bf16 %v3346_v10, %v3345_v47  ;;  %v6613_v4 = vunpack.i.l.bf16 %v6612_v44 }
 0x3bf   : > { %v9174_v0 = vpop.permute.xlu1 %6616  ;;  %v3486_v23 = vpack.c.bf16 %v3442_v5, %v3441_v43  ;;  %v6589_v11 = vunpack.i.h.bf16 %v9128_v37  ;;  %v6588_v41 = vunpack.i.l.bf16 %v9128_v37  ;;  %v3284_v22 = vsel %vm192_vm0, %v6777_v3, %v6609_v46  ;;  %v9860_v37 = vld [vmem:[#allocation37_spill] sm:$0xff] }
 0x3c0   : > { %v3283_v29 = vsel %vm192_vm0, %v6778_v28, %v6608_v32  ;;  %v3316_v59 = vsel %vm1275_vm4, %v3284_v22, %v6614_v27  ;;  %v6569_v44 = vunpack.i.h.bf16 %v9116_v33  ;;  %v6594_v10 = vunpack.i.h.bf16 %v9130_v45 }
 0x3c1   : > { %v6627_v61 = vpop.permute.xlu0 %6626  ;;  %3818 = vmatprep.mubr.bf16.mxu1 %v3486_v23  ;;  %v3315_v16 = vsel %vm1275_vm4, %v3283_v29, %v6613_v4  ;;  %v3380_v54 = vsel %vm192_vm0, %v9860_v37, %v6589_v11  ;;  %v3379_v48 = vsel %vm192_vm0, %v9861_v8, %v6588_v41  ;;  %v6618_v27 = vunpack.i.l.bf16 %v9174_v0 }
 0x3c2   : > { %v9180_v58 = vpop.f32.mrb[72].mxu0  ;;  %v6629_v57 = vunpack.i.h.bf16 %v6627_v61  ;;  %v6628_v14 = vunpack.i.l.bf16 %v6627_v61  ;;  %v3347_v5 = vsel %vm1308_vm5, %v3315_v16, %v6568_v20  ;;  %v3348_v23 = vsel %vm1308_vm5, %v3316_v59, %v6569_v44  ;;  %v6779_v59 = vld [vmem:[#allocation2 + $0x158] sm:$0xff]  ;;  %v6780_v20 = vld [vmem:[#allocation2 + $0x150] sm:$0xff] }
 0x3c3   : > { %v9182_v42 = vpop.f32.mrb[73].mxu0  ;;  %v9184_v21 = vpop.permute.xlu1 %6631  ;;  %v6593_v61 = vunpack.i.l.bf16 %v9130_v45  ;;  %v3488_v3 = vpack.c.bf16 %v3348_v23, %v3347_v5  ;;  %v6624_v22 = vunpack.i.h.bf16 %v9168_v49  ;;  %v6623_v28 = vunpack.i.l.bf16 %v9168_v49 }
 0x3c4   : > { %v9186_v63 = vpop.f32.mrb[74].mxu0  ;;  %3819 = vmatmul.mubr.bf16.gmra.mrb[112].mxu1 %v3485_v9  ;;  %v3411_v51 = vsel %vm1275_vm4, %v3379_v48, %v6628_v14  ;;  %v3412_v43 = vsel %vm1275_vm4, %v3380_v54, %v6629_v57  ;;  %v6619_v9 = vunpack.i.h.bf16 %v9174_v0  ;;  %v6634_v29 = vunpack.i.h.bf16 %v9184_v21 }
 0x3c5   : > { %v9190_v52 = vpop.f32.mrb[75].mxu0  ;;  %v6637_v26 = vpop.permute.xlu0 %6636  ;;  %v6633_v57 = vunpack.i.l.bf16 %v9184_v21  ;;  %v3286_v44 = vsel %vm192_vm0, %v6779_v59, %v6594_v10  ;;  %v3285_v49 = vsel %vm192_vm0, %v6780_v20, %v6593_v61 }
 0x3c6   : > { %v6639_v45 = vunpack.i.h.bf16 %v6637_v26  ;;  %v6638_v14 = vunpack.i.l.bf16 %v6637_v26  ;;  %v3317_v26 = vsel %vm1275_vm4, %v3285_v49, %v6618_v27  ;;  %v3318_v54 = vsel %vm1275_vm4, %v3286_v44, %v6619_v9 }
 0x3c7   : > { %v9198_v31 = vpop.permute.xlu1 %6666  ;;  %v3349_v48 = vsel %vm1308_vm5, %v3317_v26, %v6633_v57 }
 0x3c9   : > { %v6642_v50 = vpop.permute.xlu0 %6641 }
 0x3ca   : > { %v6644_v17 = vunpack.i.h.bf16 %v6642_v50  ;;  %v6643_v18 = vunpack.i.l.bf16 %v6642_v50 }
 0x3cb   : > { %v6672_v4 = vpop.permute.xlu1 %6671 }
 0x3cc   : > { %v3443_v47 = vsel %vm1308_vm5, %v3411_v51, %v6643_v18  ;;  %v3444_v33 = vsel %vm1308_vm5, %v3412_v43, %v6644_v17  ;;  %v3350_v17 = vsel %vm1308_vm5, %v3318_v54, %v6634_v29  ;;  %v6669_v18 = vunpack.i.h.bf16 %v9198_v31 }
 0x3cd   : > { %v6647_v46 = vpop.permute.xlu0 %6646  ;;  %v3489_v32 = vpack.c.bf16 %v3444_v33, %v3443_v47  ;;  %v6668_v51 = vunpack.i.l.bf16 %v9198_v31  ;;  %v6674_v5 = vunpack.i.h.bf16 %v6672_v4  ;;  %v6673_v23 = vunpack.i.l.bf16 %v6672_v4 }
 0x3ce   : > { %v6649_v11 = vunpack.i.h.bf16 %v6647_v46  ;;  %v6648_v41 = vunpack.i.l.bf16 %v6647_v46  ;;  %v3491_v61 = vpack.c.bf16 %v3350_v17, %v3349_v48 }
 0x3cf   : > { %3826 = vmatprep.mubr.bf16.mxu1 %v3489_v32  ;;  %v6677_v43 = vpop.permute.xlu1 %6676 }
 0x3d0   : > { %v3382_v16 = vsel %vm192_vm0, %v8845_v62, %v6649_v11  ;;  %v3381_v0 = vsel %vm192_vm0, %v8842_v1, %v6648_v41  ;;  %3827 = vmatmul.mubr.bf16.gmra.mrb[116].mxu1 %v3488_v3  ;;  %v6679_v9 = vunpack.i.h.bf16 %v6677_v43  ;;  %v6678_v46 = vunpack.i.l.bf16 %v6677_v43 }
 0x3d1   : > { %v6652_v50 = vpop.permute.xlu0 %6651  ;;  %v3413_v37 = vsel %vm1275_vm4, %v3381_v0, %v6623_v28  ;;  %v3414_v21 = vsel %vm1275_vm4, %v3382_v16, %v6624_v22  ;;  %v3288_v11 = vsel %vm192_vm0, %v8796_v36, %v6669_v18  ;;  %v3287_v41 = vsel %vm192_vm0, %v8785_v12, %v6668_v51 }
 0x3d2   : > { %v3445_v62 = vsel %vm1308_vm5, %v3413_v37, %v6638_v14  ;;  %v3446_v1 = vsel %vm1308_vm5, %v3414_v21, %v6639_v45  ;;  %v6654_v33 = vunpack.i.h.bf16 %v6652_v50  ;;  %v6653_v10 = vunpack.i.l.bf16 %v6652_v50 }
 0x3d3   : > { %v3492_v8 = vpack.c.bf16 %v3446_v1, %v3445_v62  ;;  %v3319_v4 = vsel %vm1275_vm4, %v3287_v41, %v6673_v23  ;;  %v3320_v3 = vsel %vm1275_vm4, %v3288_v11, %v6674_v5 }
 0x3d4   : > { %v3384_v29 = vsel %vm192_vm0, %v8833_v13, %v6654_v33  ;;  %v3383_v57 = vsel %vm192_vm0, %v8830_v56, %v6653_v10  ;;  %v3351_v59 = vsel %vm1308_vm5, %v3319_v4, %v6678_v46  ;;  %v3352_v44 = vsel %vm1308_vm5, %v3320_v3, %v6679_v9 }
 0x3d5   : > { %v6657_v47 = vpop.permute.xlu0 %6656  ;;  %3834 = vmatprep.mubr.bf16.mxu1 %v3492_v8  ;;  %v3494_v56 = vpack.c.bf16 %v3352_v44, %v3351_v59 }
 0x3d6   : > { %v6659_v32 = vunpack.i.h.bf16 %v6657_v47  ;;  %v6658_v27 = vunpack.i.l.bf16 %v6657_v47 }
 0x3d8   : > { %3835 = vmatmul.mubr.bf16.gmra.mrb[120].mxu1 %v3491_v61  ;;  %v3415_v12 = vsel %vm1275_vm4, %v3383_v57, %v6658_v27  ;;  %v3416_v16 = vsel %vm1275_vm4, %v3384_v29, %v6659_v32 }
 0x3d9   : > { %v6662_v22 = vpop.permute.xlu0 %6661 }
 0x3da   : > { %v9240_v31 = vpop.f32.mrb[76].mxu0  ;;  %v6664_v36 = vunpack.i.h.bf16 %v6662_v22  ;;  %v6663_v45 = vunpack.i.l.bf16 %v6662_v22 }
 0x3db   : > { %v9244_v28 = vpop.f32.mrb[77].mxu0 }
 0x3dc   : > { %v9250_v14 = vpop.f32.mrb[78].mxu0  ;;  %v3447_v20 = vsel %vm1308_vm5, %v3415_v12, %v6663_v45  ;;  %v3448_v13 = vsel %vm1308_vm5, %v3416_v16, %v6664_v36 }
 0x3dd   : > { %v9254_v0 = vpop.f32.mrb[79].mxu0  ;;  %v3495_v49 = vpack.c.bf16 %v3448_v13, %v3447_v20 }
 0x3df   : > { %3842 = vmatprep.mubr.bf16.mxu1 %v3495_v49 }
 0x3e0   : > { %3843 = vmatmul.mubr.bf16.gmra.mrb[124].mxu1 %v3494_v56 }
 0x3e1   : > { %5631 = vmatprep.mubr.msk.bf16.mxu1 %vm192_vm0, %v3493_v15 }
 0x3e8   : > { %5632 = vmatmul.mubr.msk.bf16.vlgmr.msra.gmra.mrb[128].mxu1 %vm192_vm0, %v3496_v55 }
 0x3f2   : > { %v9268_v50 = vpop.f32.mrb[80].mxu0 }
 0x3f3   : > { %v9270_v37 = vpop.f32.mrb[81].mxu0 }
 0x3f4   : > { %v9272_v21 = vpop.f32.mrb[82].mxu0 }
 0x3f5   : > { %v9274_v26 = vpop.f32.mrb[83].mxu0 }
 0x402   : > { %v5398_v54 = vpop.f32.mrb[64].mxu1 }
 0x403   : > { %v5399_v62 = vpop.f32.mrb[65].mxu1 }
 0x404   : > { %v5400_v1 = vadd.f32 %v5399_v62, %v5398_v54  ;;  %v5401_v8 = vpop.f32.mrb[66].mxu1 }
 0x405   : > { %v5402_v35 = vpop.f32.mrb[67].mxu1 }
 0x406   : > { %v3886_v24 = vadd.f32 %v5400_v1, %v9051_v34  ;;  %v5403_v15 = vadd.f32 %v5402_v35, %v5401_v8 }
 0x408   : > { %v3889_v2 = vadd.f32 %v5403_v15, %v9055_v6  ;;  %v4012_v19 = vmax.f32 %v3886_v24, 0.0 }
 0x40a   : > { %v4013_v55 = vmax.f32 %v3889_v2, 0.0  ;;  %v9278_v48 = vpop.f32.mrb[84].mxu0 }
 0x40b   : > { %v9280_v17 = vpop.f32.mrb[85].mxu0 }
 0x40c   : > { %v4044_v18 = vpack.c.bf16 %v4013_v55, %v4012_v19  ;;  %v9282_v51 = vpop.f32.mrb[86].mxu0 }
 0x40d   : > { %v9284_v43 = vpop.f32.mrb[87].mxu0 }
 0x40e   : > { %5637 = vmatprep.mubr.msk.bf16.mxu0 %vm2055_vm6, %v4044_v18 }
 0x417   : > { %v5404_v5 = vpop.f32.mrb[68].mxu1 }
 0x418   : > { %v5405_v23 = vpop.f32.mrb[69].mxu1 }
 0x419   : > { %v5406_v47 = vadd.f32 %v5405_v23, %v5404_v5  ;;  %v5407_v34 = vpop.f32.mrb[70].mxu1 }
 0x41a   : > { %v5408_v33 = vpop.f32.mrb[71].mxu1 }
 0x41b   : > { %v3894_v6 = vadd.f32 %v9047_v38, %v5406_v47  ;;  %v5409_v10 = vadd.f32 %v5408_v33, %v5407_v34 }
 0x41d   : > { %v3897_v61 = vadd.f32 %v9053_v30, %v5409_v10  ;;  %v4014_v9 = vmax.f32 %v3894_v6, 0.0 }
 0x41f   : > { %v4015_v46 = vmax.f32 %v3897_v61, 0.0  ;;  %v5410_v32 = vpop.f32.mrb[72].mxu1 }
 0x420   : > { %v5411_v27 = vpop.f32.mrb[73].mxu1 }
 0x421   : > { %v4045_v11 = vpack.c.bf16 %v4015_v46, %v4014_v9  ;;  %v5412_v41 = vadd.f32 %v5411_v27, %v5410_v32  ;;  %v5413_v4 = vpop.f32.mrb[74].mxu1 }
 0x422   : > { %v9289_v3 = vpop.f32.mrb[88].mxu0  ;;  %v5414_v22 = vpop.f32.mrb[75].mxu1 }
 0x423   : > { %v9291_v29 = vpop.f32.mrb[89].mxu0  ;;  %v3902_v57 = vadd.f32 %v5412_v41, %v9118_v25  ;;  %v5415_v36 = vadd.f32 %v5414_v22, %v5413_v4  ;;  %5638 = vmatmul.mubr.msk.bf16.vlgmr.msra.gmra.mrb[92].mxu0 %vm2055_vm6, %v4045_v11 }
 0x424   : > { %v9295_v38 = vpop.f32.mrb[90].mxu0 }
 0x425   : > { %v9297_v30 = vpop.f32.mrb[91].mxu0  ;;  %v3905_v45 = vadd.f32 %v5415_v36, %v9122_v40  ;;  %v4016_v12 = vmax.f32 %v3902_v57, 0.0 }
 0x427   : > { %v4017_v16 = vmax.f32 %v3905_v45, 0.0 }
 0x429   : > { %v4046_v59 = vpack.c.bf16 %v4017_v16, %v4016_v12 }
 0x42b   : > { %5641 = vmatprep.mubr.msk.bf16.mxu0 %vm2055_vm6, %v4046_v59 }
 0x42f   : > { %v5416_v44 = vpop.f32.mrb[76].mxu1 }
 0x430   : > { %v5417_v20 = vpop.f32.mrb[77].mxu1 }
 0x431   : > { %v5418_v13 = vadd.f32 %v5417_v20, %v5416_v44  ;;  %v5419_v49 = vpop.f32.mrb[78].mxu1 }
 0x432   : > { %v5420_v56 = vpop.f32.mrb[79].mxu1 }
 0x433   : > { %v3910_v25 = vadd.f32 %v9114_v60, %v5418_v13  ;;  %v5421_v54 = vadd.f32 %v5420_v56, %v5419_v49 }
 0x435   : > { %v3913_v62 = vadd.f32 %v9120_v39, %v5421_v54  ;;  %v4018_v1 = vmax.f32 %v3910_v25, 0.0 }
 0x437   : > { %v4019_v8 = vmax.f32 %v3913_v62, 0.0  ;;  %v5422_v35 = vpop.f32.mrb[80].mxu1 }
 0x438   : > { %v5423_v24 = vpop.f32.mrb[81].mxu1 }
 0x439   : > { %v4047_v40 = vpack.c.bf16 %v4019_v8, %v4018_v1  ;;  %v5424_v15 = vadd.f32 %v5423_v24, %v5422_v35  ;;  %v5425_v2 = vpop.f32.mrb[82].mxu1 }
 0x43a   : > { %v5426_v19 = vpop.f32.mrb[83].mxu1 }
 0x43b   : > { %v3918_v55 = vadd.f32 %v5424_v15, %v9182_v42  ;;  %v5427_v18 = vadd.f32 %v5426_v19, %v5425_v2  ;;  %5642 = vmatmul.mubr.msk.bf16.gmra.mrb[96].mxu0 %vm2055_vm6, %v4047_v40 }
 0x43d   : > { %v3921_v5 = vadd.f32 %v5427_v18, %v9190_v52  ;;  %v4020_v23 = vmax.f32 %v3918_v55, 0.0 }
 0x43f   : > { %v4021_v60 = vmax.f32 %v3921_v5, 0.0 }
 0x441   : > { %v4048_v47 = vpack.c.bf16 %v4021_v60, %v4020_v23 }
 0x443   : > { %5645 = vmatprep.mubr.msk.bf16.mxu0 %vm2055_vm6, %v4048_v47 }
 0x447   : > { %v5428_v39 = vpop.f32.mrb[84].mxu1 }
 0x448   : > { %v5429_v34 = vpop.f32.mrb[85].mxu1 }
 0x449   : > { %v5430_v33 = vadd.f32 %v5429_v34, %v5428_v39  ;;  %v5431_v6 = vpop.f32.mrb[86].mxu1 }
 0x44a   : > { %v5432_v10 = vpop.f32.mrb[87].mxu1 }
 0x44b   : > { %v3926_v61 = vadd.f32 %v9180_v58, %v5430_v33  ;;  %v5433_v9 = vadd.f32 %v5432_v10, %v5431_v6 }
 0x44d   : > { %v3929_v42 = vadd.f32 %v9186_v63, %v5433_v9  ;;  %v4022_v46 = vmax.f32 %v3926_v61, 0.0 }
 0x44f   : > { %v4023_v32 = vmax.f32 %v3929_v42, 0.0  ;;  %v5434_v27 = vpop.f32.mrb[88].mxu1 }
 0x450   : > { %v5435_v11 = vpop.f32.mrb[89].mxu1 }
 0x451   : > { %v4049_v52 = vpack.c.bf16 %v4023_v32, %v4022_v46  ;;  %v5436_v41 = vadd.f32 %v5435_v11, %v5434_v27  ;;  %v5437_v4 = vpop.f32.mrb[90].mxu1 }
 0x452   : > { %v5438_v22 = vpop.f32.mrb[91].mxu1 }
 0x453   : > { %v3934_v57 = vadd.f32 %v5436_v41, %v9244_v28  ;;  %v5439_v36 = vadd.f32 %v5438_v22, %v5437_v4  ;;  %5646 = vmatmul.mubr.msk.bf16.gmra.mrb[100].mxu0 %vm2055_vm6, %v4049_v52 }
 0x455   : > { %v3937_v45 = vadd.f32 %v5439_v36, %v9254_v0  ;;  %v4024_v12 = vmax.f32 %v3934_v57, 0.0 }
 0x457   : > { %v4025_v58 = vmax.f32 %v3937_v45, 0.0 }
 0x459   : > { %v4050_v16 = vpack.c.bf16 %v4025_v58, %v4024_v12 }
 0x45b   : > { %5649 = vmatprep.mubr.msk.bf16.mxu0 %vm2055_vm6, %v4050_v16 }
 0x45f   : > { %v5440_v63 = vpop.f32.mrb[92].mxu1 }
 0x460   : > { %v5441_v59 = vpop.f32.mrb[93].mxu1 }
 0x461   : > { %v5442_v44 = vadd.f32 %v5441_v59, %v5440_v63  ;;  %v5443_v20 = vpop.f32.mrb[94].mxu1 }
 0x462   : > { %v5444_v13 = vpop.f32.mrb[95].mxu1 }
 0x463   : > { %v3942_v49 = vadd.f32 %v9240_v31, %v5442_v44  ;;  %v5445_v56 = vadd.f32 %v5444_v13, %v5443_v20 }
 0x465   : > { %v3945_v28 = vadd.f32 %v9250_v14, %v5445_v56  ;;  %v4026_v25 = vmax.f32 %v3942_v49, 0.0 }
 0x467   : > { %v4027_v54 = vmax.f32 %v3945_v28, 0.0  ;;  %v5446_v62 = vpop.f32.mrb[96].mxu1 }
 0x468   : > { %v5447_v1 = vpop.f32.mrb[97].mxu1 }
 0x469   : > { %v4051_v0 = vpack.c.bf16 %v4027_v54, %v4026_v25  ;;  %v5448_v8 = vadd.f32 %v5447_v1, %v5446_v62  ;;  %v5449_v35 = vpop.f32.mrb[98].mxu1 }
 0x46a   : > { %v5450_v24 = vpop.f32.mrb[99].mxu1 }
 0x46b   : > { %v3950_v40 = vadd.f32 %v5448_v8, %v9270_v37  ;;  %v5451_v15 = vadd.f32 %v5450_v24, %v5449_v35  ;;  %5650 = vmatmul.mubr.msk.bf16.gmra.mrb[104].mxu0 %vm2055_vm6, %v4051_v0 }
 0x46d   : > { %v3953_v2 = vadd.f32 %v5451_v15, %v9274_v26  ;;  %v4028_v19 = vmax.f32 %v3950_v40, 0.0 }
 0x46f   : > { %v4029_v31 = vmax.f32 %v3953_v2, 0.0 }
 0x471   : > { %v4052_v55 = vpack.c.bf16 %v4029_v31, %v4028_v19 }
 0x473   : > { %5653 = vmatprep.mubr.msk.bf16.mxu0 %vm2055_vm6, %v4052_v55 }
 0x477   : > { %v5452_v14 = vpop.f32.mrb[100].mxu1 }
 0x478   : > { %v5453_v18 = vpop.f32.mrb[101].mxu1 }
 0x479   : > { %v5454_v5 = vadd.f32 %v5453_v18, %v5452_v14  ;;  %v5455_v23 = vpop.f32.mrb[102].mxu1 }
 0x47a   : > { %v5456_v60 = vpop.f32.mrb[103].mxu1 }
 0x47b   : > { %v3958_v47 = vadd.f32 %v9268_v50, %v5454_v5  ;;  %v5457_v39 = vadd.f32 %v5456_v60, %v5455_v23 }
 0x47d   : > { %v3961_v37 = vadd.f32 %v9272_v21, %v5457_v39  ;;  %v4030_v34 = vmax.f32 %v3958_v47, 0.0 }
 0x47f   : > { %v4031_v33 = vmax.f32 %v3961_v37, 0.0  ;;  %v5458_v6 = vpop.f32.mrb[104].mxu1 }
 0x480   : > { %v5459_v10 = vpop.f32.mrb[105].mxu1 }
 0x481   : > { %v4053_v26 = vpack.c.bf16 %v4031_v33, %v4030_v34  ;;  %v5460_v61 = vadd.f32 %v5459_v10, %v5458_v6  ;;  %v5461_v9 = vpop.f32.mrb[106].mxu1 }
 0x482   : > { %v5462_v42 = vpop.f32.mrb[107].mxu1 }
 0x483   : > { %v3966_v46 = vadd.f32 %v5460_v61, %v9280_v17  ;;  %v5463_v32 = vadd.f32 %v5462_v42, %v5461_v9  ;;  %5654 = vmatmul.mubr.msk.bf16.gmra.mrb[108].mxu0 %vm2055_vm6, %v4053_v26 }
 0x485   : > { %v3969_v27 = vadd.f32 %v5463_v32, %v9284_v43  ;;  %v4032_v11 = vmax.f32 %v3966_v46, 0.0 }
 0x487   : > { %v4033_v50 = vmax.f32 %v3969_v27, 0.0 }
 0x489   : > { %v4054_v52 = vpack.c.bf16 %v4033_v50, %v4032_v11 }
 0x48b   : > { %5657 = vmatprep.mubr.msk.bf16.mxu0 %vm2055_vm6, %v4054_v52 }
 0x48f   : > { %v5464_v21 = vpop.f32.mrb[108].mxu1 }
 0x490   : > { %v5465_v41 = vpop.f32.mrb[109].mxu1 }
 0x491   : > { %v5466_v4 = vadd.f32 %v5465_v41, %v5464_v21  ;;  %v5467_v22 = vpop.f32.mrb[110].mxu1  ;;  %v9862_v41 = vld [vmem:[#allocation23_spill] sm:$0xff] }
 0x492   : > { %v5468_v57 = vpop.f32.mrb[111].mxu1 }
 0x493   : > { %v3974_v36 = vadd.f32 %v9278_v48, %v5466_v4  ;;  %v5469_v45 = vadd.f32 %v5468_v57, %v5467_v22  ;;  %v9863_v4 = vmax.f32 %v9862_v41, 0.0  ;;  %v6854_v57 = vmov 1983009808  }
 0x495   : > { %v3977_v17 = vadd.f32 %v9282_v51, %v5469_v45  ;;  %v4034_v12 = vmax.f32 %v3974_v36, 0.0  ;;  %v4345_v36 = vunpack.c.l.s4 %v6854_v57  ;;  %v4347_v45 = vlaneseq }
 0x497   : > { %v4035_v58 = vmax.f32 %v3977_v17, 0.0  ;;  %v5470_v16 = vpop.f32.mrb[112].mxu1  ;;  %v9864_v17 = vld [vmem:[#allocation22_spill] sm:$0xff] }
 0x498   : > { %v5471_v63 = vpop.f32.mrb[113].mxu1 }
 0x499   : > { %v4055_v43 = vpack.c.bf16 %v4035_v58, %v4034_v12  ;;  %v5472_v59 = vadd.f32 %v5471_v63, %v5470_v16  ;;  %v5473_v44 = vpop.f32.mrb[114].mxu1  ;;  %v9865_v12 = vmax.f32 %v9864_v17, 0.0  ;;  %v9866_v16 = vld [vmem:[#allocation6_spill] sm:$0xff] }
 0x49a   : > { %v5474_v20 = vpop.f32.mrb[115].mxu1  ;;  %v9867_v63 = vmax.f32 %v9866_v16, 0.0 }
 0x49b   : > { %v3982_v13 = vadd.f32 %v5472_v59, %v9291_v29  ;;  %v5475_v49 = vadd.f32 %v5474_v20, %v5473_v44  ;;  %5658 = vmatmul.mubr.msk.bf16.gmra.mrb[112].mxu0 %vm2055_vm6, %v4055_v43  ;;  %v9868_v59 = vld [vmem:[#allocation7_spill] sm:$0xff] }
 0x49c   : > { %v9869_v44 = vmax.f32 %v9868_v59, 0.0 }
 0x49d   : > { %v3985_v56 = vadd.f32 %v5475_v49, %v9297_v30  ;;  %v4036_v28 = vmax.f32 %v3982_v13, 0.0 }
 0x49f   : > { %v4037_v48 = vmax.f32 %v3985_v56, 0.0  ;;  %v9870_v56 = vld [vmem:[#allocation8_spill] sm:$0xff] }
 0x4a1   : > { %v4056_v25 = vpack.c.bf16 %v4037_v48, %v4036_v28  ;;  %v9871_v28 = vmax.f32 %v9870_v56, 0.0 }
 0x4a3   : > { %v5476_v54 = vpop.f32.mrb[116].mxu1  ;;  %5661 = vmatprep.mubr.msk.bf16.mxu0 %vm2055_vm6, %v4056_v25  ;;  %v4346_v25 = vunpack.c.0.s8 %v4345_v36 }
 0x4a4   : > { %v5477_v51 = vpop.f32.mrb[117].mxu1 }
 0x4a5   : > { %v5478_v62 = vadd.f32 %v5477_v51, %v5476_v54  ;;  %v5479_v1 = vpop.f32.mrb[118].mxu1  ;;  %v4348_v54 = vshrl.u32 %v4347_v45, 7 }
 0x4a6   : > { %v5480_v0 = vpop.f32.mrb[119].mxu1 }
 0x4a7   : > { %v3990_v8 = vadd.f32 %v9289_v3, %v5478_v62  ;;  %v5481_v35 = vadd.f32 %v5480_v0, %v5479_v1  ;;  %v9872_v1 = vld [vmem:[#allocation24_spill] sm:$0xff] }
 0x4a8   : > { %v9873_v0 = vmax.f32 %v9872_v1, 0.0 }
 0x4a9   : > { %v3993_v29 = vadd.f32 %v9295_v38, %v5481_v35  ;;  %v4038_v24 = vmax.f32 %v3990_v8, 0.0 }
 0x4ab   : > { %v4039_v40 = vmax.f32 %v3993_v29, 0.0  ;;  %v5482_v15 = vpop.f32.mrb[120].mxu1 }
 0x4ac   : > { %v5483_v2 = vpop.f32.mrb[121].mxu1 }
 0x4ad   : > { %v4057_v30 = vpack.c.bf16 %v4039_v40, %v4038_v24  ;;  %v5484_v19 = vadd.f32 %v5483_v2, %v5482_v15  ;;  %v5485_v31 = vpop.f32.mrb[122].mxu1  ;;  %v9874_v40 = vld [vmem:[#allocation9_spill] sm:$0xff] }
 0x4ae   : > { %v5486_v55 = vpop.f32.mrb[123].mxu1  ;;  %v9875_v15 = vmax.f32 %v9874_v40, 0.0  ;;  %v9884_v40 = vld [vmem:[#allocation27_spill] sm:$0xff] }
 0x4af   : > { %v5487_v14 = vadd.f32 %v5486_v55, %v5485_v31  ;;  %5662 = vmatmul.mubr.msk.bf16.gmra.mrb[116].mxu0 %vm2055_vm6, %v4057_v30  ;;  %v9876_v55 = vld [vmem:[#allocation25_spill] sm:$0xff] }
 0x4b3   : > { %v5488_v18 = vpop.f32.mrb[124].mxu1 }
 0x4b4   : > { %v5489_v5 = vpop.f32.mrb[125].mxu1 }
 0x4b5   : > { %v5490_v23 = vadd.f32 %v5489_v5, %v5488_v18  ;;  %v5491_v60 = vpop.f32.mrb[126].mxu1 }
 0x4b6   : > { %v5492_v47 = vpop.f32.mrb[127].mxu1 }
 0x4b7   : > { %v5493_v3 = vadd.f32 %v5492_v47, %v5491_v60  ;;  %v9352_v60 = vsub.s32 %v4346_v25, %v4348_v54 }
 0x4bb   : > { %v5633_v39 = vpop.f32.mrb[128].mxu1 }
 0x4bc   : > { %v4006_v37 = vadd.f32 %v5633_v39, %v5490_v23  ;;  %v3997_v38 = vpop.f32.mrb[129].mxu1 }
 0x4bd   : > { %v3998_v34 = vadd.f32 %v5484_v19, %v3997_v38  ;;  %v5634_v33 = vpop.f32.mrb[130].mxu1 }
 0x4be   : > { %v4009_v6 = vadd.f32 %v5634_v33, %v5493_v3  ;;  %v4000_v10 = vpop.f32.mrb[131].mxu1  ;;  %v4042_v61 = vmax.f32 %v4006_v37, 0.0 }
 0x4bf   : > { %v4001_v26 = vadd.f32 %v5487_v14, %v4000_v10  ;;  %v4040_v42 = vmax.f32 %v3998_v34, 0.0  ;;  %v9877_v14 = vmax.f32 %v9876_v55, 0.0 }
 0x4c0   : > { %v4043_v9 = vmax.f32 %v4009_v6, 0.0 }
 0x4c1   : > { %v4041_v46 = vmax.f32 %v4001_v26, 0.0 }
 0x4c2   : > { %v4059_v32 = vpack.c.bf16 %v4043_v9, %v4042_v61 }
 0x4c3   : > { %v4058_v27 = vpack.c.bf16 %v4041_v46, %v4040_v42 }
 0x4c5   : > { %5665 = vmatprep.mubr.msk.bf16.mxu0 %vm2055_vm6, %v4058_v27 }
 0x4c6   : > { %5666 = vmatmul.mubr.msk.bf16.gmra.mrb[120].mxu0 %vm2055_vm6, %v4059_v32 }
 0x4f6   : > { %v5639_v11 = vpop.f32.mrb[92].mxu0 }
 0x4f7   : > { %v4151_v50 = vpop.f32.mrb[93].mxu0  ;;  %v4160_v22 = vadd.f32 %v5639_v11, %v9863_v4 }
 0x4f8   : > { %v5640_v52 = vpop.f32.mrb[94].mxu0  ;;  %v4152_v58 = vadd.f32 %v4151_v50, %v9865_v12 }
 0x4f9   : > { %v4154_v21 = vpop.f32.mrb[95].mxu0  ;;  %v4163_v43 = vadd.f32 %v5640_v52, %v9867_v63  ;;  %v4280_v49 = vmax.f32 %v4160_v22, 0.0 }
 0x4fa   : > { %v4155_v20 = vadd.f32 %v4154_v21, %v9869_v44  ;;  %v4278_v62 = vmax.f32 %v4152_v58, 0.0 }
 0x4fb   : > { %v4281_v29 = vmax.f32 %v4163_v43, 0.0  ;;  %v4312_v5 = vmax.f32 %v4280_v49, 0.0  ;;  %v6855_v49 = vmov 1934713408  }
 0x4fc   : > { %v4279_v19 = vmax.f32 %v4155_v20, 0.0  ;;  %v4310_v3 = vmax.f32 %v4278_v62, 0.0  ;;  %v4409_v56 = vunpack.c.l.s4 %v6855_v49  ;;  %v9880_v62 = vld [vmem:[#allocation26_spill] sm:$0xff] }
 0x4fd   : > { %v4313_v38 = vmax.f32 %v4281_v29, 0.0  ;;  %v9881_v1 = vmax.f32 %v9880_v62, 0.0 }
 0x4fe   : > { %v4311_v10 = vmax.f32 %v4279_v19, 0.0 }
 0x50e   : > { %v5643_v13 = vpop.f32.mrb[96].mxu0 }
 0x50f   : > { %v4176_v48 = vadd.f32 %v5643_v13, %v9871_v28  ;;  %v4167_v51 = vpop.f32.mrb[97].mxu0  ;;  %v4410_v28 = vunpack.c.0.s8 %v4409_v56 }
 0x510   : > { %v4168_v8 = vadd.f32 %v4167_v51, %v9873_v0  ;;  %v5644_v35 = vpop.f32.mrb[98].mxu0 }
 0x511   : > { %v4284_v24 = vmax.f32 %v4176_v48, 0.0  ;;  %v4179_v2 = vadd.f32 %v5644_v35, %v9875_v15  ;;  %v4170_v30 = vpop.f32.mrb[99].mxu0  ;;  %v9878_v48 = vld [vmem:[#allocation10_spill] sm:$0xff]  ;;  %v9885_v15 = vmax.f32 %v9884_v40, 0.0 }
 0x512   : > { %v4282_v31 = vmax.f32 %v4168_v8, 0.0  ;;  %v4171_v18 = vadd.f32 %v4170_v30, %v9877_v14  ;;  %v9879_v25 = vmax.f32 %v9878_v48, 0.0  ;;  %v9882_v8 = vld [vmem:[#allocation11_spill] sm:$0xff] }
 0x513   : > { %v4316_v23 = vmax.f32 %v4284_v24, 0.0  ;;  %v4285_v47 = vmax.f32 %v4179_v2, 0.0  ;;  %v9883_v35 = vmax.f32 %v9882_v8, 0.0  ;;  %v9384_v24 = vsub.s32 %v4410_v28, %v4348_v54 }
 0x514   : > { %v4314_v39 = vmax.f32 %v4282_v31, 0.0  ;;  %v4283_v37 = vmax.f32 %v4171_v18, 0.0  ;;  %v9886_v31 = vld [vmem:[#allocation12_spill] sm:$0xff] }
 0x515   : > { %v4358_v34 = vcombine.low %v4312_v5, %v4316_v23  ;;  %v4359_v33 = vcombine.high %v4312_v5, %v4316_v23  ;;  %v4317_v6 = vmax.f32 %v4285_v47, 0.0  ;;  %v9887_v55 = vmax.f32 %v9886_v31, 0.0  ;;  %v9888_v23 = vld [vmem:[#allocation28_spill] sm:$0xff] }
 0x516   : > { %v4342_v26 = vcombine.low %v4310_v3, %v4314_v39  ;;  %v4343_v61 = vcombine.high %v4310_v3, %v4314_v39  ;;  %v4315_v9 = vmax.f32 %v4283_v37, 0.0  ;;  %v9889_v47 = vmax.f32 %v9888_v23, 0.0 }
 0x517   : > { %v4366_v42 = vrot.slane %v4358_v34, %v9352_v60  ;;  %v4373_v46 = vrot.slane %v4359_v33, %v9352_v60  ;;  %v4630_v32 = vcombine.low %v4313_v38, %v4317_v6  ;;  %v4631_v27 = vcombine.high %v4313_v38, %v4317_v6  ;;  %v9890_v34 = vld [vmem:[#allocation13_spill] sm:$0xff] }
 0x518   : > { %v4350_v11 = vrot.slane %v4342_v26, %v9352_v60  ;;  %v4357_v50 = vrot.slane %v4343_v61, %v9352_v60  ;;  %v4614_v52 = vcombine.low %v4311_v10, %v4315_v9  ;;  %v4615_v21 = vcombine.high %v4311_v10, %v4315_v9  ;;  %v9892_v9 = vld [vmem:[#allocation29_spill] sm:$0xff] }
 0x519   : > { %v9359_v41 = vrot.slane %v4630_v32, %v9352_v60  ;;  %v9362_v4 = vrot.slane %v4631_v27, %v9352_v60  ;;  %v9891_v33 = vmax.f32 %v9890_v34, 0.0 }
 0x51a   : > { %v4406_v22 = vcombine.low %v4350_v11, %v4366_v42  ;;  %v4407_v57 = vcombine.high %v4350_v11, %v4366_v42  ;;  %v4422_v36 = vcombine.low %v4357_v50, %v4373_v46  ;;  %v4423_v45 = vcombine.high %v4357_v50, %v4373_v46 }
 0x51b   : > { %v9365_v17 = vrot.slane %v4614_v52, %v9352_v60  ;;  %v9368_v12 = vrot.slane %v4615_v21, %v9352_v60  ;;  %v9893_v42 = vmax.f32 %v9892_v9, 0.0 }
 0x51c   : > { %v9395_v10 = vrot.slane %v4406_v22, %v9384_v24  ;;  %v9400_v32 = vrot.slane %v4422_v36, %v9384_v24  ;;  %v9403_v52 = vrot.slane %v4407_v57, %v9384_v24  ;;  %v9406_v22 = vrot.slane %v4423_v45, %v9384_v24 }
 0x51d   : > { %v4678_v58 = vcombine.low %v9365_v17, %v9359_v41  ;;  %v4679_v16 = vcombine.high %v9365_v17, %v9359_v41  ;;  %v4694_v63 = vcombine.low %v9368_v12, %v9362_v4  ;;  %v4695_v43 = vcombine.high %v9368_v12, %v9362_v4 }
 0x526   : > { %v5647_v59 = vpop.f32.mrb[100].mxu0 }
 0x527   : > { %v4183_v44 = vpop.f32.mrb[101].mxu0  ;;  %v4192_v51 = vadd.f32 %v5647_v59, %v9879_v25 }
 0x528   : > { %v5648_v20 = vpop.f32.mrb[102].mxu0  ;;  %v4184_v0 = vadd.f32 %v4183_v44, %v9881_v1 }
 0x529   : > { %v4186_v13 = vpop.f32.mrb[103].mxu0  ;;  %v4195_v29 = vadd.f32 %v5648_v20, %v9883_v35  ;;  %v4288_v19 = vmax.f32 %v4192_v51, 0.0 }
 0x52a   : > { %v4187_v2 = vadd.f32 %v4186_v13, %v9885_v15  ;;  %v4286_v5 = vmax.f32 %v4184_v0, 0.0  ;;  %v9415_v15 = vrot.slane %v4678_v58, %v9384_v24  ;;  %v9432_v58 = vrot.slane %v4695_v43, %v9384_v24 }
 0x52b   : > { %v4289_v37 = vmax.f32 %v4195_v29, 0.0  ;;  %v4320_v27 = vmax.f32 %v4288_v19, 0.0 }
 0x52c   : > { %v4287_v26 = vmax.f32 %v4187_v2, 0.0  ;;  %v4318_v21 = vmax.f32 %v4286_v5, 0.0  ;;  %v9418_v2 = vrot.slane %v4694_v63, %v9384_v24  ;;  %v9426_v5 = vrot.slane %v4679_v16, %v9384_v24 }
 0x52d   : > { %v4321_v20 = vmax.f32 %v4289_v37, 0.0 }
 0x52e   : > { %v4319_v28 = vmax.f32 %v4287_v26, 0.0 }
 0x53e   : > { %v5651_v30 = vpop.f32.mrb[104].mxu0 }
 0x53f   : > { %v4208_v14 = vadd.f32 %v5651_v30, %v9887_v55  ;;  %v4199_v18 = vpop.f32.mrb[105].mxu0 }
 0x540   : > { %v4200_v3 = vadd.f32 %v4199_v18, %v9889_v47  ;;  %v5652_v39 = vpop.f32.mrb[106].mxu0 }
 0x541   : > { %v4292_v38 = vmax.f32 %v4208_v14, 0.0  ;;  %v4211_v54 = vadd.f32 %v5652_v39, %v9891_v33  ;;  %v4202_v6 = vpop.f32.mrb[107].mxu0 }
 0x542   : > { %v4290_v61 = vmax.f32 %v4200_v3, 0.0  ;;  %v4203_v46 = vadd.f32 %v4202_v6, %v9893_v42 }
 0x543   : > { %v4324_v11 = vmax.f32 %v4292_v38, 0.0  ;;  %v4293_v50 = vmax.f32 %v4211_v54, 0.0 }
 0x544   : > { %v4322_v59 = vmax.f32 %v4290_v61, 0.0  ;;  %v4291_v44 = vmax.f32 %v4203_v46, 0.0 }
 0x545   : > { %v4390_v13 = vcombine.low %v4320_v27, %v4324_v11  ;;  %v4391_v49 = vcombine.high %v4320_v27, %v4324_v11  ;;  %v4325_v56 = vmax.f32 %v4293_v50, 0.0 }
 0x546   : > { %v4374_v48 = vcombine.low %v4318_v21, %v4322_v59  ;;  %v4375_v36 = vcombine.high %v4318_v21, %v4322_v59  ;;  %v4323_v25 = vmax.f32 %v4291_v44, 0.0 }
 0x547   : > { %v4398_v51 = vrot.slane %v4390_v13, %v9352_v60  ;;  %v4405_v62 = vrot.slane %v4391_v49, %v9352_v60  ;;  %v4662_v57 = vcombine.low %v4321_v20, %v4325_v56  ;;  %v4663_v1 = vcombine.high %v4321_v20, %v4325_v56  ;;  %v9894_v49 = vld [vmem:[#allocation14_spill] sm:$0xff] }
 0x548   : > { %v4382_v0 = vrot.slane %v4374_v48, %v9352_v60  ;;  %v4389_v8 = vrot.slane %v4375_v36, %v9352_v60  ;;  %v4646_v45 = vcombine.low %v4319_v28, %v4323_v25  ;;  %v4647_v35 = vcombine.high %v4319_v28, %v4323_v25  ;;  %v9896_v48 = vld [vmem:[#allocation30_spill] sm:$0xff] }
 0x549   : > { %v4670_v29 = vrot.slane %v4662_v57, %v9352_v60  ;;  %v4677_v40 = vrot.slane %v4663_v1, %v9352_v60  ;;  %v9895_v56 = vmax.f32 %v9894_v49, 0.0  ;;  %v9897_v36 = vmax.f32 %v9896_v48, 0.0  ;;  %v9900_v1 = vld [vmem:[#allocation31_spill] sm:$0xff] }
 0x54a   : > { %v4438_v30 = vcombine.low %v4382_v0, %v4398_v51  ;;  %v4439_v19 = vcombine.high %v4382_v0, %v4398_v51  ;;  %v4454_v31 = vcombine.low %v4389_v8, %v4405_v62  ;;  %v4455_v55 = vcombine.high %v4389_v8, %v4405_v62  ;;  %v9898_v51 = vld [vmem:[#allocation15_spill] sm:$0xff] }
 0x54b   : > { %v4654_v14 = vrot.slane %v4646_v45, %v9352_v60  ;;  %v4661_v18 = vrot.slane %v4647_v35, %v9352_v60  ;;  %v9899_v62 = vmax.f32 %v9898_v51, 0.0  ;;  %v9901_v0 = vmax.f32 %v9900_v1, 0.0 }
 0x54c   : > { %v9435_v63 = vrot.slane %v4438_v30, %v9384_v24  ;;  %v9438_v23 = vrot.slane %v4454_v31, %v9384_v24  ;;  %v4453_v47 = vrot.slane %v4439_v19, %v9384_v24  ;;  %v4469_v3 = vrot.slane %v4455_v55, %v9384_v24  ;;  %v9904_v55 = vld [vmem:[#allocation32_spill] sm:$0xff] }
 0x54d   : > { %v4710_v39 = vcombine.low %v4654_v14, %v4670_v29  ;;  %v4711_v41 = vcombine.high %v4654_v14, %v4670_v29  ;;  %v4726_v17 = vcombine.low %v4661_v18, %v4677_v40  ;;  %v4727_v16 = vcombine.high %v4661_v18, %v4677_v40  ;;  %v9902_v29 = vld [vmem:[#allocation16_spill] sm:$0xff] }
 0x54e   : > { %v4471_v37 = vcombine.high %v9395_v10, %v9435_v63  ;;  %v4475_v4 = vcombine.high %v9400_v32, %v9438_v23  ;;  %v4472_v12 = vcombine.low %v9403_v52, %v4453_v47  ;;  %v4476_v43 = vcombine.low %v9406_v22, %v4469_v3 }
 0x54f   : > { %v4473_v38 = vcombine.high %v9403_v52, %v4453_v47  ;;  %v4477_v34 = vcombine.high %v9406_v22, %v4469_v3  ;;  %v9451_v33 = vrot.slane %v4710_v39, %v9384_v24  ;;  %v9454_v54 = vrot.slane %v4726_v17, %v9384_v24  ;;  %v9906_v3 = vld [vmem:[#allocation17_spill] sm:$0xff] }
 0x550   : > { %4888 = vrot.lane.b32.xlu0 %v4471_v37, %s6853_s27  ;;  %v4725_v6 = vrot.slane %v4711_v41, %v9384_v24  ;;  %v9459_v26 = vrot.slane %v4727_v16, %v9384_v24  ;;  %v4470_v61 = vcombine.low %v9395_v10, %v9435_v63  ;;  %v4474_v9 = vcombine.low %v9400_v32, %v9438_v23 }
 0x551   : > { %v4743_v42 = vcombine.high %v9415_v15, %v9451_v33  ;;  %v4747_v46 = vcombine.high %v9418_v2, %v9454_v54  ;;  %v4742_v27 = vcombine.low %v9415_v15, %v9451_v33  ;;  %v4746_v11 = vcombine.low %v9418_v2, %v9454_v54 }
 0x552   : > { %v4744_v50 = vcombine.low %v9426_v5, %v4725_v6  ;;  %v4748_v52 = vcombine.low %v9432_v58, %v9459_v26  ;;  %v4745_v21 = vcombine.high %v9426_v5, %v4725_v6  ;;  %v4749_v59 = vcombine.high %v9432_v58, %v9459_v26 }
 0x553   : > { %v9903_v40 = vmax.f32 %v9902_v29, 0.0  ;;  %v9905_v14 = vmax.f32 %v9904_v55, 0.0  ;;  %v9907_v39 = vmax.f32 %v9906_v3, 0.0 }
 0x554   : > { %4912 = vrot.lane.b32.xlu0 %v4475_v4, %s6853_s27  ;;  %v9908_v4 = vld [vmem:[#allocation33_spill] sm:$0xff] }
 0x556   : > { %v5655_v44 = vpop.f32.mrb[108].mxu0 }
 0x557   : > { %v4215_v22 = vpop.f32.mrb[109].mxu0  ;;  %v4224_v28 = vadd.f32 %v5655_v44, %v9895_v56 }
 0x558   : > { %v5656_v20 = vpop.f32.mrb[110].mxu0  ;;  %4896 = vrot.lane.b32.xlu0 %v4472_v12, %s6851_s15  ;;  %v4216_v25 = vadd.f32 %v4215_v22, %v9897_v36  ;;  %v9909_v12 = vmax.f32 %v9908_v4, 0.0 }
 0x559   : > { %v4218_v13 = vpop.f32.mrb[111].mxu0  ;;  %v4227_v57 = vadd.f32 %v5656_v20, %v9899_v62  ;;  %v4296_v35 = vmax.f32 %v4224_v28, 0.0 }
 0x55a   : > { %v4219_v8 = vadd.f32 %v4218_v13, %v9901_v0  ;;  %v4294_v31 = vmax.f32 %v4216_v25, 0.0 }
 0x55b   : > { %v4297_v58 = vmax.f32 %v4227_v57, 0.0 }
 0x55c   : > { %4920 = vrot.lane.b32.xlu0 %v4476_v43, %s6851_s15  ;;  %v4295_v16 = vmax.f32 %v4219_v8, 0.0  ;;  %v4326_v26 = vmax.f32 %v4294_v31, 0.0 }
 0x55e   : > { %v4327_v13 = vmax.f32 %v4295_v16, 0.0 }
 0x560   : > { %4904 = vrot.lane.b32.xlu0 %v4473_v38, %s6852_s21  ;;  %v4328_v38 = vmax.f32 %v4296_v35, 0.0 }
 0x564   : > { %4928 = vrot.lane.b32.xlu0 %v4477_v34, %s6852_s21 }
 0x568   : > { %4936 = vrot.lane.b32.xlu0 %v4743_v42, %s6853_s27 }
 0x56c   : > { %4960 = vrot.lane.b32.xlu0 %v4747_v46, %s6853_s27 }
 0x56e   : > { %v5659_v45 = vpop.f32.mrb[112].mxu0 }
 0x56f   : > { %v4240_v30 = vadd.f32 %v5659_v45, %v9903_v40  ;;  %v4231_v19 = vpop.f32.mrb[113].mxu0 }
 0x570   : > { %4944 = vrot.lane.b32.xlu0 %v4744_v50, %s6851_s15  ;;  %v4232_v18 = vadd.f32 %v4231_v19, %v9905_v14  ;;  %v5660_v5 = vpop.f32.mrb[114].mxu0  ;;  %v4329_v50 = vmax.f32 %v4297_v58, 0.0 }
 0x571   : > { %v4300_v47 = vmax.f32 %v4240_v30, 0.0  ;;  %v4243_v41 = vadd.f32 %v5660_v5, %v9907_v39  ;;  %v4234_v17 = vpop.f32.mrb[115].mxu0 }
 0x572   : > { %v4298_v37 = vmax.f32 %v4232_v18, 0.0  ;;  %v4235_v43 = vadd.f32 %v4234_v17, %v9909_v12 }
 0x573   : > { %v4332_v34 = vmax.f32 %v4300_v47, 0.0  ;;  %v4301_v6 = vmax.f32 %v4243_v41, 0.0  ;;  %v9910_v47 = vld [vmem:[#allocation18_spill] sm:$0xff] }
 0x574   : > { %4968 = vrot.lane.b32.xlu0 %v4748_v52, %s6851_s15  ;;  %v4330_v42 = vmax.f32 %v4298_v37, 0.0  ;;  %v4299_v46 = vmax.f32 %v4235_v43, 0.0  ;;  %v9911_v3 = vmax.f32 %v9910_v47, 0.0  ;;  %v9912_v41 = vld [vmem:[#allocation34_spill] sm:$0xff]  ;;  %v9914_v37 = vld [vmem:[#allocation19_spill] sm:$0xff] }
 0x575   : > { %v4494_v44 = vcombine.low %v4328_v38, %v4332_v34  ;;  %v4495_v22 = vcombine.high %v4328_v38, %v4332_v34  ;;  %v4333_v20 = vmax.f32 %v4301_v6, 0.0  ;;  %v9913_v17 = vmax.f32 %v9912_v41, 0.0  ;;  %v9916_v43 = vld [vmem:[#allocation35_spill] sm:$0xff] }
 0x576   : > { %v4478_v49 = vcombine.low %v4326_v26, %v4330_v42  ;;  %v4479_v56 = vcombine.high %v4326_v26, %v4330_v42  ;;  %v4331_v28 = vmax.f32 %v4299_v46, 0.0  ;;  %v9915_v4 = vmax.f32 %v9914_v37, 0.0 }
 0x577   : > { %v4502_v48 = vrot.slane %v4494_v44, %v9352_v60  ;;  %v4509_v52 = vrot.slane %v4495_v22, %v9352_v60  ;;  %v4766_v36 = vcombine.low %v4329_v50, %v4333_v20  ;;  %v4767_v25 = vcombine.high %v4329_v50, %v4333_v20 }
 0x578   : > { %4952 = vrot.lane.b32.xlu0 %v4745_v21, %s6852_s21  ;;  %v4486_v51 = vrot.slane %v4478_v49, %v9352_v60  ;;  %v4493_v62 = vrot.slane %v4479_v56, %v9352_v60  ;;  %v4750_v57 = vcombine.low %v4327_v13, %v4331_v28  ;;  %v4751_v1 = vcombine.high %v4327_v13, %v4331_v28  ;;  %v9920_v28 = vld [vmem:[#allocation20_spill] sm:$0xff] }
 0x579   : > { %v9510_v0 = vrot.slane %v4766_v36, %v9352_v60  ;;  %v9513_v8 = vrot.slane %v4767_v25, %v9352_v60  ;;  %v9917_v38 = vmax.f32 %v9916_v43, 0.0  ;;  %v9918_v42 = vmax.f32 %v8684_v7, 0.0 }
 0x57a   : > { %v4542_v45 = vcombine.low %v4486_v51, %v4502_v48  ;;  %v4543_v21 = vcombine.high %v4486_v51, %v4502_v48  ;;  %v4558_v35 = vcombine.low %v4493_v62, %v4509_v52  ;;  %v4559_v29 = vcombine.high %v4493_v62, %v4509_v52 }
 0x57b   : > { %v9517_v40 = vrot.slane %v4750_v57, %v9352_v60  ;;  %v9520_v30 = vrot.slane %v4751_v1, %v9352_v60  ;;  %v9919_v22 = vmax.f32 %v8696_v53, 0.0  ;;  %v9921_v48 = vmax.f32 %v9920_v28, 0.0  ;;  %v9922_v57 = vld [vmem:[#allocation21_spill] sm:$0xff] }
 0x57c   : > { %4976 = vrot.lane.b32.xlu0 %v4749_v59, %s6852_s21  ;;  %v9545_v25 = vrot.slane %v4542_v45, %v9384_v24  ;;  %v9923_v7 = vmax.f32 %v9922_v57, 0.0  ;;  %v4573_v45 = vrot.slane %v4559_v29, %v9384_v24 }
 0x57d   : > { %v4814_v19 = vcombine.low %v9517_v40, %v9510_v0  ;;  %v4815_v31 = vcombine.high %v9517_v40, %v9510_v0  ;;  %v4830_v55 = vcombine.low %v9520_v30, %v9513_v8  ;;  %v4831_v14 = vcombine.high %v9520_v30, %v9513_v8 }
 0x57e   : > { %v9550_v0 = vrot.slane %v4558_v35, %v9384_v24  ;;  %v9553_v30 = vrot.slane %v4543_v21, %v9384_v24 }
 0x57f   : > { %v4845_v28 = vrot.slane %v4831_v14, %v9384_v24 }
 0x582   : > { %v5663_v18 = vpop.f32.mrb[116].mxu0 }
 0x583   : > { %v4247_v59 = vpop.f32.mrb[117].mxu0  ;;  %v4256_v39 = vadd.f32 %v5663_v18, %v9911_v3 }
 0x584   : > { %v5664_v5 = vpop.f32.mrb[118].mxu0  ;;  %v4248_v16 = vadd.f32 %v4247_v59, %v9913_v17 }
 0x585   : > { %v4250_v58 = vpop.f32.mrb[119].mxu0  ;;  %v4259_v12 = vadd.f32 %v5664_v5, %v9915_v4  ;;  %v4304_v26 = vmax.f32 %v4256_v39, 0.0 }
 0x586   : > { %v4251_v34 = vadd.f32 %v4250_v58, %v9917_v38  ;;  %v4302_v44 = vmax.f32 %v4248_v16, 0.0 }
 0x587   : > { %v4305_v49 = vmax.f32 %v4259_v12, 0.0  ;;  %v4336_v53 = vmax.f32 %v4304_v26, 0.0 }
 0x588   : > { %v4303_v51 = vmax.f32 %v4251_v34, 0.0  ;;  %v4334_v18 = vmax.f32 %v4302_v44, 0.0 }
 0x589   : > { %v4337_v58 = vmax.f32 %v4305_v49, 0.0 }
 0x58a   : > { %v4335_v41 = vmax.f32 %v4303_v51, 0.0 }
 0x599   : > { %v5667_v6 = vpop.f32.mrb[120].mxu0 }
 0x59a   : > { %v4272_v46 = vadd.f32 %v5667_v6, %v9918_v42  ;;  %v4263_v50 = vpop.f32.mrb[121].mxu0  ;;  %v9563_v42 = vrot.slane %v4814_v19, %v9384_v24 }
 0x59b   : > { %v4264_v20 = vadd.f32 %v4263_v50, %v9919_v22  ;;  %v5668_v13 = vpop.f32.mrb[122].mxu0 }
 0x59c   : > { %v4308_v56 = vmax.f32 %v4272_v46, 0.0  ;;  %v4275_v52 = vadd.f32 %v5668_v13, %v9921_v48  ;;  %v4266_v36 = vpop.f32.mrb[123].mxu0  ;;  %v9566_v46 = vrot.slane %v4830_v55, %v9384_v24 }
 0x59d   : > { %v4306_v62 = vmax.f32 %v4264_v20, 0.0  ;;  %v4267_v1 = vadd.f32 %v4266_v36, %v9923_v7 }
 0x59e   : > { %v4340_v8 = vmax.f32 %v4308_v56, 0.0  ;;  %v4309_v40 = vmax.f32 %v4275_v52, 0.0  ;;  %v4829_v56 = vrot.slane %v4815_v31, %v9384_v24 }
 0x59f   : > { %v4338_v59 = vmax.f32 %v4306_v62, 0.0  ;;  %v4307_v5 = vmax.f32 %v4267_v1, 0.0 }
 0x5a0   : > { %v4526_v47 = vcombine.low %v4336_v53, %v4340_v8  ;;  %v4527_v3 = vcombine.high %v4336_v53, %v4340_v8  ;;  %v4341_v39 = vmax.f32 %v4309_v40, 0.0 }
 0x5a1   : > { %v4510_v17 = vcombine.low %v4334_v18, %v4338_v59  ;;  %v4511_v16 = vcombine.high %v4334_v18, %v4338_v59  ;;  %v4339_v35 = vmax.f32 %v4307_v5, 0.0 }
 0x5a2   : > { %v4534_v37 = vrot.slane %v4526_v47, %v9352_v60  ;;  %v4541_v4 = vrot.slane %v4527_v3, %v9352_v60  ;;  %v4798_v12 = vcombine.low %v4337_v58, %v4341_v39  ;;  %v4799_v21 = vcombine.high %v4337_v58, %v4341_v39 }
 0x5a3   : > { %v4518_v43 = vrot.slane %v4510_v17, %v9352_v60  ;;  %v4525_v38 = vrot.slane %v4511_v16, %v9352_v60  ;;  %v4782_v34 = vcombine.low %v4335_v41, %v4339_v35  ;;  %v4783_v29 = vcombine.high %v4335_v41, %v4339_v35 }
 0x5a4   : > { %v4806_v6 = vrot.slane %v4798_v12, %v9352_v60  ;;  %v4813_v26 = vrot.slane %v4799_v21, %v9352_v60 }
 0x5a5   : > { %v4574_v50 = vcombine.low %v4518_v43, %v4534_v37  ;;  %v4575_v44 = vcombine.high %v4518_v43, %v4534_v37  ;;  %v4590_v22 = vcombine.low %v4525_v38, %v4541_v4  ;;  %v4591_v20 = vcombine.high %v4525_v38, %v4541_v4 }
 0x5a6   : > { %v4790_v13 = vrot.slane %v4782_v34, %v9352_v60  ;;  %v4797_v49 = vrot.slane %v4783_v29, %v9352_v60 }
 0x5a7   : > { %v9573_v48 = vrot.slane %v4574_v50, %v9384_v24  ;;  %v9576_v19 = vrot.slane %v4590_v22, %v9384_v24  ;;  %v4589_v55 = vrot.slane %v4575_v44, %v9384_v24  ;;  %v4605_v52 = vrot.slane %v4591_v20, %v9384_v24 }
 0x5a8   : > { %v4846_v36 = vcombine.low %v4790_v13, %v4806_v6  ;;  %v4847_v51 = vcombine.high %v4790_v13, %v4806_v6  ;;  %v4862_v62 = vcombine.low %v4797_v49, %v4813_v26  ;;  %v4863_v57 = vcombine.high %v4797_v49, %v4813_v26 }
 0x5a9   : > { %v4607_v60 = vcombine.high %v9545_v25, %v9573_v48  ;;  %v4611_v31 = vcombine.high %v9550_v0, %v9576_v19  ;;  %v4608_v14 = vcombine.low %v9553_v30, %v4589_v55  ;;  %v4612_v7 = vcombine.low %v4573_v45, %v4605_v52 }
 0x5aa   : > { %v4609_v1 = vcombine.high %v9553_v30, %v4589_v55  ;;  %v4613_v53 = vcombine.high %v4573_v45, %v4605_v52  ;;  %v9587_v8 = vrot.slane %v4846_v36, %v9384_v24  ;;  %v9590_v40 = vrot.slane %v4862_v62, %v9384_v24 }
 0x5ab   : > { %4890 = vrot.lane.b32.xlu1 %v4607_v60, %s6853_s27  ;;  %v4861_v18 = vrot.slane %v4847_v51, %v9384_v24  ;;  %v4877_v59 = vrot.slane %v4863_v57, %v9384_v24  ;;  %v4606_v5 = vcombine.low %v9545_v25, %v9573_v48  ;;  %v4610_v58 = vcombine.low %v9550_v0, %v9576_v19 }
 0x5ac   : > { %v4879_v30 = vcombine.high %v9563_v42, %v9587_v8  ;;  %v4883_v45 = vcombine.high %v9566_v46, %v9590_v40  ;;  %v4878_v47 = vcombine.low %v9563_v42, %v9587_v8  ;;  %v4882_v3 = vcombine.low %v9566_v46, %v9590_v40 }
 0x5ad   : > { %v4880_v24 = vcombine.low %v4829_v56, %v4861_v18  ;;  %v4884_v39 = vcombine.low %v4845_v28, %v4877_v59  ;;  %v4881_v25 = vcombine.high %v4829_v56, %v4861_v18  ;;  %v4885_v41 = vcombine.high %v4845_v28, %v4877_v59 }
 0x5af   : > { %4914 = vrot.lane.b32.xlu1 %v4611_v31, %s6853_s27 }
 0x5b3   : > { %4898 = vrot.lane.b32.xlu1 %v4608_v14, %s6851_s15 }
 0x5b7   : > { %4922 = vrot.lane.b32.xlu1 %v4612_v7, %s6851_s15 }
 0x5bb   : > { %4906 = vrot.lane.b32.xlu1 %v4609_v1, %s6852_s21 }
 0x5bf   : > { %4930 = vrot.lane.b32.xlu1 %v4613_v53, %s6852_s21 }
 0x5c2   : > { %v4889_v0 = vpop.permute.xlu0 %4888 }
 0x5c3   : > { %4938 = vrot.lane.b32.xlu1 %v4879_v30, %s6853_s27  ;;  %v4982_v37 = vsel %vm192_vm0, %v4470_v61, %v4889_v0 }
 0x5c6   : > { %v4913_v17 = vpop.permute.xlu0 %4912 }
 0x5c7   : > { %4962 = vrot.lane.b32.xlu1 %v4883_v45, %s6853_s27  ;;  %v4988_v10 = vsel %vm192_vm0, %v4474_v9, %v4913_v17 }
 0x5ca   : > { %v4897_v16 = vpop.permute.xlu0 %4896 }
 0x5cb   : > { %4946 = vrot.lane.b32.xlu1 %v4880_v24, %s6851_s15  ;;  %v4984_v4 = vsel %vm1275_vm4, %v4982_v37, %v4897_v16 }
 0x5ce   : > { %v4921_v35 = vpop.permute.xlu0 %4920 }
 0x5cf   : > { %4970 = vrot.lane.b32.xlu1 %v4884_v39, %s6851_s15  ;;  %v4990_v63 = vsel %vm1275_vm4, %v4988_v10, %v4921_v35 }
 0x5d2   : > { %v4905_v12 = vpop.permute.xlu0 %4904 }
 0x5d3   : > { %v4986_v21 = vsel %vm1308_vm5, %v4984_v4, %v4905_v12  ;;  %4954 = vrot.lane.b32.xlu1 %v4881_v25, %s6852_s21 }
 0x5d4   : > { %5006 = vst [vmem:[%s9625_s12] sm:$0xff] %v4986_v21 }
 0x5d6   : > { %v4929_v61 = vpop.permute.xlu0 %4928 }
 0x5d7   : > { %v4992_v43 = vsel %vm1308_vm5, %v4990_v63, %v4929_v61  ;;  %4978 = vrot.lane.b32.xlu1 %v4885_v41, %s6852_s21 }
 0x5d8   : > { %5007 = vst [vmem:[%s9625_s12 + $0x8] sm:$0xff] %v4992_v43 }
 0x5da   : > { %v4937_v38 = vpop.permute.xlu0 %4936 }
 0x5db   : > { %v4994_v32 = vsel %vm192_vm0, %v4742_v27, %v4937_v38 }
 0x5de   : > { %v4961_v34 = vpop.permute.xlu0 %4960 }
 0x5df   : > { %v5000_v50 = vsel %vm192_vm0, %v4746_v11, %v4961_v34 }
 0x5e2   : > { %v4945_v29 = vpop.permute.xlu0 %4944 }
 0x5e3   : > { %v4996_v23 = vsel %vm1275_vm4, %v4994_v32, %v4945_v29 }
 0x5e6   : > { %v4969_v6 = vpop.permute.xlu0 %4968 }
 0x5e7   : > { %v5002_v44 = vsel %vm1275_vm4, %v5000_v50, %v4969_v6 }
 0x5ea   : > { %v4953_v9 = vpop.permute.xlu0 %4952 }
 0x5eb   : > { %v4998_v26 = vsel %vm1308_vm5, %v4996_v23, %v4953_v9 }
 0x5ec   : > { %5008 = vst [vmem:[%s9625_s12 + $0x10] sm:$0xff] %v4998_v26 }
 0x5ee   : > { %v4977_v22 = vpop.permute.xlu0 %4976 }
 0x5ef   : > { %v5004_v15 = vsel %vm1308_vm5, %v5002_v44, %v4977_v22 }
 0x5f0   : > { %5009 = vst [vmem:[%s9625_s12 + $0x18] sm:$0xff] %v5004_v15 }
 0x61d   : > { %v4891_v33 = vpop.permute.xlu1 %4890 }
 0x61e   : > { %v4983_v49 = vsel %vm192_vm0, %v4606_v5, %v4891_v33 }
 0x621   : > { %v4915_v27 = vpop.permute.xlu1 %4914 }
 0x622   : > { %v4989_v54 = vsel %vm192_vm0, %v4610_v58, %v4915_v27 }
 0x625   : > { %v4899_v20 = vpop.permute.xlu1 %4898 }
 0x626   : > { %v4985_v56 = vsel %vm1275_vm4, %v4983_v49, %v4899_v20 }
 0x629   : > { %v4923_v13 = vpop.permute.xlu1 %4922 }
 0x62a   : > { %v4991_v11 = vsel %vm1275_vm4, %v4989_v54, %v4923_v13 }
 0x62d   : > { %v4907_v28 = vpop.permute.xlu1 %4906 }
 0x62e   : > { %v4987_v2 = vsel %vm1308_vm5, %v4985_v56, %v4907_v28 }
 0x62f   : > { %5010 = vst [vmem:[%s9625_s12 + $0x20] sm:$0xff] %v4987_v2 }
 0x631   : > { %v4931_v48 = vpop.permute.xlu1 %4930 }
 0x632   : > { %v4993_v19 = vsel %vm1308_vm5, %v4991_v11, %v4931_v48 }
 0x633   : > { %5011 = vst [vmem:[%s9625_s12 + $0x28] sm:$0xff] %v4993_v19 }
 0x635   : > { %v4939_v55 = vpop.permute.xlu1 %4938 }
 0x636   : > { %v4995_v62 = vsel %vm192_vm0, %v4878_v47, %v4939_v55 }
 0x639   : > { %v4963_v52 = vpop.permute.xlu1 %4962 }
 0x63a   : > { %v5001_v14 = vsel %vm192_vm0, %v4882_v3, %v4963_v52 }
 0x63d   : > { %v4947_v36 = vpop.permute.xlu1 %4946 }
 0x63e   : > { %v4997_v57 = vsel %vm1275_vm4, %v4995_v62, %v4947_v36 }
 0x641   : > { %v4971_v51 = vpop.permute.xlu1 %4970 }
 0x642   : > { %v5003_v7 = vsel %vm1275_vm4, %v5001_v14, %v4971_v51 }
 0x645   : > { %v4955_v60 = vpop.permute.xlu1 %4954 }
 0x646   : > { %v4999_v31 = vsel %vm1308_vm5, %v4997_v57, %v4955_v60 }
 0x647   : > { %5012 = vst [vmem:[%s9625_s12 + $0x30] sm:$0xff] %v4999_v31 }
 0x649   : > { %v4979_v1 = vpop.permute.xlu1 %4978 }
 0x64a   : > { %v5005_v53 = vsel %vm1308_vm5, %v5003_v7, %v4979_v1 }
 0x64b   : > { %5013 = vst [vmem:[%s9625_s12 + $0x38] sm:$0xff] %v5005_v53 }
 0x64c PF: > { %p13_p8 = scmp.ge.s32.totalorder %s6898_s17, 4   ;;  %s9924_s12 = smov %s6837_s13 }
 0x64d   : > { %s9925_s13 = smov %s6841_s14  ;;  %s9926_s14 = smov %s6908_s20 }
 0x64e   : > { %s9927_s15 = smov %s6898_s17  ;;  %15 = sbr.rel (!%p13_p8) target bundleno = 3 (0x3), region = 75 }
 0x655   :  { %5035 = vsyncpa [#allocation4], 1 }
 0x656   :  { %5037 = vsyncpa [#allocation4 + $0x1], 1 }

</bundles_post_ra>
